<compile_context>
chip_gen: v7x
topology: tpu7x:2x2x1
jax: 0.10.0
libtpu: 0.0.40
codegen_flags: <defaults>
</compile_context>

<pallas_src>
import functools
import math

import numpy as np

import jax
import jax.numpy as jnp
from jax.experimental import pallas as pl
from jax.experimental.pallas import tpu as pltpu


def _vmem_limit_bytes():
    """Scoped-VMEM limit derived from the chip (v5e/v6e: 128 MiB, v7x: 64 MiB)."""
    try:
        cap = int(pltpu.get_tpu_info().vmem_capacity_bytes)
    except Exception:  # best-effort hardware query
        cap = 64 * 1024 * 1024
    return max(32 * 1024 * 1024, min(cap * 3 // 4, 100 * 1024 * 1024))


def _round_up(x, m):
    return (x + m - 1) // m * m


def _pick_k_tile(k_total, preferred):
    """Largest 128-aligned K tile <= preferred that divides k_total."""
    preferred = max(128, (preferred // 128) * 128)
    if k_total <= preferred:
        return k_total
    t = preferred
    while t >= 128:
        if k_total % t == 0:
            return t
        t -= 128
    return k_total


def _pair_rotation_matrix(n):
    """(n, n) matrix R with (x @ R)[2j] = -x[2j+1], (x @ R)[2j+1] = x[2j].

    Entries are exactly 0/+-1, so applying it per head on the MXU is cheap and
    numerically exact; combined with repeated cos/sin it reproduces the
    interleaved (complex) RoPE rotation."""
    r = np.zeros((n, n), dtype=np.float32)
    idx = np.arange(0, n, 2)
    r[idx, idx + 1] = 1.0
    r[idx + 1, idx] = -1.0
    return jnp.asarray(r)


# --------------------------------------------------------------------------
# Kernels
# --------------------------------------------------------------------------
def _qkv_rope_kernel(x_ref, w_ref, cos_ref, sin_ref, rot_ref,
                     q_ref, k_ref, v_ref, acc_ref, *,
                     n_heads, n_kv_heads, head_dim, compute_dtype):
    """K-tiled fused QKV projection; RoPE applied per head in the finalize step."""
    k_idx = pl.program_id(1)

    @pl.when(k_idx == 0)
    def _():
        acc_ref[...] = jnp.zeros(acc_ref.shape, jnp.float32)

    # (tm, tk) x (total_out, tk) -> (tm, total_out): x @ W^T without a transpose.
    x = x_ref[...].astype(compute_dtype)
    acc_ref[...] += jax.lax.dot_general(
        x, w_ref[...], (((1,), (1,)), ((), ())),
        preferred_element_type=jnp.float32)

    @pl.when(k_idx == pl.num_programs(1) - 1)
    def _():
        acc = acc_ref[...]
        q_feat = n_heads * head_dim
        kv_feat = n_kv_heads * head_dim
        cos = cos_ref[...]      # (tm, head_dim) f32, already interleaved [c0,c0,c1,c1,..]
        sin = sin_ref[...]      # (tm, head_dim) f32
        rot = rot_ref[...]      # (head_dim, head_dim) +/-1 pair-rotation, bf16

        def rope_head(col0, h, out_ref, out_h):
            lo = col0 + h * head_dim
            t = acc[:, lo:lo + head_dim]                      # (tm, head_dim) f32
            t_rot = jnp.dot(t.astype(compute_dtype), rot,
                            preferred_element_type=jnp.float32)
            out_ref[:, out_h * head_dim:(out_h + 1) * head_dim] = (
                t * cos + t_rot * sin).astype(out_ref.dtype)

        for h in range(n_heads):
            rope_head(0, h, q_ref, h)
        for h in range(n_kv_heads):
            rope_head(q_feat, h, k_ref, h)
        v_ref[...] = acc[:, q_feat + kv_feat:].astype(v_ref.dtype)


def _flash_gqa_kernel(q_ref, k_ref, v_ref, o_ref,
                      qg_ref, m_ref, l_ref, acc_ref, *,
                      n_rep, seqlen, head_dim, start_pos, kv_tile, scale,
                      compute_dtype):
    """Online-softmax attention over kv tiles for one (batch, GQA group)."""
    kv_i = pl.program_id(2)

    @pl.when(kv_i == 0)
    def _():
        q = q_ref[0]                                  # (seqlen, n_rep*head_dim)
        # Head-major stacking: rows [j*seqlen, (j+1)*seqlen) = q-head (g*n_rep + j).
        qg = jnp.concatenate(
            [q[:, j * head_dim:(j + 1) * head_dim] for j in range(n_rep)], axis=0)
        qg_ref[...] = (qg.astype(jnp.float32) * scale).astype(qg_ref.dtype)
        m_ref[...] = jnp.full(m_ref.shape, -jnp.inf, jnp.float32)
        l_ref[...] = jnp.zeros(l_ref.shape, jnp.float32)
        acc_ref[...] = jnp.zeros(acc_ref.shape, jnp.float32)

    k = k_ref[0].astype(compute_dtype)                # (kv_tile, head_dim)
    v = v_ref[0].astype(compute_dtype)
    s = jax.lax.dot_general(qg_ref[...], k, (((1,), (1,)), ((), ())),
                            preferred_element_type=jnp.float32)    # (M, kv_tile)

    # Causal (llama) mask built from iota: kv position <= start_pos + q position.
    rows = jax.lax.broadcasted_iota(jnp.int32, s.shape, 0)
    cols = jax.lax.broadcasted_iota(jnp.int32, s.shape, 1) + kv_i * kv_tile
    q_pos = rows % seqlen
    s = jnp.where(cols <= q_pos + start_pos, s, -1e30)

    m_prev = m_ref[...]
    m_new = jnp.maximum(m_prev, jnp.max(s, axis=-1, keepdims=True))
    alpha = jnp.exp(m_prev - m_new)
    p = jnp.exp(s - m_new)
    l_ref[...] = alpha * l_ref[...] + jnp.sum(p, axis=-1, keepdims=True)
    acc_ref[...] = alpha * acc_ref[...] + jax.lax.dot_general(
        p.astype(compute_dtype), v, (((1,), (0,)), ((), ())),
        preferred_element_type=jnp.float32)
    m_ref[...] = m_new

    @pl.when(kv_i == pl.num_programs(2) - 1)
    def _():
        # Deferred softmax normalization on the small (M, head_dim) accumulator.
        out = acc_ref[...] * pl.reciprocal(l_ref[...], approx=True)
        for j in range(n_rep):
            o_ref[0, :, j * head_dim:(j + 1) * head_dim] = (
                out[j * seqlen:(j + 1) * seqlen, :].astype(o_ref.dtype))


def _matmul_wt_kernel(x_ref, w_ref, o_ref, acc_ref, *, compute_dtype):
    """K-tiled x @ W^T with f32 accumulation (used for the wo projection)."""
    k_idx = pl.program_id(1)

    @pl.when(k_idx == 0)
    def _():
        acc_ref[...] = jnp.zeros(acc_ref.shape, jnp.float32)

    acc_ref[...] += jax.lax.dot_general(
        x_ref[...].astype(compute_dtype), w_ref[...],
        (((1,), (1,)), ((), ())), preferred_element_type=jnp.float32)

    @pl.when(k_idx == pl.num_programs(1) - 1)
    def _():
        o_ref[...] = acc_ref[...].astype(o_ref.dtype)


# --------------------------------------------------------------------------
# Wrapper (functional equivalent of Attention.forward, single MP shard)
# --------------------------------------------------------------------------
def attention_pallas(x, wq, wk, wv, wo, cache_k, cache_v, start_pos, cos, sin,
                     *, n_heads, n_kv_heads, tm=256, tk=512, tkv=512,
                     compute_dtype=jnp.bfloat16):
    bsz, seqlen, dim = x.shape
    head_dim = dim // n_heads
    assert head_dim % 128 == 0, "head_dim must be a multiple of 128 (TPU lane width)"
    n_rep = n_heads // n_kv_heads
    q_feat = n_heads * head_dim
    kv_feat = n_kv_heads * head_dim
    group_feat = n_rep * head_dim
    total_out = q_feat + 2 * kv_feat
    tokens = bsz * seqlen
    kv_len = start_pos + seqlen
    max_batch, max_seq = cache_k.shape[0], cache_k.shape[1]
    out_dtype = x.dtype
    vmem_limit = _vmem_limit_bytes()

    tm = min(tm, _round_up(tokens, 128))
    n_blk = pl.cdiv(tokens, tm)
    t_pad = n_blk * tm
    pad = t_pad - tokens

    tk_qkv = _pick_k_tile(dim, tk)
    nk_qkv = dim // tk_qkv
    tk_o = _pick_k_tile(q_feat, tk)
    nk_o = q_feat // tk_o

    # Fused (out, in)-layout QKV weight, cast to bf16 once.
    # TODO(synk): hoist this concat/cast out of the per-call path in a real model.
    w_qkv = jnp.concatenate([wq, wk, wv], axis=0).astype(compute_dtype)
    w_o = wo.astype(compute_dtype)

    # Per-token RoPE tables over head_dim only (broadcast over heads in-kernel).
    cos2 = jnp.repeat(cos.astype(jnp.float32), 2, axis=-1)          # (seqlen, head_dim)
    sin2 = jnp.repeat(sin.astype(jnp.float32), 2, axis=-1)
    cos_tok = jnp.pad(jnp.tile(cos2, (bsz, 1)), ((0, pad), (0, 0)))  # (t_pad, head_dim)
    sin_tok = jnp.pad(jnp.tile(sin2, (bsz, 1)), ((0, pad), (0, 0)))
    rot = _pair_rotation_matrix(head_dim).astype(compute_dtype)

    x2d = jnp.pad(x.reshape(tokens, dim), ((0, pad), (0, 0)))

    # ---------------- fused QKV projection + RoPE (K-tiled) ----------------
    qkv_flops = int(2 * t_pad * dim * total_out
                    + 2 * t_pad * (q_feat + kv_feat) * head_dim)
    qkv_bytes = int(x2d.size * x2d.dtype.itemsize + w_qkv.size * 2
                    + (cos_tok.size + sin_tok.size) * 4 + t_pad * total_out * 2)

    q2d, k2d, v2d = pl.pallas_call(
        functools.partial(_qkv_rope_kernel, n_heads=n_heads,
                          n_kv_heads=n_kv_heads, head_dim=head_dim,
                          compute_dtype=compute_dtype),
        out_shape=(jax.ShapeDtypeStruct((t_pad, q_feat), compute_dtype),
                   jax.ShapeDtypeStruct((t_pad, kv_feat), compute_dtype),
                   jax.ShapeDtypeStruct((t_pad, kv_feat), compute_dtype)),
        grid_spec=pltpu.PrefetchScalarGridSpec(
            num_scalar_prefetch=0,
            grid=(n_blk, nk_qkv),
            in_specs=[
                pl.BlockSpec((tm, tk_qkv), lambda i, k: (i, k)),          # x
                pl.BlockSpec((total_out, tk_qkv), lambda i, k: (0, k)),   # fused W (streams)
                pl.BlockSpec((tm, head_dim), lambda i, k: (i, 0)),        # cos
                pl.BlockSpec((tm, head_dim), lambda i, k: (i, 0)),        # sin
                pl.BlockSpec((head_dim, head_dim), lambda i, k: (0, 0),
                             pipeline_mode=pl.Buffered(1)),               # pair rotation
            ],
            out_specs=(pl.BlockSpec((tm, q_feat), lambda i, k: (i, 0)),
                       pl.BlockSpec((tm, kv_feat), lambda i, k: (i, 0)),
                       pl.BlockSpec((tm, kv_feat), lambda i, k: (i, 0))),
            scratch_shapes=[pltpu.VMEM((tm, total_out), jnp.float32)],
        ),
        compiler_params=pltpu.CompilerParams(
            dimension_semantics=("parallel", "arbitrary"),
            vmem_limit_bytes=vmem_limit),
        cost_estimate=pl.CostEstimate(flops=qkv_flops, transcendentals=0,
                                      bytes_accessed=qkv_bytes),
    )(x2d, w_qkv, cos_tok, sin_tok, rot)

    # Functional KV-cache write-back (PyTorch mutates self.cache_k/v in place).
    xk = k2d[:tokens].reshape(bsz, seqlen, n_kv_heads, head_dim).astype(cache_k.dtype)
    xv = v2d[:tokens].reshape(bsz, seqlen, n_kv_heads, head_dim).astype(cache_v.dtype)
    cache_k = cache_k.at[:bsz, start_pos:start_pos + seqlen].set(xk)
    cache_v = cache_v.at[:bsz, start_pos:start_pos + seqlen].set(xv)

    # ---------------- flash GQA attention core ----------------
    q3 = q2d[:tokens].reshape(bsz, seqlen, q_feat)
    keys = cache_k.reshape(max_batch, max_seq, kv_feat)    # free reshape, no transpose
    vals = cache_v.reshape(max_batch, max_seq, kv_feat)

    kv_tile = min(_round_up(kv_len, 8), max(8, _round_up(tkv, 8)))
    n_kvb = pl.cdiv(kv_len, kv_tile)
    assert n_kvb * kv_tile <= max_seq, "kv tiling overruns the cache"

    m_rows = n_rep * seqlen
    scale = 1.0 / math.sqrt(head_dim)
    kv_cover = n_kvb * kv_tile
    attn_flops = int(4 * bsz * n_heads * seqlen * kv_cover * head_dim)
    attn_trans = int(bsz * n_heads * seqlen * kv_cover)
    attn_bytes = int(q3.size * 2
                     + 2 * bsz * kv_cover * kv_feat * cache_k.dtype.itemsize
                     + tokens * q_feat * 2)

    attn_out = pl.pallas_call(
        functools.partial(_flash_gqa_kernel, n_rep=n_rep, seqlen=seqlen,
                          head_dim=head_dim, start_pos=start_pos,
                          kv_tile=kv_tile, scale=scale,
                          compute_dtype=compute_dtype),
        out_shape=jax.ShapeDtypeStruct((bsz, seqlen, q_feat), compute_dtype),
        grid_spec=pltpu.PrefetchScalarGridSpec(
            num_scalar_prefetch=0,
            grid=(bsz, n_kv_heads, n_kvb),
            in_specs=[
                pl.BlockSpec((1, seqlen, group_feat), lambda b, g, kv: (b, 0, g)),
                pl.BlockSpec((1, kv_tile, head_dim), lambda b, g, kv: (b, kv, g)),
                pl.BlockSpec((1, kv_tile, head_dim), lambda b, g, kv: (b, kv, g)),
            ],
            out_specs=pl.BlockSpec((1, seqlen, group_feat),
                                   lambda b, g, kv: (b, 0, g)),
            scratch_shapes=[
                pltpu.VMEM((m_rows, head_dim), compute_dtype),   # scaled, head-stacked Q
                pltpu.VMEM((m_rows, 1), jnp.float32),            # running max
                pltpu.VMEM((m_rows, 1), jnp.float32),            # running sum
                pltpu.VMEM((m_rows, head_dim), jnp.float32),     # PV accumulator
            ],
        ),
        compiler_params=pltpu.CompilerParams(
            dimension_semantics=("parallel", "parallel", "arbitrary"),
            vmem_limit_bytes=vmem_limit),
        cost_estimate=pl.CostEstimate(flops=attn_flops, transcendentals=attn_trans,
                                      bytes_accessed=attn_bytes),
    )(q3, keys, vals)

    # ---------------- output projection (wo, K-tiled) ----------------
    attn2d = jnp.pad(attn_out.reshape(tokens, q_feat), ((0, pad), (0, 0)))
    wo_flops = int(2 * t_pad * q_feat * dim)
    wo_bytes = int(attn2d.size * 2 + w_o.size * 2
                   + t_pad * dim * np.dtype(out_dtype).itemsize)

    out2d = pl.pallas_call(
        functools.partial(_matmul_wt_kernel, compute_dtype=compute_dtype),
        out_shape=jax.ShapeDtypeStruct((t_pad, dim), out_dtype),
        grid_spec=pltpu.PrefetchScalarGridSpec(
            num_scalar_prefetch=0,
            grid=(n_blk, nk_o),
            in_specs=[pl.BlockSpec((tm, tk_o), lambda i, k: (i, k)),
                      pl.BlockSpec((dim, tk_o), lambda i, k: (0, k))],
            out_specs=pl.BlockSpec((tm, dim), lambda i, k: (i, 0)),
            scratch_shapes=[pltpu.VMEM((tm, dim), jnp.float32)],
        ),
        compiler_params=pltpu.CompilerParams(
            dimension_semantics=("parallel", "arbitrary"),
            vmem_limit_bytes=vmem_limit),
        cost_estimate=pl.CostEstimate(flops=wo_flops, transcendentals=0,
                                      bytes_accessed=wo_bytes),
    )(attn2d, w_o)

    out = out2d[:tokens].reshape(bsz, seqlen, dim)
    return out, cache_k, cache_v


# --------------------------------------------------------------------------
# Pure-JAX f32 reference (mirrors the PyTorch module)
# --------------------------------------------------------------------------
def attention_ref(x, wq, wk, wv, wo, cache_k, cache_v, start_pos, cos, sin,
                  mask, n_heads, n_kv_heads):
    bsz, seqlen, dim = x.shape
    hd = dim // n_heads
    n_rep = n_heads // n_kv_heads
    xq = (x @ wq.T).reshape(bsz, seqlen, n_heads, hd)
    xk = (x @ wk.T).reshape(bsz, seqlen, n_kv_heads, hd)
    xv = (x @ wv.T).reshape(bsz, seqlen, n_kv_heads, hd)

    def rope(t):
        tr = t.reshape(*t.shape[:-1], hd // 2, 2)
        t0, t1 = tr[..., 0], tr[..., 1]
        c = cos[None, :, None, :]
        s = sin[None, :, None, :]
        return jnp.stack([t0 * c - t1 * s, t0 * s + t1 * c], axis=-1).reshape(t.shape)

    xq = rope(xq)
    xk = rope(xk)
    cache_k = cache_k.at[:bsz, start_pos:start_pos + seqlen].set(xk.astype(cache_k.dtype))
    cache_v = cache_v.at[:bsz, start_pos:start_pos + seqlen].set(xv.astype(cache_v.dtype))
    keys = jnp.repeat(cache_k[:bsz, :start_pos + seqlen].astype(jnp.float32), n_rep, axis=2)
    values = jnp.repeat(cache_v[:bsz, :start_pos + seqlen].astype(jnp.float32), n_rep, axis=2)
    q = jnp.transpose(xq, (0, 2, 1, 3))
    k = jnp.transpose(keys, (0, 2, 1, 3))
    v = jnp.transpose(values, (0, 2, 1, 3))
    scores = jnp.einsum('bhqd,bhkd->bhqk', q, k) / math.sqrt(hd)
    scores = scores + mask[None, None]
    scores = jax.nn.softmax(scores.astype(jnp.float32), axis=-1)
    out = jnp.einsum('bhqk,bhkd->bhqd', scores, v)
    out = jnp.transpose(out, (0, 2, 1, 3)).reshape(bsz, seqlen, -1)
    return out @ wo.T


if __name__ == "__main__":
    # Small synthetic config (single model-parallel shard); head_dim=128 = lane width.
    dim = 512
    n_heads = 4
    n_kv_heads = 2
    head_dim = dim // n_heads          # 128
    max_batch, max_seq = 2, 32
    bsz, seqlen, start_pos = 2, 8, 8
    rope_theta = 500000.0

    key = jax.random.PRNGKey(0)
    kx, kwq, kwk, kwv, kwo, kck, kcv = jax.random.split(key, 7)
    x = jax.random.normal(kx, (bsz, seqlen, dim), jnp.float32)
    # PyTorch nn.Linear weight layout: (out_features, in_features)
    wq = jax.random.normal(kwq, (n_heads * head_dim, dim), jnp.float32) * 0.02
    wk = jax.random.normal(kwk, (n_kv_heads * head_dim, dim), jnp.float32) * 0.02
    wv = jax.random.normal(kwv, (n_kv_heads * head_dim, dim), jnp.float32) * 0.02
    wo = jax.random.normal(kwo, (dim, n_heads * head_dim), jnp.float32) * 0.02

    # bf16 KV cache (halves attention HBM reads); positions [0, start_pos) were
    # "written by a previous call".
    cache_dtype = jnp.bfloat16
    cache_k = jnp.zeros((max_batch, max_seq, n_kv_heads, head_dim), cache_dtype)
    cache_v = jnp.zeros((max_batch, max_seq, n_kv_heads, head_dim), cache_dtype)
    cache_k = cache_k.at[:bsz, :start_pos].set(
        (0.2 * jax.random.normal(kck, (bsz, start_pos, n_kv_heads, head_dim),
                                 jnp.float32)).astype(cache_dtype))
    cache_v = cache_v.at[:bsz, :start_pos].set(
        (0.2 * jax.random.normal(kcv, (bsz, start_pos, n_kv_heads, head_dim),
                                 jnp.float32)).astype(cache_dtype))

    # freqs_cis (as cos/sin) for positions [start_pos, start_pos + seqlen).
    inv_freq = 1.0 / (rope_theta ** (np.arange(0, head_dim, 2, dtype=np.float32) / head_dim))
    pos = np.arange(start_pos, start_pos + seqlen, dtype=np.float32)
    freqs = np.outer(pos, inv_freq)                         # (seqlen, head_dim//2)
    cos = jnp.asarray(np.cos(freqs), jnp.float32)
    sin = jnp.asarray(np.sin(freqs), jnp.float32)

    out, new_ck, new_cv = attention_pallas(
        x, wq, wk, wv, wo, cache_k, cache_v, start_pos, cos, sin,
        n_heads=n_heads, n_kv_heads=n_kv_heads,
        tm=128, tk=256, tkv=8, compute_dtype=jnp.bfloat16)
    out = jax.block_until_ready(out)

    # llama-style additive causal mask (only the pure-JAX reference needs it;
    # the Pallas kernel builds it in-kernel from iota + start_pos).
    m = np.triu(np.full((seqlen, seqlen), -np.inf, dtype=np.float32), k=1)
    mask = jnp.asarray(
        np.concatenate([np.zeros((seqlen, start_pos), np.float32), m], axis=1))

    ref = attention_ref(x, wq, wk, wv, wo, cache_k, cache_v, start_pos, cos, sin,
                        mask, n_heads, n_kv_heads)

    assert out.shape == (bsz, seqlen, dim)
    assert bool(jnp.all(jnp.isfinite(out)))
    err = float(jnp.max(jnp.abs(out - ref)))
    assert err < 2e-2, f"max abs err vs f32 reference: {err}"

    print("KERNEL_OK")
</pallas_src>

<mosaic_0001>
module attributes {stable_mosaic.version = 11 : i64} {
  func.func @_qkv_rope_kernel(%arg0: i32, %arg1: i32, %arg2: memref<128x256xf32, #tpu.memory_space<vmem>>, %arg3: memref<1024x256xbf16, #tpu.memory_space<vmem>>, %arg4: memref<128x128xf32, #tpu.memory_space<vmem>>, %arg5: memref<128x128xf32, #tpu.memory_space<vmem>>, %arg6: memref<128x128xbf16, #tpu.memory_space<vmem>>, %arg7: memref<128x512xbf16, #tpu.memory_space<vmem>>, %arg8: memref<128x256xbf16, #tpu.memory_space<vmem>>, %arg9: memref<128x256xbf16, #tpu.memory_space<vmem>>, %arg10: memref<128x1024xf32, #tpu.memory_space<vmem>>) attributes {dimension_semantics = [#tpu.dimension_semantics<parallel>, #tpu.dimension_semantics<arbitrary>], iteration_bounds = array<i64: 1, 2>, scalar_prefetch = 0 : i64, scratch_operands = 1 : i64, tpu.core_type = #tpu.core_type<tc>, window_params = [{transform_indices = @transform_0, window_bounds = array<i64: 128, 256>}, {transform_indices = @transform_1, window_bounds = array<i64: 1024, 256>}, {transform_indices = @transform_2, window_bounds = array<i64: 128, 128>}, {transform_indices = @transform_3, window_bounds = array<i64: 128, 128>}, {pipeline_mode = #tpu.pipeline_mode<synchronous>, transform_indices = @transform_4, window_bounds = array<i64: 128, 128>}, {transform_indices = @transform_5, window_bounds = array<i64: 128, 512>}, {transform_indices = @transform_6, window_bounds = array<i64: 128, 256>}, {transform_indices = @transform_7, window_bounds = array<i64: 128, 256>}]} {
    %c0_i32 = arith.constant 0 : i32
    %0 = arith.cmpi eq, %arg1, %c0_i32 : i32
    %1 = arith.extui %0 : i1 to i32
    %c0_i32_0 = arith.constant 0 : i32
    %2 = arith.cmpi ne, %1, %c0_i32_0 : i32
    scf.if %2 {
      %cst_9 = arith.constant 0.000000e+00 : f32
      %13 = vector.broadcast %cst_9 : f32 to vector<128x1024xf32>
      %c0_10 = arith.constant 0 : index
      %c0_11 = arith.constant 0 : index
      %14 = vector.load %arg10[%c0_10, %c0_11] : memref<128x1024xf32, #tpu.memory_space<vmem>>, vector<128x1024xf32>
      tpu.vector_store %arg10[%c0_10, %c0_11], %13 {strides = array<i32>} : memref<128x1024xf32, #tpu.memory_space<vmem>>, vector<128x1024xf32>,
    } else {
    }
    %c0 = arith.constant 0 : index
    %c0_1 = arith.constant 0 : index
    %3 = vector.load %arg2[%c0, %c0_1] : memref<128x256xf32, #tpu.memory_space<vmem>>, vector<128x256xf32>
    %4 = arith.truncf %3 : vector<128x256xf32> to vector<128x256xbf16>
    %c0_2 = arith.constant 0 : index
    %c0_3 = arith.constant 0 : index
    %5 = vector.load %arg10[%c0_2, %c0_3] : memref<128x1024xf32, #tpu.memory_space<vmem>>, vector<128x1024xf32>
    %c0_4 = arith.constant 0 : index
    %c0_5 = arith.constant 0 : index
    %6 = vector.load %arg3[%c0_4, %c0_5] : memref<1024x256xbf16, #tpu.memory_space<vmem>>, vector<1024x256xbf16>
    %cst = arith.constant dense<0.000000e+00> : vector<128x1024xf32>
    %7 = tpu.matmul %4, %6, %cst {dimension_numbers = #tpu.dot_dimension_numbers<[1], [1], [0], [0], [0, 0, 1, 0], [], []>} : vector<128x256xbf16>, vector<1024x256xbf16>, vector<128x1024xf32> -> vector<128x1024xf32>
    %8 = arith.addf %5, %7 : vector<128x1024xf32>
    %c0_6 = arith.constant 0 : index
    %c0_7 = arith.constant 0 : index
    %9 = vector.load %arg10[%c0_6, %c0_7] : memref<128x1024xf32, #tpu.memory_space<vmem>>, vector<128x1024xf32>
    tpu.vector_store %arg10[%c0_6, %c0_7], %8 {strides = array<i32>} : memref<128x1024xf32, #tpu.memory_space<vmem>>, vector<128x1024xf32>,
    %c1_i32 = arith.constant 1 : i32
    %10 = arith.cmpi eq, %arg1, %c1_i32 : i32
    %11 = arith.extui %10 : i1 to i32
    %c0_i32_8 = arith.constant 0 : i32
    %12 = arith.cmpi ne, %11, %c0_i32_8 : i32
    scf.if %12 {
      %c0_9 = arith.constant 0 : index
      %c0_10 = arith.constant 0 : index
      %13 = vector.load %arg10[%c0_9, %c0_10] : memref<128x1024xf32, #tpu.memory_space<vmem>>, vector<128x1024xf32>
      %c0_11 = arith.constant 0 : index
      %c0_12 = arith.constant 0 : index
      %14 = vector.load %arg4[%c0_11, %c0_12] : memref<128x128xf32, #tpu.memory_space<vmem>>, vector<128x128xf32>
      %c0_13 = arith.constant 0 : index
      %c0_14 = arith.constant 0 : index
      %15 = vector.load %arg5[%c0_13, %c0_14] : memref<128x128xf32, #tpu.memory_space<vmem>>, vector<128x128xf32>
      %c0_15 = arith.constant 0 : index
      %c0_16 = arith.constant 0 : index
      %16 = vector.load %arg6[%c0_15, %c0_16] : memref<128x128xbf16, #tpu.memory_space<vmem>>, vector<128x128xbf16>
      %17 = vector.extract_strided_slice %13 {offsets = [0, 0], sizes = [128, 128], strides = [1, 1]} : vector<128x1024xf32> to vector<128x128xf32>
      %18 = arith.truncf %17 : vector<128x128xf32> to vector<128x128xbf16>
      %cst_17 = arith.constant dense<0.000000e+00> : vector<128x128xf32>
      %19 = tpu.matmul %18, %16, %cst_17 {dimension_numbers = #tpu.dot_dimension_numbers<[1], [0], [0], [1], [0, 0, 1, 1], [], []>} : vector<128x128xbf16>, vector<128x128xbf16>, vector<128x128xf32> -> vector<128x128xf32>
      %20 = arith.mulf %17, %14 : vector<128x128xf32>
      %21 = arith.mulf %19, %15 : vector<128x128xf32>
      %22 = arith.addf %20, %21 : vector<128x128xf32>
      %23 = arith.truncf %22 : vector<128x128xf32> to vector<128x128xbf16>
      %c0_18 = arith.constant 0 : index
      %c0_19 = arith.constant 0 : index
      %24 = vector.load %arg7[%c0_18, %c0_19] : memref<128x512xbf16, #tpu.memory_space<vmem>>, vector<128x128xbf16>
      tpu.vector_store %arg7[%c0_18, %c0_19], %23 {strides = array<i32>} : memref<128x512xbf16, #tpu.memory_space<vmem>>, vector<128x128xbf16>,
      %25 = vector.extract_strided_slice %13 {offsets = [0, 128], sizes = [128, 128], strides = [1, 1]} : vector<128x1024xf32> to vector<128x128xf32>
      %26 = arith.truncf %25 : vector<128x128xf32> to vector<128x128xbf16>
      %cst_20 = arith.constant dense<0.000000e+00> : vector<128x128xf32>
      %27 = tpu.matmul %26, %16, %cst_20 {dimension_numbers = #tpu.dot_dimension_numbers<[1], [0], [0], [1], [0, 0, 1, 1], [], []>} : vector<128x128xbf16>, vector<128x128xbf16>, vector<128x128xf32> -> vector<128x128xf32>
      %28 = arith.mulf %25, %14 : vector<128x128xf32>
      %29 = arith.mulf %27, %15 : vector<128x128xf32>
      %30 = arith.addf %28, %29 : vector<128x128xf32>
      %31 = arith.truncf %30 : vector<128x128xf32> to vector<128x128xbf16>
      %c0_21 = arith.constant 0 : index
      %c128 = arith.constant 128 : index
      %32 = vector.load %arg7[%c0_21, %c128] : memref<128x512xbf16, #tpu.memory_space<vmem>>, vector<128x128xbf16>
      tpu.vector_store %arg7[%c0_21, %c128], %31 {strides = array<i32>} : memref<128x512xbf16, #tpu.memory_space<vmem>>, vector<128x128xbf16>,
      %33 = vector.extract_strided_slice %13 {offsets = [0, 256], sizes = [128, 128], strides = [1, 1]} : vector<128x1024xf32> to vector<128x128xf32>
      %34 = arith.truncf %33 : vector<128x128xf32> to vector<128x128xbf16>
      %cst_22 = arith.constant dense<0.000000e+00> : vector<128x128xf32>
      %35 = tpu.matmul %34, %16, %cst_22 {dimension_numbers = #tpu.dot_dimension_numbers<[1], [0], [0], [1], [0, 0, 1, 1], [], []>} : vector<128x128xbf16>, vector<128x128xbf16>, vector<128x128xf32> -> vector<128x128xf32>
      %36 = arith.mulf %33, %14 : vector<128x128xf32>
      %37 = arith.mulf %35, %15 : vector<128x128xf32>
      %38 = arith.addf %36, %37 : vector<128x128xf32>
      %39 = arith.truncf %38 : vector<128x128xf32> to vector<128x128xbf16>
      %c0_23 = arith.constant 0 : index
      %c256 = arith.constant 256 : index
      %40 = vector.load %arg7[%c0_23, %c256] : memref<128x512xbf16, #tpu.memory_space<vmem>>, vector<128x128xbf16>
      tpu.vector_store %arg7[%c0_23, %c256], %39 {strides = array<i32>} : memref<128x512xbf16, #tpu.memory_space<vmem>>, vector<128x128xbf16>,
      %41 = vector.extract_strided_slice %13 {offsets = [0, 384], sizes = [128, 128], strides = [1, 1]} : vector<128x1024xf32> to vector<128x128xf32>
      %42 = arith.truncf %41 : vector<128x128xf32> to vector<128x128xbf16>
      %cst_24 = arith.constant dense<0.000000e+00> : vector<128x128xf32>
      %43 = tpu.matmul %42, %16, %cst_24 {dimension_numbers = #tpu.dot_dimension_numbers<[1], [0], [0], [1], [0, 0, 1, 1], [], []>} : vector<128x128xbf16>, vector<128x128xbf16>, vector<128x128xf32> -> vector<128x128xf32>
      %44 = arith.mulf %41, %14 : vector<128x128xf32>
      %45 = arith.mulf %43, %15 : vector<128x128xf32>
      %46 = arith.addf %44, %45 : vector<128x128xf32>
      %47 = arith.truncf %46 : vector<128x128xf32> to vector<128x128xbf16>
      %c0_25 = arith.constant 0 : index
      %c384 = arith.constant 384 : index
      %48 = vector.load %arg7[%c0_25, %c384] : memref<128x512xbf16, #tpu.memory_space<vmem>>, vector<128x128xbf16>
      tpu.vector_store %arg7[%c0_25, %c384], %47 {strides = array<i32>} : memref<128x512xbf16, #tpu.memory_space<vmem>>, vector<128x128xbf16>,
      %49 = vector.extract_strided_slice %13 {offsets = [0, 512], sizes = [128, 128], strides = [1, 1]} : vector<128x1024xf32> to vector<128x128xf32>
      %50 = arith.truncf %49 : vector<128x128xf32> to vector<128x128xbf16>
      %cst_26 = arith.constant dense<0.000000e+00> : vector<128x128xf32>
      %51 = tpu.matmul %50, %16, %cst_26 {dimension_numbers = #tpu.dot_dimension_numbers<[1], [0], [0], [1], [0, 0, 1, 1], [], []>} : vector<128x128xbf16>, vector<128x128xbf16>, vector<128x128xf32> -> vector<128x128xf32>
      %52 = arith.mulf %49, %14 : vector<128x128xf32>
      %53 = arith.mulf %51, %15 : vector<128x128xf32>
      %54 = arith.addf %52, %53 : vector<128x128xf32>
      %55 = arith.truncf %54 : vector<128x128xf32> to vector<128x128xbf16>
      %c0_27 = arith.constant 0 : index
      %c0_28 = arith.constant 0 : index
      %56 = vector.load %arg8[%c0_27, %c0_28] : memref<128x256xbf16, #tpu.memory_space<vmem>>, vector<128x128xbf16>
      tpu.vector_store %arg8[%c0_27, %c0_28], %55 {strides = array<i32>} : memref<128x256xbf16, #tpu.memory_space<vmem>>, vector<128x128xbf16>,
      %57 = vector.extract_strided_slice %13 {offsets = [0, 640], sizes = [128, 128], strides = [1, 1]} : vector<128x1024xf32> to vector<128x128xf32>
      %58 = arith.truncf %57 : vector<128x128xf32> to vector<128x128xbf16>
      %cst_29 = arith.constant dense<0.000000e+00> : vector<128x128xf32>
      %59 = tpu.matmul %58, %16, %cst_29 {dimension_numbers = #tpu.dot_dimension_numbers<[1], [0], [0], [1], [0, 0, 1, 1], [], []>} : vector<128x128xbf16>, vector<128x128xbf16>, vector<128x128xf32> -> vector<128x128xf32>
      %60 = arith.mulf %57, %14 : vector<128x128xf32>
      %61 = arith.mulf %59, %15 : vector<128x128xf32>
      %62 = arith.addf %60, %61 : vector<128x128xf32>
      %63 = arith.truncf %62 : vector<128x128xf32> to vector<128x128xbf16>
      %c0_30 = arith.constant 0 : index
      %c128_31 = arith.constant 128 : index
      %64 = vector.load %arg8[%c0_30, %c128_31] : memref<128x256xbf16, #tpu.memory_space<vmem>>, vector<128x128xbf16>
      tpu.vector_store %arg8[%c0_30, %c128_31], %63 {strides = array<i32>} : memref<128x256xbf16, #tpu.memory_space<vmem>>, vector<128x128xbf16>,
      %65 = vector.extract_strided_slice %13 {offsets = [0, 768], sizes = [128, 256], strides = [1, 1]} : vector<128x1024xf32> to vector<128x256xf32>
      %66 = arith.truncf %65 : vector<128x256xf32> to vector<128x256xbf16>
      %c0_32 = arith.constant 0 : index
      %c0_33 = arith.constant 0 : index
      %67 = vector.load %arg9[%c0_32, %c0_33] : memref<128x256xbf16, #tpu.memory_space<vmem>>, vector<128x256xbf16>
      tpu.vector_store %arg9[%c0_32, %c0_33], %66 {strides = array<i32>} : memref<128x256xbf16, #tpu.memory_space<vmem>>, vector<128x256xbf16>,
    } else {
    }
    return
  }
  func.func @transform_0(%arg0: i32, %arg1: i32) -> (i32, i32) {
    %c0_i32 = arith.constant 0 : i32
    return %arg0, %arg1 : i32, i32
  }
  func.func @transform_1(%arg0: i32, %arg1: i32) -> (i32, i32) {
    %c0_i32 = arith.constant 0 : i32
    %c0_i32_0 = arith.constant 0 : i32
    return %c0_i32, %arg1 : i32, i32
  }
  func.func @transform_2(%arg0: i32, %arg1: i32) -> (i32, i32) {
    %c0_i32 = arith.constant 0 : i32
    %c0_i32_0 = arith.constant 0 : i32
    return %arg0, %c0_i32 : i32, i32
  }
  func.func @transform_3(%arg0: i32, %arg1: i32) -> (i32, i32) {
    %c0_i32 = arith.constant 0 : i32
    %c0_i32_0 = arith.constant 0 : i32
    return %arg0, %c0_i32 : i32, i32
  }
  func.func @transform_4(%arg0: i32, %arg1: i32) -> (i32, i32) {
    %c0_i32 = arith.constant 0 : i32
    %c0_i32_0 = arith.constant 0 : i32
    %c0_i32_1 = arith.constant 0 : i32
    return %c0_i32, %c0_i32_0 : i32, i32
  }
  func.func @transform_5(%arg0: i32, %arg1: i32) -> (i32, i32) {
    %c0_i32 = arith.constant 0 : i32
    %c0_i32_0 = arith.constant 0 : i32
    return %arg0, %c0_i32 : i32, i32
  }
  func.func @transform_6(%arg0: i32, %arg1: i32) -> (i32, i32) {
    %c0_i32 = arith.constant 0 : i32
    %c0_i32_0 = arith.constant 0 : i32
    return %arg0, %c0_i32 : i32, i32
  }
  func.func @transform_7(%arg0: i32, %arg1: i32) -> (i32, i32) {
    %c0_i32 = arith.constant 0 : i32
    %c0_i32_0 = arith.constant 0 : i32
    return %arg0, %c0_i32 : i32, i32
  }
}

</mosaic_0001>

<bundles_post_ra>
// kernel: tpu_custom_call.1
= control target key start
LH: loop header
LB: loop body
LE: loop exit
PB: predicated region body
PF: predicated region fallthrough
CT: control target
= control target key end

     0   :  { %s6850_s0 = inlined_call_operand.hbm [shape: f32[128,512], index: 0, kind: input, shape index: {}]   ;;  %s6851_s1 = inlined_call_operand.hbm [shape: bf16[1024,512], index: 1, kind: input, shape index: {}]   ;;  %s6852_s2 = inlined_call_operand.hbm [shape: f32[128,128], index: 2, kind: input, shape index: {}]   ;;  %s6853_s3 = inlined_call_operand.hbm [shape: f32[128,128], index: 3, kind: input, shape index: {}]   ;;  %s6854_s4 = inlined_call_operand.hbm [shape: bf16[128,128], index: 4, kind: input, shape index: {}]   ;;  %s6855_s5 = inlined_call_operand.hbm [shape: bf16[128,512], index: 5, kind: output, shape index: {0}]   ;;  %s6856_s6 = inlined_call_operand.hbm [shape: bf16[128,256], index: 6, kind: output, shape index: {1}]   ;;  %s6857_s7 = inlined_call_operand.hbm [shape: bf16[128,256], index: 7, kind: output, shape index: {2}]  }
   0x1   :  { %6904 = sst [smem:[#allocation61_spill]] %s6850_s0 }
   0x2   :  { %6905 = sst [smem:[#allocation62_spill]] %s6852_s2 }
   0x3   :  { %6906 = sst [smem:[#allocation63_spill]] %s6853_s3 }
   0x4   :  { %6907 = sst [smem:[#allocation64_spill]] %s6854_s4 }
   0x5   :  { %6908 = sst [smem:[#allocation65_spill]] %s6857_s7 }
   0x6   :  { %13 = vsyncpa [#allocation4], 0 }
   0x7   :  { %15 = vsyncpa [#allocation4 + $0x1], 0 }
   0x8   :  { %16 = vsyncpa [#allocation7], 0 }
   0x9   :  { %18 = vsyncpa [#allocation7 + $0x1], 0 }
   0xa   :  { %19 = vsyncpa [#allocation10], 0 }
   0xb   :  { %20 = vsyncpa [#allocation5], 0 }
   0xc   :  { %21 = vsyncpa [#allocation14], 0  ;;  %s5531_s24 = smov 0   ;;  %s5533_s25 = smov 0  }
   0xd   :  { %s5535_s26 = smov 0   ;;  %s5537_s27 = smov 0  }
   0xe   :  { %s5539_s28 = smov 0   ;;  %s5541_s29 = smov 0  }
   0xf LB: > { %s5560_s30 = sadd.s32 4294967295, %s5469_s29   ;;  %p55_p0 = scmp.ne.s32.totalorder %s5457_s26, %s5453_s25  ;;  %s5469_s29 = sphi %s5541_s29, %s27_s29   ;;  %s5465_s28 = sphi %s5539_s28, %s7012_s28   ;;  %s5461_s27 = sphi %s5537_s27, %s7011_s27   ;;  %s5457_s26 = sphi %s5535_s26, %s7010_s26   ;;  %s5453_s25 = sphi %s5533_s25, %s7009_s25   ;;  %s5449_s24 = sphi %s5531_s24, %s7008_s24  }
  0x10   : > { %p56_p1 = scmp.eq.s32.totalorder %s5469_s29, 0  ;;  %p61_p2 = scmp.ne.s32.totalorder %s5453_s25, %s5449_s24 }
  0x11   : > { %p6858_p3 = scmp.eq.s32.totalorder %s5560_s30, 0  ;;  %p4135_p5 = scmp.ge.s32.totalorder %s5469_s29, 1 }
  0x12   : > { %p57_p4 = por %p56_p1, %p55_p0  ;;  %p249_p7 = scmp.lt.s32.totalorder %s5469_s29, 3 }
  0x13   : > { %p5571_p6 = por %p6858_p3, %p61_p2  ;;  %s5471_s11 = smov [#allocation8]  }
  0x14   : > { %p5576_p8 = pnand %p4135_p5, %p249_p7  ;;  %s264_s12 = sshll.u32 %s5471_s11, 4  ;;  %s5580_s12 = int_to_ptr.vmem [resolvable:$true] %s264_s12 }
  0x15   : > { %s6909_s9 = scalar_select %p5571_p6, 1, 0 }
  0x16   : > { %s6910_s10 = scalar_select %p5576_p8, 1, 0 }
  0x17   : > { %p4840_p9 = pneg %p5576_p8  ;;  %p4860_p10 = scmp.lt.s32.totalorder %s5469_s29, 2 }
  0x18   : > { %s5472_s15 = smov [#allocation9]   ;;  %s6913_s2 = sld [smem:[#allocation62_spill]] }
  0x19   : > { %p5587_p11 = pnand %p4840_p9, %p6858_p3  ;;  %p5591_p12 = pnand %p4860_p10, %p57_p4 }
  0x1a   : > { %s280_s16 = sshll.u32 %s5472_s15, 4  ;;  %s5595_s16 = int_to_ptr.vmem [resolvable:$true] %s280_s16 }
  0x1b   : > { %s6912_s14 = scalar_select %p5591_p12, 1, 0 }
  0x1c   : > { %p5605_p0 = pneg %p5587_p11 }
  0x1e   : > { %s5177_s19 = scalar_lea.hbm %s6913_s2, 2048 }
  0x1f   : > { %p5178_p13 = scmp.ne.s32.totalorder %s6913_s2, %s5177_s19  ;;  %p5184_p4 = scmp.lt.u32.totalorder %s5177_s19, %s6913_s2 }
  0x21   : > { %p5180_p1 = pnand %p5605_p0, %p5178_p13 }
  0x23   : > { %p5181_p2 = pneg %p5180_p1 }
  0x25   : > { %p5186_p5 = pnand %p5184_p4, %p5181_p2 }
  0x27   : > { %5189 = shalt.err (!%p5186_p5)
}
  0x28   : > { %s5190_s11 = scalar_lea.vmem %s5580_s12, 2048  ;;  %p5198_p3 = scmp.lt.s32.totalorder %s5580_s12, %s5580_s12 }
  0x29   : > { %p5191_p7 = scmp.ne.s32.totalorder %s5580_s12, %s5190_s11  ;;  %p5199_p6 = scmp.lt.s32.totalorder %s5190_s11, %s5190_s11 }
  0x2b   : > { %p5193_p9 = pnand %p5191_p7, %p5605_p0  ;;  %p5200_p13 = por %p5199_p6, %p5198_p3 }
  0x2d   : > { %p5194_p10 = pneg %p5193_p9 }
  0x2f   : > { %p5201_p1 = pnand %p5200_p13, %p5194_p10 }
  0x31   : > { %5204 = shalt.err (!%p5201_p1)
}
  0x32   : > { %s6863_s15 = smov 128   ;;  %s6864_s17 = smov 8  }
  0x33   : > { %4843 = dma.hbm_to_vmem [thread:$0]  (!%p5587_p11), %s6913_s2, 2048, %s5580_s12, [#allocation7], %s6863_s15, %s6863_s15, %s6864_s17  }
  0x34   : > { %s6915_s3 = sld [smem:[#allocation63_spill]] }
  0x3a   : > { %s5205_s23 = scalar_lea.hbm %s6915_s3, 2048 }
  0x3b   : > { %p5206_p3 = scmp.ne.s32.totalorder %s6915_s3, %s5205_s23  ;;  %p5212_p4 = scmp.lt.u32.totalorder %s5205_s23, %s6915_s3 }
  0x3d   : > { %p5208_p6 = pnand %p5206_p3, %p5605_p0 }
  0x3f   : > { %p5209_p2 = pneg %p5208_p6 }
  0x41   : > { %p5214_p5 = pnand %p5212_p4, %p5209_p2 }
  0x43   : > { %5217 = shalt.err (!%p5214_p5)
}
  0x44   : > { %s5218_s12 = scalar_lea.vmem %s5595_s16, 2048  ;;  %p5226_p13 = scmp.lt.s32.totalorder %s5595_s16, %s5595_s16 }
  0x45   : > { %p5219_p7 = scmp.ne.s32.totalorder %s5595_s16, %s5218_s12  ;;  %p5227_p1 = scmp.lt.s32.totalorder %s5218_s12, %s5218_s12 }
  0x47   : > { %p5221_p9 = pnand %p5219_p7, %p5605_p0  ;;  %p5228_p3 = por %p5227_p1, %p5226_p13 }
  0x49   : > { %p5222_p10 = pneg %p5221_p9 }
  0x4b   : > { %p5229_p6 = pnand %p5228_p3, %p5222_p10 }
  0x4d   : > { %5232 = shalt.err (!%p5229_p6)
}
  0x4e   : > { %4846 = dma.hbm_to_vmem [thread:$0]  (!%p5587_p11), %s6915_s3, 2048, %s5595_s16, [#allocation10], %s6863_s15, %s6863_s15, %s6864_s17  }
  0x4f   : > { %s5475_s18 = smov [#allocation11]   ;;  %s6916_s4 = sld [smem:[#allocation64_spill]] }
  0x50   : > { %s293_s19 = sshll.u32 %s5475_s18, 4  ;;  %s294_s19 = int_to_ptr.vmem [resolvable:$true] %s293_s19 }
  0x55   : > { %s5233_s23 = scalar_lea.hbm %s6916_s4, 1024 }
  0x56   : > { %p5234_p2 = scmp.ne.s32.totalorder %s6916_s4, %s5233_s23  ;;  %p5240_p7 = scmp.lt.u32.totalorder %s5233_s23, %s6916_s4 }
  0x58   : > { %p5236_p4 = pnand %p5234_p2, %p5605_p0 }
  0x5a   : > { %p5237_p5 = pneg %p5236_p4 }
  0x5c   : > { %p5242_p9 = pnand %p5240_p7, %p5237_p5 }
  0x5e   : > { %5245 = shalt.err (!%p5242_p9)
}
  0x5f   : > { %s5246_s16 = scalar_lea.vmem %s294_s19, 1024  ;;  %p5254_p3 = scmp.lt.s32.totalorder %s294_s19, %s294_s19 }
  0x60   : > { %p5247_p10 = scmp.ne.s32.totalorder %s294_s19, %s5246_s16  ;;  %p5255_p6 = scmp.lt.s32.totalorder %s5246_s16, %s5246_s16 }
  0x62   : > { %p5249_p13 = pnand %p5247_p10, %p5605_p0  ;;  %p5256_p8 = por %p5255_p6, %p5254_p3 }
  0x64   : > { %p5250_p1 = pneg %p5249_p13 }
  0x66   : > { %p5257_p12 = pnand %p5256_p8, %p5250_p1 }
  0x68   : > { %5260 = shalt.err (!%p5257_p12)
}
  0x69   : > { %s5476_s7 = smov 64   ;;  %s5477_s2 = smov 4  }
  0x6a   : > { %4849 = dma.hbm_to_vmem [thread:$0]  (!%p5587_p11), %s6916_s4, 1024, %s294_s19, [#allocation10], %s5476_s7, %s5476_s7, %s5477_s2  }
  0x6b   : > { %s5674_s18 = sand.u32 1, %s5457_s26   ;;  %s36_s20 = sadd.s32 1, %s5465_s28 }
  0x6c   : > { %s4140_s21 = sshll.u32 %s5674_s18, 8  ;;  %p37_p8 = scmp.ge.s32.totalorder %s36_s20, 2 }
  0x6d   : > { %s4410_s23 = sshll.u32 %s5465_s28, 8  ;;  %s311_s24 = scalar_lea.vmem [#allocation3], %s4140_s21 }
  0x6e   : > { %s321_s11 = sshll.u32 %s311_s24, 4  ;;  %s7014_s20 = smov (%p37_p8, %s36_s20), 0  ;;  %s5686_s11 = int_to_ptr.vmem [resolvable:$true] %s321_s11 }
  0x6f   : > { %s6917_s0 = sld [smem:[#allocation61_spill]]  ;;  %s44_s19 = ssub.s32 %s5465_s28, %s7014_s20 }
  0x70   : > { %p46_p11 = scmp.eq.s32.totalorder %s44_s19, 0  ;;  %s6918_s2 = sadd.s32 1, %s5457_s26 }
  0x71   : > { %s308_s22 = scalar_lea.sflag [#allocation4], %s5674_s18  ;;  %p6919_p0 = scmp.ne.s32.totalorder %s6912_s14, 0 }
  0x72   : > { %s5694_s8 = scalar_select %p46_p11, %s5457_s26, %s6918_s2  }
  0x73   : > { %p5263_p2 = pneg %p6919_p0 }
  0x75   : > { %s5684_s16 = scalar_lea.hbm %s6917_s0, %s4410_s23  ;;  %s5266_s12 = scalar_lea.hbm %s6917_s0, 8192 }
  0x76   : > { %s5261_s21 = scalar_lea.hbm %s5684_s16, 4096  ;;  %p5267_p7 = scmp.lt.u32.totalorder %s5684_s16, %s6917_s0 }
  0x77   : > { %p5262_p12 = scmp.ne.s32.totalorder %s5684_s16, %s5261_s21  ;;  %p5268_p9 = scmp.lt.u32.totalorder %s5266_s12, %s5261_s21 }
  0x78   : > { %p5270_p13 = scmp.lt.u32.totalorder %s5261_s21, %s5684_s16 }
  0x79   : > { %p5264_p4 = pnand %p5263_p2, %p5262_p12  ;;  %p5269_p10 = por %p5268_p9, %p5267_p7 }
  0x7b   : > { %p5265_p5 = pneg %p5264_p4  ;;  %p5271_p1 = por %p5270_p13, %p5269_p10 }
  0x7d   : > { %p5272_p3 = pnand %p5271_p1, %p5265_p5 }
  0x7f   : > { %5275 = shalt.err (!%p5272_p3)
}
  0x80   : > { %s5276_s19 = scalar_lea.vmem %s5686_s11, 4096  ;;  %s5478_s2 = smov [#allocation3]  }
  0x81   : > { %p5277_p6 = scmp.ne.s32.totalorder %s5686_s11, %s5276_s19  ;;  %s5281_s23 = sshll.u32 %s5478_s2, 4  ;;  %s5282_s23 = int_to_ptr.vmem [resolvable:$false] %s5281_s23 }
  0x82   : > { %s5283_s15 = scalar_lea.vmem %s5282_s23, 8192  ;;  %p5284_p12 = scmp.lt.s32.totalorder %s5686_s11, %s5282_s23 }
  0x83   : > { %p5279_p8 = pnand %p5277_p6, %p5263_p2  ;;  %p5285_p4 = scmp.lt.s32.totalorder %s5283_s15, %s5276_s19 }
  0x85   : > { %p5280_p11 = pneg %p5279_p8  ;;  %p5286_p7 = por %p5285_p4, %p5284_p12 }
  0x87   : > { %p5287_p9 = pnand %p5286_p7, %p5280_p11 }
  0x89   : > { %5290 = shalt.err (!%p5287_p9)
}
  0x8a   : > { %s5479_s21 = smov 512   ;;  %s5480_s24 = smov 256  }
  0x8b   : > { %s5481_s12 = smov 16   ;;  %s4143_s13 = sshll.u32 %s5674_s18, 10 }
  0x8c   : > { %4853 = dma.hbm_to_vmem [thread:$0]  (!%p6919_p0), %s5684_s16, 4096, %s5686_s11, %s308_s22, %s5479_s21, %s5480_s24, %s5481_s12  }
  0x8d   : > { %s4411_s19 = sshll.u32 %s5465_s28, 7  ;;  %s335_s17 = scalar_lea.vmem [#allocation6], %s4143_s13 }
  0x8e   : > { %s5730_s15 = scalar_lea.hbm %s6851_s1, %s4411_s19  ;;  %s342_s7 = sshll.u32 %s335_s17, 4  ;;  %s5732_s7 = int_to_ptr.vmem [resolvable:$true] %s342_s7 }
  0x8f   : > { %s6920_s0 = sand.u32 1, %s5469_s29   ;;  %s5291_s4 = scalar_lea.hbm %s5730_s15, 16384 }
  0x90   : > { %s5736_s3 = scalar_lea.sflag [#allocation7], %s6920_s0  ;;  %p5292_p5 = scmp.ne.s32.totalorder %s5730_s15, %s5291_s4 }
  0x91   : > { %s5296_s16 = scalar_lea.hbm %s6851_s1, 32768  ;;  %p5297_p1 = scmp.lt.u32.totalorder %s5730_s15, %s6851_s1 }
  0x92   : > { %p5294_p10 = pnand %p5292_p5, %p5263_p2  ;;  %p5298_p3 = scmp.lt.u32.totalorder %s5296_s16, %s5291_s4 }
  0x93   : > { %p5300_p8 = scmp.lt.u32.totalorder %s5291_s4, %s5730_s15 }
  0x94   : > { %p5295_p13 = pneg %p5294_p10  ;;  %p5299_p6 = por %p5298_p3, %p5297_p1 }
  0x96   : > { %p5301_p11 = por %p5300_p8, %p5299_p6 }
  0x98   : > { %p5302_p12 = pnand %p5301_p11, %p5295_p13 }
  0x9a   : > { %5305 = shalt.err (!%p5302_p12)
}
  0x9b   : > { %s5306_s0 = scalar_lea.vmem %s5732_s7, 16384  ;;  %s5482_s17 = smov [#allocation6]  }
  0x9c   : > { %p5307_p4 = scmp.ne.s32.totalorder %s5732_s7, %s5306_s0  ;;  %s5311_s12 = sshll.u32 %s5482_s17, 4  ;;  %s5312_s12 = int_to_ptr.vmem [resolvable:$false] %s5311_s12 }
  0x9d   : > { %s5313_s13 = scalar_lea.vmem %s5312_s12, 32768  ;;  %p5314_p5 = scmp.lt.s32.totalorder %s5732_s7, %s5312_s12 }
  0x9e   : > { %p5309_p7 = pnand %p5307_p4, %p5263_p2  ;;  %p5315_p10 = scmp.lt.s32.totalorder %s5313_s13, %s5306_s0 }
  0xa0   : > { %p5310_p9 = pneg %p5309_p7  ;;  %p5316_p1 = por %p5315_p10, %p5314_p5 }
  0xa2   : > { %p5317_p3 = pnand %p5316_p1, %p5310_p9 }
  0xa4   : > { %5320 = shalt.err (!%p5317_p3)
}
  0xa5   : > { %s6921_s4 = smov 8   ;;  %s6922_s19 = smov 128  }
  0xa6   : > { %4856 = dma.hbm_to_vmem [thread:$0]  (!%p6919_p0), %s5730_s15, 16384, %s5732_s7, %s5736_s3, %s5480_s24, %s6922_s19, %s6921_s4  }
  0xa7   : > { %p6923_p2 = scmp.ne.s32.totalorder %s6910_s10, 0 }
  0xa8   : > { %s356_s2 = sand.u32 (!%p6923_p2), 1, %s5453_s25   ;;  %p6924_p13 = scmp.ne.s32.totalorder (!%p6923_p2), %s6909_s9, 0 }
  0xa9   : > { %354 = sbr.rel (%p6923_p2) target bundleno = 1218 (0x4c2), region = 40  ;;  %s4147_s23 = sshll.u32 (!%p6923_p2), %s356_s2, 8 }
  0xaa   : > { %s357_s18 = scalar_lea.sflag (!%p6923_p2), [#allocation4], %s356_s2  ;;  %s5768_s11 = scalar_lea.vmem (!%p6923_p2), [#allocation3], %s4147_s23 }
  0xb0   : > { %5424 = dma.done.wait (%p6924_p13), %s357_s18, 4096  }
  0xb1   : > { %5426 = vsyncadd (%p6924_p13), %s357_s18, 4294963200  ;;  %s365_s14 = sand.u32 1, %s5560_s30   ;;  %s4148_s16 = sshll.u32 %s356_s2, 10 }
  0xb2   : > { %s366_s3 = scalar_lea.sflag [#allocation7], %s365_s14  ;;  %s5775_s7 = scalar_lea.vmem [#allocation6], %s4148_s16 }
  0xb3   : > { %5428 = dma.done.wait (%p6924_p13), %s366_s3, 16384  }
  0xb4   : > { %5430 = vsyncadd (%p6924_p13), %s366_s3, 4294950912  ;;  %p6925_p0 = scmp.eq.s32.totalorder %s5560_s30, 0 }
  0xb6   : > { %5432 = dma.done.wait (%p6925_p0), [#allocation7], 2048   ;;  %p6926_p6 = pmov %p6925_p0 }
  0xb7   : > { %p6927_p8 = pmov %p6925_p0 }
  0xb8   : > { %5434 = vsyncadd (%p6926_p6), [#allocation7], 4294965248 }
  0xb9   : > { %5436 = dma.done.wait (%p6927_p8), [#allocation10], 3072   ;;  %p6928_p11 = pmov %p6925_p0 }
  0xba   : > { %p4152_p12 = scmp.ne.s32.totalorder %s5461_s27, 0 }
  0xbb   : > { %5438 = vsyncadd (%p6928_p11), [#allocation10], 4294964224  ;;  %v5483_v0 = vmov (!%p4152_p12), 0.0  }
  0xbc   : > { %424 = sbr.rel (%p4152_p12) target bundleno = 252 (0xfc), region = 64  ;;  %425 = vst [vmem:[#allocation2] sm:$0xff] (!%p4152_p12), %v5483_v0  ;;  %426 = vst [vmem:[#allocation2 + $0x8] sm:$0xff] (!%p4152_p12), %v5483_v0 }
  0xbd   : > { %427 = vst [vmem:[#allocation2 + $0x10] sm:$0xff] (!%p4152_p12), %v5483_v0  ;;  %428 = vst [vmem:[#allocation2 + $0x18] sm:$0xff] (!%p4152_p12), %v5483_v0 }
  0xbe   : > { %429 = vst [vmem:[#allocation2 + $0x20] sm:$0xff] (!%p4152_p12), %v5483_v0  ;;  %430 = vst [vmem:[#allocation2 + $0x28] sm:$0xff] (!%p4152_p12), %v5483_v0 }
  0xbf   : > { %431 = vst [vmem:[#allocation2 + $0x30] sm:$0xff] (!%p4152_p12), %v5483_v0  ;;  %432 = vst [vmem:[#allocation2 + $0x38] sm:$0xff] (!%p4152_p12), %v5483_v0 }
  0xc0   : > { %433 = vst [vmem:[#allocation2 + $0x40] sm:$0xff] (!%p4152_p12), %v5483_v0  ;;  %434 = vst [vmem:[#allocation2 + $0x48] sm:$0xff] (!%p4152_p12), %v5483_v0 }
  0xc1   : > { %435 = vst [vmem:[#allocation2 + $0x50] sm:$0xff] (!%p4152_p12), %v5483_v0  ;;  %436 = vst [vmem:[#allocation2 + $0x58] sm:$0xff] (!%p4152_p12), %v5483_v0 }
  0xc2   : > { %437 = vst [vmem:[#allocation2 + $0x60] sm:$0xff] (!%p4152_p12), %v5483_v0  ;;  %438 = vst [vmem:[#allocation2 + $0x68] sm:$0xff] (!%p4152_p12), %v5483_v0 }
  0xc3   : > { %439 = vst [vmem:[#allocation2 + $0x70] sm:$0xff] %v5483_v0  ;;  %440 = vst [vmem:[#allocation2 + $0x78] sm:$0xff] %v5483_v0 }
  0xc4   : > { %441 = vst [vmem:[#allocation2 + $0x80] sm:$0xff] %v5483_v0  ;;  %442 = vst [vmem:[#allocation2 + $0x88] sm:$0xff] %v5483_v0 }
  0xc5   : > { %443 = vst [vmem:[#allocation2 + $0x90] sm:$0xff] %v5483_v0  ;;  %444 = vst [vmem:[#allocation2 + $0x98] sm:$0xff] %v5483_v0 }
  0xc6   : > { %445 = vst [vmem:[#allocation2 + $0xa0] sm:$0xff] %v5483_v0  ;;  %446 = vst [vmem:[#allocation2 + $0xa8] sm:$0xff] %v5483_v0 }
  0xc7   : > { %447 = vst [vmem:[#allocation2 + $0xb0] sm:$0xff] %v5483_v0  ;;  %448 = vst [vmem:[#allocation2 + $0xb8] sm:$0xff] %v5483_v0 }
  0xc8   : > { %449 = vst [vmem:[#allocation2 + $0xc0] sm:$0xff] %v5483_v0  ;;  %450 = vst [vmem:[#allocation2 + $0xc8] sm:$0xff] %v5483_v0 }
  0xc9   : > { %451 = vst [vmem:[#allocation2 + $0xd0] sm:$0xff] %v5483_v0  ;;  %452 = vst [vmem:[#allocation2 + $0xd8] sm:$0xff] %v5483_v0 }
  0xca   : > { %453 = vst [vmem:[#allocation2 + $0xe0] sm:$0xff] %v5483_v0  ;;  %454 = vst [vmem:[#allocation2 + $0xe8] sm:$0xff] %v5483_v0 }
  0xcb   : > { %455 = vst [vmem:[#allocation2 + $0xf0] sm:$0xff] %v5483_v0  ;;  %456 = vst [vmem:[#allocation2 + $0xf8] sm:$0xff] %v5483_v0 }
  0xcc   : > { %457 = vst [vmem:[#allocation2 + $0x100] sm:$0xff] %v5483_v0  ;;  %458 = vst [vmem:[#allocation2 + $0x108] sm:$0xff] %v5483_v0 }
  0xcd   : > { %459 = vst [vmem:[#allocation2 + $0x110] sm:$0xff] %v5483_v0  ;;  %460 = vst [vmem:[#allocation2 + $0x118] sm:$0xff] %v5483_v0 }
  0xce   : > { %461 = vst [vmem:[#allocation2 + $0x120] sm:$0xff] %v5483_v0  ;;  %462 = vst [vmem:[#allocation2 + $0x128] sm:$0xff] %v5483_v0 }
  0xcf   : > { %463 = vst [vmem:[#allocation2 + $0x130] sm:$0xff] %v5483_v0  ;;  %464 = vst [vmem:[#allocation2 + $0x138] sm:$0xff] %v5483_v0 }
  0xd0   : > { %465 = vst [vmem:[#allocation2 + $0x140] sm:$0xff] %v5483_v0  ;;  %466 = vst [vmem:[#allocation2 + $0x148] sm:$0xff] %v5483_v0 }
  0xd1   : > { %467 = vst [vmem:[#allocation2 + $0x150] sm:$0xff] %v5483_v0  ;;  %468 = vst [vmem:[#allocation2 + $0x158] sm:$0xff] %v5483_v0 }
  0xd2   : > { %469 = vst [vmem:[#allocation2 + $0x160] sm:$0xff] %v5483_v0  ;;  %470 = vst [vmem:[#allocation2 + $0x168] sm:$0xff] %v5483_v0 }
  0xd3   : > { %471 = vst [vmem:[#allocation2 + $0x170] sm:$0xff] %v5483_v0  ;;  %472 = vst [vmem:[#allocation2 + $0x178] sm:$0xff] %v5483_v0 }
  0xd4   : > { %473 = vst [vmem:[#allocation2 + $0x180] sm:$0xff] %v5483_v0  ;;  %474 = vst [vmem:[#allocation2 + $0x188] sm:$0xff] %v5483_v0 }
  0xd5   : > { %475 = vst [vmem:[#allocation2 + $0x190] sm:$0xff] %v5483_v0  ;;  %476 = vst [vmem:[#allocation2 + $0x198] sm:$0xff] %v5483_v0 }
  0xd6   : > { %477 = vst [vmem:[#allocation2 + $0x1a0] sm:$0xff] %v5483_v0  ;;  %478 = vst [vmem:[#allocation2 + $0x1a8] sm:$0xff] %v5483_v0 }
  0xd7   : > { %479 = vst [vmem:[#allocation2 + $0x1b0] sm:$0xff] %v5483_v0  ;;  %480 = vst [vmem:[#allocation2 + $0x1b8] sm:$0xff] %v5483_v0 }
  0xd8   : > { %481 = vst [vmem:[#allocation2 + $0x1c0] sm:$0xff] %v5483_v0  ;;  %482 = vst [vmem:[#allocation2 + $0x1c8] sm:$0xff] %v5483_v0 }
  0xd9   : > { %483 = vst [vmem:[#allocation2 + $0x1d0] sm:$0xff] %v5483_v0  ;;  %484 = vst [vmem:[#allocation2 + $0x1d8] sm:$0xff] %v5483_v0 }
  0xda   : > { %485 = vst [vmem:[#allocation2 + $0x1e0] sm:$0xff] %v5483_v0  ;;  %486 = vst [vmem:[#allocation2 + $0x1e8] sm:$0xff] %v5483_v0 }
  0xdb   : > { %487 = vst [vmem:[#allocation2 + $0x1f0] sm:$0xff] %v5483_v0  ;;  %488 = vst [vmem:[#allocation2 + $0x1f8] sm:$0xff] %v5483_v0 }
  0xdc   : > { %489 = vst [vmem:[#allocation2 + $0x200] sm:$0xff] %v5483_v0  ;;  %490 = vst [vmem:[#allocation2 + $0x208] sm:$0xff] %v5483_v0 }
  0xdd   : > { %491 = vst [vmem:[#allocation2 + $0x210] sm:$0xff] %v5483_v0  ;;  %492 = vst [vmem:[#allocation2 + $0x218] sm:$0xff] %v5483_v0 }
  0xde   : > { %493 = vst [vmem:[#allocation2 + $0x220] sm:$0xff] %v5483_v0  ;;  %494 = vst [vmem:[#allocation2 + $0x228] sm:$0xff] %v5483_v0 }
  0xdf   : > { %495 = vst [vmem:[#allocation2 + $0x230] sm:$0xff] %v5483_v0  ;;  %496 = vst [vmem:[#allocation2 + $0x238] sm:$0xff] %v5483_v0 }
  0xe0   : > { %497 = vst [vmem:[#allocation2 + $0x240] sm:$0xff] %v5483_v0  ;;  %498 = vst [vmem:[#allocation2 + $0x248] sm:$0xff] %v5483_v0 }
  0xe1   : > { %499 = vst [vmem:[#allocation2 + $0x250] sm:$0xff] %v5483_v0  ;;  %500 = vst [vmem:[#allocation2 + $0x258] sm:$0xff] %v5483_v0 }
  0xe2   : > { %501 = vst [vmem:[#allocation2 + $0x260] sm:$0xff] %v5483_v0  ;;  %502 = vst [vmem:[#allocation2 + $0x268] sm:$0xff] %v5483_v0 }
  0xe3   : > { %503 = vst [vmem:[#allocation2 + $0x270] sm:$0xff] %v5483_v0  ;;  %504 = vst [vmem:[#allocation2 + $0x278] sm:$0xff] %v5483_v0 }
  0xe4   : > { %505 = vst [vmem:[#allocation2 + $0x280] sm:$0xff] %v5483_v0  ;;  %506 = vst [vmem:[#allocation2 + $0x288] sm:$0xff] %v5483_v0 }
  0xe5   : > { %507 = vst [vmem:[#allocation2 + $0x290] sm:$0xff] %v5483_v0  ;;  %508 = vst [vmem:[#allocation2 + $0x298] sm:$0xff] %v5483_v0 }
  0xe6   : > { %509 = vst [vmem:[#allocation2 + $0x2a0] sm:$0xff] %v5483_v0  ;;  %510 = vst [vmem:[#allocation2 + $0x2a8] sm:$0xff] %v5483_v0 }
  0xe7   : > { %511 = vst [vmem:[#allocation2 + $0x2b0] sm:$0xff] %v5483_v0  ;;  %512 = vst [vmem:[#allocation2 + $0x2b8] sm:$0xff] %v5483_v0 }
  0xe8   : > { %513 = vst [vmem:[#allocation2 + $0x2c0] sm:$0xff] %v5483_v0  ;;  %514 = vst [vmem:[#allocation2 + $0x2c8] sm:$0xff] %v5483_v0 }
  0xe9   : > { %515 = vst [vmem:[#allocation2 + $0x2d0] sm:$0xff] %v5483_v0  ;;  %516 = vst [vmem:[#allocation2 + $0x2d8] sm:$0xff] %v5483_v0 }
  0xea   : > { %517 = vst [vmem:[#allocation2 + $0x2e0] sm:$0xff] %v5483_v0  ;;  %518 = vst [vmem:[#allocation2 + $0x2e8] sm:$0xff] %v5483_v0 }
  0xeb   : > { %519 = vst [vmem:[#allocation2 + $0x2f0] sm:$0xff] %v5483_v0  ;;  %520 = vst [vmem:[#allocation2 + $0x2f8] sm:$0xff] %v5483_v0 }
  0xec   : > { %521 = vst [vmem:[#allocation2 + $0x300] sm:$0xff] %v5483_v0  ;;  %522 = vst [vmem:[#allocation2 + $0x308] sm:$0xff] %v5483_v0 }
  0xed   : > { %523 = vst [vmem:[#allocation2 + $0x310] sm:$0xff] %v5483_v0  ;;  %524 = vst [vmem:[#allocation2 + $0x318] sm:$0xff] %v5483_v0 }
  0xee   : > { %525 = vst [vmem:[#allocation2 + $0x320] sm:$0xff] %v5483_v0  ;;  %526 = vst [vmem:[#allocation2 + $0x328] sm:$0xff] %v5483_v0 }
  0xef   : > { %527 = vst [vmem:[#allocation2 + $0x330] sm:$0xff] %v5483_v0  ;;  %528 = vst [vmem:[#allocation2 + $0x338] sm:$0xff] %v5483_v0 }
  0xf0   : > { %529 = vst [vmem:[#allocation2 + $0x340] sm:$0xff] %v5483_v0  ;;  %530 = vst [vmem:[#allocation2 + $0x348] sm:$0xff] %v5483_v0 }
  0xf1   : > { %531 = vst [vmem:[#allocation2 + $0x350] sm:$0xff] %v5483_v0  ;;  %532 = vst [vmem:[#allocation2 + $0x358] sm:$0xff] %v5483_v0 }
  0xf2   : > { %533 = vst [vmem:[#allocation2 + $0x360] sm:$0xff] %v5483_v0  ;;  %534 = vst [vmem:[#allocation2 + $0x368] sm:$0xff] %v5483_v0 }
  0xf3   : > { %535 = vst [vmem:[#allocation2 + $0x370] sm:$0xff] %v5483_v0  ;;  %536 = vst [vmem:[#allocation2 + $0x378] sm:$0xff] %v5483_v0 }
  0xf4   : > { %537 = vst [vmem:[#allocation2 + $0x380] sm:$0xff] %v5483_v0  ;;  %538 = vst [vmem:[#allocation2 + $0x388] sm:$0xff] %v5483_v0 }
  0xf5   : > { %539 = vst [vmem:[#allocation2 + $0x390] sm:$0xff] %v5483_v0  ;;  %540 = vst [vmem:[#allocation2 + $0x398] sm:$0xff] %v5483_v0 }
  0xf6   : > { %541 = vst [vmem:[#allocation2 + $0x3a0] sm:$0xff] %v5483_v0  ;;  %542 = vst [vmem:[#allocation2 + $0x3a8] sm:$0xff] %v5483_v0 }
  0xf7   : > { %543 = vst [vmem:[#allocation2 + $0x3b0] sm:$0xff] %v5483_v0  ;;  %544 = vst [vmem:[#allocation2 + $0x3b8] sm:$0xff] %v5483_v0 }
  0xf8   : > { %545 = vst [vmem:[#allocation2 + $0x3c0] sm:$0xff] %v5483_v0  ;;  %546 = vst [vmem:[#allocation2 + $0x3c8] sm:$0xff] %v5483_v0 }
  0xf9   : > { %547 = vst [vmem:[#allocation2 + $0x3d0] sm:$0xff] %v5483_v0  ;;  %548 = vst [vmem:[#allocation2 + $0x3d8] sm:$0xff] %v5483_v0 }
  0xfa   : > { %549 = vst [vmem:[#allocation2 + $0x3e0] sm:$0xff] %v5483_v0  ;;  %550 = vst [vmem:[#allocation2 + $0x3e8] sm:$0xff] %v5483_v0 }
  0xfb   : > { %551 = vst [vmem:[#allocation2 + $0x3f0] sm:$0xff] %v5483_v0  ;;  %552 = vst [vmem:[#allocation2 + $0x3f8] sm:$0xff] %v5483_v0 }
  0xfc PF: > { %v4936_v1 = vld [vmem:[%s5775_s7 + $0x4] ss:$8 sps:$4 sm:$0xff]   ;;  %v4940_v3 = vld [vmem:[%s5775_s7] ss:$8 sps:$4 sm:$0xff]   ;;  %v4942_v5 = vld [vmem:[%s5775_s7 + $0x14] ss:$8 sps:$4 sm:$0xff]  }
  0xfd   : > { %v4938_v2 = vld [vmem:[%s5775_s7 + $0x104] ss:$8 sps:$4 sm:$0xff]   ;;  %1497 = vmatprep.subr.bf16.mxu0 %v4936_v1  ;;  %v4941_v4 = vld [vmem:[%s5775_s7 + $0x100] ss:$8 sps:$4 sm:$0xff]   ;;  %v4944_v6 = vld [vmem:[%s5775_s7 + $0x114] ss:$8 sps:$4 sm:$0xff]  }
  0xfe   : > { %1610 = vmatprep.subr.bf16.mxu1 %v4938_v2  ;;  %1498 = vmatpush1.bf16.xpose.msra.mxu0 %v4940_v3  ;;  %v4946_v7 = vld [vmem:[%s5775_s7 + $0x10] ss:$8 sps:$4 sm:$0xff]   ;;  %v4948_v9 = vld [vmem:[%s5775_s7 + $0x24] ss:$8 sps:$4 sm:$0xff]   ;;  %v4952_v11 = vld [vmem:[%s5775_s7 + $0x20] ss:$8 sps:$4 sm:$0xff]  }
  0xff   : > { %1611 = vmatpush1.bf16.xpose.msra.mxu1 %v4941_v4  ;;  %1499 = vmatprep.subr.bf16.mxu0 %v4942_v5  ;;  %v4947_v8 = vld [vmem:[%s5775_s7 + $0x110] ss:$8 sps:$4 sm:$0xff]   ;;  %v4950_v10 = vld [vmem:[%s5775_s7 + $0x124] ss:$8 sps:$4 sm:$0xff]   ;;  %v4953_v12 = vld [vmem:[%s5775_s7 + $0x120] ss:$8 sps:$4 sm:$0xff]  }
 0x100   : > { %1612 = vmatprep.subr.bf16.mxu1 %v4944_v6  ;;  %v4954_v13 = vld [vmem:[%s5775_s7 + $0x34] ss:$8 sps:$4 sm:$0xff]   ;;  %v4958_v15 = vld [vmem:[%s5775_s7 + $0x30] ss:$8 sps:$4 sm:$0xff]   ;;  %v4960_v17 = vld [vmem:[%s5775_s7 + $0x44] ss:$8 sps:$4 sm:$0xff]  }
 0x101   : > { %v4956_v14 = vld [vmem:[%s5775_s7 + $0x134] ss:$8 sps:$4 sm:$0xff]   ;;  %v4959_v16 = vld [vmem:[%s5775_s7 + $0x130] ss:$8 sps:$4 sm:$0xff]   ;;  %v4962_v18 = vld [vmem:[%s5775_s7 + $0x144] ss:$8 sps:$4 sm:$0xff]  }
 0x102   : > { %v4964_v19 = vld [vmem:[%s5775_s7 + $0x40] ss:$8 sps:$4 sm:$0xff]   ;;  %v4966_v21 = vld [vmem:[%s5775_s7 + $0x54] ss:$8 sps:$4 sm:$0xff]   ;;  %v4970_v23 = vld [vmem:[%s5775_s7 + $0x50] ss:$8 sps:$4 sm:$0xff]  }
 0x103   : > { %v4965_v20 = vld [vmem:[%s5775_s7 + $0x140] ss:$8 sps:$4 sm:$0xff]   ;;  %v4968_v22 = vld [vmem:[%s5775_s7 + $0x154] ss:$8 sps:$4 sm:$0xff]   ;;  %v4971_v24 = vld [vmem:[%s5775_s7 + $0x150] ss:$8 sps:$4 sm:$0xff]  }
 0x104   : > { %v4972_v25 = vld [vmem:[%s5775_s7 + $0x64] ss:$8 sps:$4 sm:$0xff]   ;;  %v556_v28 = vld [vmem:[%s5768_s11 + $0x18] sm:$0xff]  ;;  %v4976_v30 = vld [vmem:[%s5775_s7 + $0x60] ss:$8 sps:$4 sm:$0xff]   ;;  %p4281_p4 = scmp.ne.s32.totalorder %s5461_s27, 1 }
 0x105   : > { %v4974_v26 = vld [vmem:[%s5775_s7 + $0x164] ss:$8 sps:$4 sm:$0xff]   ;;  %v4977_v31 = vld [vmem:[%s5775_s7 + $0x160] ss:$8 sps:$4 sm:$0xff]   ;;  %v4978_v32 = vld [vmem:[%s5775_s7 + $0x74] ss:$8 sps:$4 sm:$0xff]  }
 0x106   : > { %1500 = vmatpush1.bf16.xpose.msra.mxu0 %v4946_v7  ;;  %v554_v27 = vld [vmem:[%s5768_s11 + $0x8] sm:$0xff]  ;;  %v4980_v33 = vld [vmem:[%s5775_s7 + $0x174] ss:$8 sps:$4 sm:$0xff]   ;;  %v4982_v34 = vld [vmem:[%s5775_s7 + $0x70] ss:$8 sps:$4 sm:$0xff]  }
 0x107   : > { %1613 = vmatpush1.bf16.xpose.msra.mxu1 %v4947_v8  ;;  %1501 = vmatprep.subr.bf16.mxu0 %v4948_v9  ;;  %v5946_v29 = vpack.c.bf16 %v556_v28, %v554_v27  ;;  %v4983_v35 = vld [vmem:[%s5775_s7 + $0x170] ss:$8 sps:$4 sm:$0xff]   ;;  %v4984_v36 = vld [vmem:[%s5775_s7 + $0x84] ss:$8 sps:$4 sm:$0xff]   ;;  %v4988_v38 = vld [vmem:[%s5775_s7 + $0x80] ss:$8 sps:$4 sm:$0xff]  }
 0x108   : > { %1614 = vmatprep.subr.bf16.mxu1 %v4950_v10  ;;  %v4986_v37 = vld [vmem:[%s5775_s7 + $0x184] ss:$8 sps:$4 sm:$0xff]   ;;  %v4989_v39 = vld [vmem:[%s5775_s7 + $0x180] ss:$8 sps:$4 sm:$0xff]   ;;  %v4990_v40 = vld [vmem:[%s5775_s7 + $0x94] ss:$8 sps:$4 sm:$0xff]  }
 0x109   : > { %1529 = vmatprep.mubr.bf16.mxu0 %v5946_v29  ;;  %1642 = vmatprep.mubr.bf16.mxu1 %v5946_v29  ;;  %v4992_v41 = vld [vmem:[%s5775_s7 + $0x194] ss:$8 sps:$4 sm:$0xff]   ;;  %v4994_v42 = vld [vmem:[%s5775_s7 + $0x90] ss:$8 sps:$4 sm:$0xff]   ;;  %v4996_v44 = vld [vmem:[%s5775_s7 + $0xa4] ss:$8 sps:$4 sm:$0xff]  }
 0x10a   : > { %v4995_v43 = vld [vmem:[%s5775_s7 + $0x190] ss:$8 sps:$4 sm:$0xff]   ;;  %v4998_v45 = vld [vmem:[%s5775_s7 + $0x1a4] ss:$8 sps:$4 sm:$0xff]   ;;  %v5000_v46 = vld [vmem:[%s5775_s7 + $0xa0] ss:$8 sps:$4 sm:$0xff]  }
 0x10b   : > { %v5001_v47 = vld [vmem:[%s5775_s7 + $0x1a0] ss:$8 sps:$4 sm:$0xff]   ;;  %v5002_v48 = vld [vmem:[%s5775_s7 + $0xb4] ss:$8 sps:$4 sm:$0xff]   ;;  %v5006_v50 = vld [vmem:[%s5775_s7 + $0xb0] ss:$8 sps:$4 sm:$0xff]  }
 0x10c   : > { %v5004_v49 = vld [vmem:[%s5775_s7 + $0x1b4] ss:$8 sps:$4 sm:$0xff]   ;;  %v5007_v51 = vld [vmem:[%s5775_s7 + $0x1b0] ss:$8 sps:$4 sm:$0xff]   ;;  %v5008_v52 = vld [vmem:[%s5775_s7 + $0xc4] ss:$8 sps:$4 sm:$0xff]  }
 0x10d   : > { %v5010_v53 = vld [vmem:[%s5775_s7 + $0x1c4] ss:$8 sps:$4 sm:$0xff]   ;;  %v5012_v54 = vld [vmem:[%s5775_s7 + $0xc0] ss:$8 sps:$4 sm:$0xff]   ;;  %v5014_v56 = vld [vmem:[%s5775_s7 + $0xd4] ss:$8 sps:$4 sm:$0xff]  }
 0x10e   : > { %1502 = vmatpush1.bf16.xpose.msra.mxu0 %v4952_v11  ;;  %v5013_v55 = vld [vmem:[%s5775_s7 + $0x1c0] ss:$8 sps:$4 sm:$0xff]   ;;  %v5016_v57 = vld [vmem:[%s5775_s7 + $0x1d4] ss:$8 sps:$4 sm:$0xff]   ;;  %v5018_v58 = vld [vmem:[%s5775_s7 + $0xd0] ss:$8 sps:$4 sm:$0xff]  }
 0x10f   : > { %1615 = vmatpush1.bf16.xpose.msra.mxu1 %v4953_v12  ;;  %1503 = vmatprep.subr.bf16.mxu0 %v4954_v13  ;;  %v5019_v59 = vld [vmem:[%s5775_s7 + $0x1d0] ss:$8 sps:$4 sm:$0xff]   ;;  %v5020_v60 = vld [vmem:[%s5775_s7 + $0xe4] ss:$8 sps:$4 sm:$0xff]   ;;  %v5024_v62 = vld [vmem:[%s5775_s7 + $0xe0] ss:$8 sps:$4 sm:$0xff]  }
 0x110   : > { %1616 = vmatprep.subr.bf16.mxu1 %v4956_v14  ;;  %v5022_v61 = vld [vmem:[%s5775_s7 + $0x1e4] ss:$8 sps:$4 sm:$0xff]   ;;  %v5025_v63 = vld [vmem:[%s5775_s7 + $0x1e0] ss:$8 sps:$4 sm:$0xff]   ;;  %v5026_v0 = vld [vmem:[%s5775_s7 + $0xf4] ss:$8 sps:$4 sm:$0xff]  }
 0x111   : > { %v5028_v1 = vld [vmem:[%s5775_s7 + $0x1f4] ss:$8 sps:$4 sm:$0xff]   ;;  %v5030_v2 = vld [vmem:[%s5775_s7 + $0xf0] ss:$8 sps:$4 sm:$0xff]   ;;  %v5034_v4 = vld [vmem:[%s5775_s7 + $0x204] ss:$8 sps:$4 sm:$0xff]  }
 0x112   : > { %v5031_v3 = vld [vmem:[%s5775_s7 + $0x1f0] ss:$8 sps:$4 sm:$0xff]   ;;  %v5037_v5 = vld [vmem:[%s5775_s7 + $0x304] ss:$8 sps:$4 sm:$0xff]   ;;  %v5032_v11 = vld [vmem:[%s5775_s7 + $0x200] ss:$8 sps:$4 sm:$0xff]  }
 0x113   : > { %v553_v6 = vld [vmem:[%s5768_s11] sm:$0xff]  ;;  %v555_v7 = vld [vmem:[%s5768_s11 + $0x10] sm:$0xff]  ;;  %v558_v9 = vld [vmem:[%s5768_s11 + $0x28] sm:$0xff] }
 0x114   : > { %v5992_v8 = vpack.c.bf16 %v555_v7, %v553_v6  ;;  %v560_v10 = vld [vmem:[%s5768_s11 + $0x38] sm:$0xff]  ;;  %v5035_v12 = vld [vmem:[%s5775_s7 + $0x300] ss:$8 sps:$4 sm:$0xff]   ;;  %v563_v27 = vld [vmem:[%s5768_s11 + $0x50] sm:$0xff] }
 0x115   : > { %v5040_v13 = vld [vmem:[%s5775_s7 + $0x214] ss:$8 sps:$4 sm:$0xff]   ;;  %v582_v6 = vld [vmem:[%s5768_s11 + $0xe8] sm:$0xff] }
 0x116   : > { %1504 = vmatpush1.bf16.xpose.msra.mxu0 %v4958_v15  ;;  %v5043_v14 = vld [vmem:[%s5775_s7 + $0x314] ss:$8 sps:$4 sm:$0xff]   ;;  %v6000_v15 = vpack.c.bf16 %v560_v10, %v558_v9  ;;  %v5068_v9 = vld [vmem:[%s5775_s7 + $0x260] ss:$8 sps:$4 sm:$0xff]  }
 0x117   : > { %1617 = vmatpush1.bf16.xpose.msra.mxu1 %v4959_v16  ;;  %1505 = vmatprep.subr.bf16.mxu0 %v4960_v17  ;;  %v557_v16 = vld [vmem:[%s5768_s11 + $0x20] sm:$0xff]  ;;  %v559_v17 = vld [vmem:[%s5768_s11 + $0x30] sm:$0xff]  ;;  %v584_v7 = vld [vmem:[%s5768_s11 + $0xf8] sm:$0xff] }
 0x118   : > { %1618 = vmatprep.subr.bf16.mxu1 %v4962_v18  ;;  %v6008_v18 = vpack.c.bf16 %v559_v17, %v557_v16  ;;  %v5071_v10 = vld [vmem:[%s5775_s7 + $0x360] ss:$8 sps:$4 sm:$0xff]   ;;  %v583_v16 = vld [vmem:[%s5768_s11 + $0xf0] sm:$0xff] }
 0x11e   : > { %1506 = vmatpush1.bf16.xpose.msra.mxu0 %v4964_v19  ;;  %v562_v19 = vld [vmem:[%s5768_s11 + $0x48] sm:$0xff] }
 0x11f   : > { %1619 = vmatpush1.bf16.xpose.msra.mxu1 %v4965_v20  ;;  %1507 = vmatprep.subr.bf16.mxu0 %v4966_v21  ;;  %v564_v20 = vld [vmem:[%s5768_s11 + $0x58] sm:$0xff] }
 0x120   : > { %1620 = vmatprep.subr.bf16.mxu1 %v4968_v22  ;;  %v5038_v21 = vld [vmem:[%s5775_s7 + $0x210] ss:$8 sps:$4 sm:$0xff]  }
 0x121   : > { %v5041_v22 = vld [vmem:[%s5775_s7 + $0x310] ss:$8 sps:$4 sm:$0xff]  }
 0x126   : > { %1508 = vmatpush1.bf16.xpose.msra.mxu0 %v4970_v23  ;;  %v5046_v23 = vld [vmem:[%s5775_s7 + $0x224] ss:$8 sps:$4 sm:$0xff]  }
 0x127   : > { %1621 = vmatpush1.bf16.xpose.msra.mxu1 %v4971_v24  ;;  %1509 = vmatprep.subr.bf16.mxu0 %v4972_v25  ;;  %v5049_v24 = vld [vmem:[%s5775_s7 + $0x324] ss:$8 sps:$4 sm:$0xff]   ;;  %v6016_v25 = vpack.c.bf16 %v564_v20, %v562_v19  ;;  %v5074_v19 = vld [vmem:[%s5775_s7 + $0x270] ss:$8 sps:$4 sm:$0xff]  }
 0x128   : > { %1622 = vmatprep.subr.bf16.mxu1 %v4974_v26  ;;  %v561_v26 = vld [vmem:[%s5768_s11 + $0x40] sm:$0xff]  ;;  %v5077_v20 = vld [vmem:[%s5775_s7 + $0x370] ss:$8 sps:$4 sm:$0xff]  }
 0x129   : > { %v6024_v28 = vpack.c.bf16 %v563_v27, %v561_v26  ;;  %v5088_v26 = vld [vmem:[%s5775_s7 + $0x294] ss:$8 sps:$4 sm:$0xff]  }
 0x12a   : > { %v5091_v27 = vld [vmem:[%s5775_s7 + $0x394] ss:$8 sps:$4 sm:$0xff]  }
 0x12e   : > { %1510 = vmatpush1.bf16.xpose.msra.mxu0 %v4976_v30  ;;  %v566_v30 = vld [vmem:[%s5768_s11 + $0x68] sm:$0xff] }
 0x12f   : > { %1623 = vmatpush1.bf16.xpose.msra.mxu1 %v4977_v31  ;;  %1511 = vmatprep.subr.bf16.mxu0 %v4978_v32  ;;  %v568_v31 = vld [vmem:[%s5768_s11 + $0x78] sm:$0xff]  ;;  %v5044_v32 = vld [vmem:[%s5775_s7 + $0x220] ss:$8 sps:$4 sm:$0xff]  }
 0x130   : > { %1624 = vmatprep.subr.bf16.mxu1 %v4980_v33  ;;  %v5047_v33 = vld [vmem:[%s5775_s7 + $0x320] ss:$8 sps:$4 sm:$0xff]  }
 0x136   : > { %1512 = vmatpush1.bf16.xpose.msra.mxu0 %v4982_v34  ;;  %v5052_v34 = vld [vmem:[%s5775_s7 + $0x234] ss:$8 sps:$4 sm:$0xff]  }
 0x137   : > { %1625 = vmatpush1.bf16.xpose.msra.mxu1 %v4983_v35  ;;  %1513 = vmatprep.subr.bf16.mxu0 %v4984_v36  ;;  %v5055_v35 = vld [vmem:[%s5775_s7 + $0x334] ss:$8 sps:$4 sm:$0xff]   ;;  %v6032_v36 = vpack.c.bf16 %v568_v31, %v566_v30  ;;  %v5086_v30 = vld [vmem:[%s5775_s7 + $0x290] ss:$8 sps:$4 sm:$0xff]  }
 0x138   : > { %1626 = vmatprep.subr.bf16.mxu1 %v4986_v37  ;;  %v565_v37 = vld [vmem:[%s5768_s11 + $0x60] sm:$0xff]  ;;  %v5089_v31 = vld [vmem:[%s5775_s7 + $0x390] ss:$8 sps:$4 sm:$0xff]  }
 0x13e   : > { %1514 = vmatpush1.bf16.xpose.msra.mxu0 %v4988_v38  ;;  %v567_v38 = vld [vmem:[%s5768_s11 + $0x70] sm:$0xff] }
 0x13f   : > { %1627 = vmatpush1.bf16.xpose.msra.mxu1 %v4989_v39  ;;  %1515 = vmatprep.subr.bf16.mxu0 %v4990_v40  ;;  %v6040_v39 = vpack.c.bf16 %v567_v38, %v565_v37  ;;  %v570_v40 = vld [vmem:[%s5768_s11 + $0x88] sm:$0xff]  ;;  %v5103_v37 = vld [vmem:[%s5775_s7 + $0x3b4] ss:$8 sps:$4 sm:$0xff]   ;;  %v5098_v38 = vld [vmem:[%s5775_s7 + $0x2b0] ss:$8 sps:$4 sm:$0xff]  }
 0x140   : > { %1628 = vmatprep.subr.bf16.mxu1 %v4992_v41  ;;  %v572_v41 = vld [vmem:[%s5768_s11 + $0x98] sm:$0xff] }
 0x146   : > { %1516 = vmatpush1.bf16.xpose.msra.mxu0 %v4994_v42  ;;  %v5050_v42 = vld [vmem:[%s5775_s7 + $0x230] ss:$8 sps:$4 sm:$0xff]  }
 0x147   : > { %1629 = vmatpush1.bf16.xpose.msra.mxu1 %v4995_v43  ;;  %1517 = vmatprep.subr.bf16.mxu0 %v4996_v44  ;;  %v5053_v43 = vld [vmem:[%s5775_s7 + $0x330] ss:$8 sps:$4 sm:$0xff]   ;;  %v5058_v44 = vld [vmem:[%s5775_s7 + $0x244] ss:$8 sps:$4 sm:$0xff]  }
 0x148   : > { %1630 = vmatprep.subr.bf16.mxu1 %v4998_v45  ;;  %v5061_v45 = vld [vmem:[%s5775_s7 + $0x344] ss:$8 sps:$4 sm:$0xff]  }
 0x14e   : > { %1518 = vmatpush1.bf16.xpose.msra.mxu0 %v5000_v46  ;;  %v6048_v46 = vpack.c.bf16 %v572_v41, %v570_v40  ;;  %v5101_v40 = vld [vmem:[%s5775_s7 + $0x3b0] ss:$8 sps:$4 sm:$0xff]   ;;  %v5106_v41 = vld [vmem:[%s5775_s7 + $0x2c4] ss:$8 sps:$4 sm:$0xff]  }
 0x14f   : > { %1631 = vmatpush1.bf16.xpose.msra.mxu1 %v5001_v47  ;;  %1519 = vmatprep.subr.bf16.mxu0 %v5002_v48  ;;  %v569_v47 = vld [vmem:[%s5768_s11 + $0x80] sm:$0xff]  ;;  %v571_v48 = vld [vmem:[%s5768_s11 + $0x90] sm:$0xff] }
 0x150   : > { %1632 = vmatprep.subr.bf16.mxu1 %v5004_v49  ;;  %v6056_v49 = vpack.c.bf16 %v571_v48, %v569_v47  ;;  %v5115_v47 = vld [vmem:[%s5775_s7 + $0x3d4] ss:$8 sps:$4 sm:$0xff]   ;;  %v5110_v48 = vld [vmem:[%s5775_s7 + $0x2d0] ss:$8 sps:$4 sm:$0xff]  }
 0x156   : > { %1520 = vmatpush1.bf16.xpose.msra.mxu0 %v5006_v50  ;;  %v574_v50 = vld [vmem:[%s5768_s11 + $0xa8] sm:$0xff] }
 0x157   : > { %1633 = vmatpush1.bf16.xpose.msra.mxu1 %v5007_v51  ;;  %1521 = vmatprep.subr.bf16.mxu0 %v5008_v52  ;;  %v576_v51 = vld [vmem:[%s5768_s11 + $0xb8] sm:$0xff]  ;;  %v5056_v52 = vld [vmem:[%s5775_s7 + $0x240] ss:$8 sps:$4 sm:$0xff]  }
 0x158   : > { %1634 = vmatprep.subr.bf16.mxu1 %v5010_v53  ;;  %v5059_v53 = vld [vmem:[%s5775_s7 + $0x340] ss:$8 sps:$4 sm:$0xff]  }
 0x15e   : > { %1522 = vmatpush1.bf16.xpose.msra.mxu0 %v5012_v54  ;;  %v5064_v54 = vld [vmem:[%s5775_s7 + $0x254] ss:$8 sps:$4 sm:$0xff]  }
 0x15f   : > { %1635 = vmatpush1.bf16.xpose.msra.mxu1 %v5013_v55  ;;  %1523 = vmatprep.subr.bf16.mxu0 %v5014_v56  ;;  %v5067_v55 = vld [vmem:[%s5775_s7 + $0x354] ss:$8 sps:$4 sm:$0xff]   ;;  %v6064_v56 = vpack.c.bf16 %v576_v51, %v574_v50  ;;  %v5113_v50 = vld [vmem:[%s5775_s7 + $0x3d0] ss:$8 sps:$4 sm:$0xff]   ;;  %v5118_v51 = vld [vmem:[%s5775_s7 + $0x2e4] ss:$8 sps:$4 sm:$0xff]  }
 0x160   : > { %1636 = vmatprep.subr.bf16.mxu1 %v5016_v57  ;;  %v573_v57 = vld [vmem:[%s5768_s11 + $0xa0] sm:$0xff] }
 0x166   : > { %1524 = vmatpush1.bf16.xpose.msra.mxu0 %v5018_v58  ;;  %v575_v58 = vld [vmem:[%s5768_s11 + $0xb0] sm:$0xff] }
 0x167   : > { %1637 = vmatpush1.bf16.xpose.msra.mxu1 %v5019_v59  ;;  %1525 = vmatprep.subr.bf16.mxu0 %v5020_v60  ;;  %v6072_v59 = vpack.c.bf16 %v575_v58, %v573_v57  ;;  %v578_v60 = vld [vmem:[%s5768_s11 + $0xc8] sm:$0xff]  ;;  %v5127_v57 = vld [vmem:[%s5775_s7 + $0x3f4] ss:$8 sps:$4 sm:$0xff]   ;;  %v5122_v58 = vld [vmem:[%s5775_s7 + $0x2f0] ss:$8 sps:$4 sm:$0xff]  }
 0x168   : > { %1638 = vmatprep.subr.bf16.mxu1 %v5022_v61  ;;  %v580_v61 = vld [vmem:[%s5768_s11 + $0xd8] sm:$0xff] }
 0x16e   : > { %1526 = vmatpush1.bf16.xpose.msra.mxu0 %v5024_v62  ;;  %v5062_v62 = vld [vmem:[%s5775_s7 + $0x250] ss:$8 sps:$4 sm:$0xff]  }
 0x16f   : > { %1639 = vmatpush1.bf16.xpose.msra.mxu1 %v5025_v63  ;;  %1527 = vmatprep.subr.bf16.mxu0 %v5026_v0  ;;  %v5065_v63 = vld [vmem:[%s5775_s7 + $0x350] ss:$8 sps:$4 sm:$0xff]   ;;  %v5070_v0 = vld [vmem:[%s5775_s7 + $0x264] ss:$8 sps:$4 sm:$0xff]  }
 0x170   : > { %1640 = vmatprep.subr.bf16.mxu1 %v5028_v1  ;;  %v5073_v1 = vld [vmem:[%s5775_s7 + $0x364] ss:$8 sps:$4 sm:$0xff]  }
 0x176   : > { %1528 = vmatpush1.bf16.xpose.msra.mxu0 %v5030_v2  ;;  %v6080_v2 = vpack.c.bf16 %v580_v61, %v578_v60  ;;  %v5125_v60 = vld [vmem:[%s5775_s7 + $0x3f0] ss:$8 sps:$4 sm:$0xff]  }
 0x177   : > { %1641 = vmatpush1.bf16.xpose.msra.mxu1 %v5031_v3  ;;  %1723 = vmatprep.subr.bf16.mxu0 %v5034_v4  ;;  %v577_v3 = vld [vmem:[%s5768_s11 + $0xc0] sm:$0xff]  ;;  %v579_v4 = vld [vmem:[%s5768_s11 + $0xd0] sm:$0xff] }
 0x178   : > { %1836 = vmatprep.subr.bf16.mxu1 %v5037_v5  ;;  %v6088_v5 = vpack.c.bf16 %v579_v4, %v577_v3 }
 0x17d   : > { %1530 = vmatmul.mubr.bf16.vlgmr.msra.gmra.mrb[0].mxu0 %v5992_v8 }
 0x17e   : > { %1643 = vmatmul.mubr.bf16.vlgmr.msra.gmra.mrb[0].mxu1 %v5992_v8  ;;  %1724 = vmatpush1.bf16.xpose.msra.mxu0 %v5032_v11  ;;  %v5076_v11 = vld [vmem:[%s5775_s7 + $0x274] ss:$8 sps:$4 sm:$0xff]  }
 0x17f   : > { %1837 = vmatpush1.bf16.xpose.msra.mxu1 %v5035_v12  ;;  %1725 = vmatprep.subr.bf16.mxu0 %v5040_v13  ;;  %v5079_v12 = vld [vmem:[%s5775_s7 + $0x374] ss:$8 sps:$4 sm:$0xff]   ;;  %v6096_v13 = vpack.c.bf16 %v584_v7, %v582_v6 }
 0x180   : > { %1838 = vmatprep.subr.bf16.mxu1 %v5043_v14  ;;  %1539 = vmatprep.mubr.bf16.mxu0 %v6000_v15  ;;  %v581_v14 = vld [vmem:[%s5768_s11 + $0xe0] sm:$0xff] }
 0x181   : > { %1652 = vmatprep.mubr.bf16.mxu1 %v6000_v15  ;;  %v6104_v17 = vpack.c.bf16 %v583_v16, %v581_v14  ;;  %v620_v14 = vld [vmem:[#allocation2 + $0x98] sm:$0xff] }
 0x185   : > { %1540 = vmatmul.mubr.bf16.gmra.mrb[4].mxu0 %v6008_v18 }
 0x186   : > { %1653 = vmatmul.mubr.bf16.gmra.mrb[4].mxu1 %v6008_v18  ;;  %1726 = vmatpush1.bf16.xpose.msra.mxu0 %v5038_v21  ;;  %v5082_v21 = vld [vmem:[%s5775_s7 + $0x284] ss:$8 sps:$4 sm:$0xff]  }
 0x187   : > { %1839 = vmatpush1.bf16.xpose.msra.mxu1 %v5041_v22  ;;  %1727 = vmatprep.subr.bf16.mxu0 %v5046_v23  ;;  %v5085_v22 = vld [vmem:[%s5775_s7 + $0x384] ss:$8 sps:$4 sm:$0xff]   ;;  %v5080_v23 = vld [vmem:[%s5775_s7 + $0x280] ss:$8 sps:$4 sm:$0xff]  }
 0x188   : > { %1840 = vmatprep.subr.bf16.mxu1 %v5049_v24  ;;  %1549 = vmatprep.mubr.bf16.mxu0 %v6016_v25  ;;  %v5083_v24 = vld [vmem:[%s5775_s7 + $0x380] ss:$8 sps:$4 sm:$0xff]  }
 0x189   : > { %1662 = vmatprep.mubr.bf16.mxu1 %v6016_v25 }
 0x18d   : > { %1550 = vmatmul.mubr.bf16.gmra.mrb[8].mxu0 %v6024_v28 }
 0x18e   : > { %1663 = vmatmul.mubr.bf16.gmra.mrb[8].mxu1 %v6024_v28  ;;  %1728 = vmatpush1.bf16.xpose.msra.mxu0 %v5044_v32  ;;  %v5094_v32 = vld [vmem:[%s5775_s7 + $0x2a4] ss:$8 sps:$4 sm:$0xff]  }
 0x18f   : > { %1841 = vmatpush1.bf16.xpose.msra.mxu1 %v5047_v33  ;;  %1729 = vmatprep.subr.bf16.mxu0 %v5052_v34  ;;  %v5097_v33 = vld [vmem:[%s5775_s7 + $0x3a4] ss:$8 sps:$4 sm:$0xff]   ;;  %v5095_v34 = vld [vmem:[%s5775_s7 + $0x3a0] ss:$8 sps:$4 sm:$0xff]  }
 0x190   : > { %1842 = vmatprep.subr.bf16.mxu1 %v5055_v35  ;;  %1559 = vmatprep.mubr.bf16.mxu0 %v6032_v36  ;;  %v5100_v35 = vld [vmem:[%s5775_s7 + $0x2b4] ss:$8 sps:$4 sm:$0xff]  }
 0x191   : > { %1672 = vmatprep.mubr.bf16.mxu1 %v6032_v36 }
 0x195   : > { %1560 = vmatmul.mubr.bf16.gmra.mrb[12].mxu0 %v6040_v39 }
 0x196   : > { %1673 = vmatmul.mubr.bf16.gmra.mrb[12].mxu1 %v6040_v39  ;;  %1730 = vmatpush1.bf16.xpose.msra.mxu0 %v5050_v42  ;;  %v5109_v42 = vld [vmem:[%s5775_s7 + $0x3c4] ss:$8 sps:$4 sm:$0xff]  }
 0x197   : > { %1843 = vmatpush1.bf16.xpose.msra.mxu1 %v5053_v43  ;;  %1731 = vmatprep.subr.bf16.mxu0 %v5058_v44  ;;  %v5104_v43 = vld [vmem:[%s5775_s7 + $0x2c0] ss:$8 sps:$4 sm:$0xff]  }
 0x198   : > { %1844 = vmatprep.subr.bf16.mxu1 %v5061_v45  ;;  %1569 = vmatprep.mubr.bf16.mxu0 %v6048_v46  ;;  %v5107_v44 = vld [vmem:[%s5775_s7 + $0x3c0] ss:$8 sps:$4 sm:$0xff]   ;;  %v5112_v45 = vld [vmem:[%s5775_s7 + $0x2d4] ss:$8 sps:$4 sm:$0xff]  }
 0x199   : > { %1682 = vmatprep.mubr.bf16.mxu1 %v6048_v46 }
 0x19d   : > { %1570 = vmatmul.mubr.bf16.gmra.mrb[16].mxu0 %v6056_v49 }
 0x19e   : > { %1683 = vmatmul.mubr.bf16.gmra.mrb[16].mxu1 %v6056_v49  ;;  %1732 = vmatpush1.bf16.xpose.msra.mxu0 %v5056_v52  ;;  %v5121_v52 = vld [vmem:[%s5775_s7 + $0x3e4] ss:$8 sps:$4 sm:$0xff]  }
 0x19f   : > { %1845 = vmatpush1.bf16.xpose.msra.mxu1 %v5059_v53  ;;  %1733 = vmatprep.subr.bf16.mxu0 %v5064_v54  ;;  %v5116_v53 = vld [vmem:[%s5775_s7 + $0x2e0] ss:$8 sps:$4 sm:$0xff]  }
 0x1a0   : > { %1846 = vmatprep.subr.bf16.mxu1 %v5067_v55  ;;  %1579 = vmatprep.mubr.bf16.mxu0 %v6064_v56  ;;  %v5119_v54 = vld [vmem:[%s5775_s7 + $0x3e0] ss:$8 sps:$4 sm:$0xff]   ;;  %v5124_v55 = vld [vmem:[%s5775_s7 + $0x2f4] ss:$8 sps:$4 sm:$0xff]  }
 0x1a1   : > { %1692 = vmatprep.mubr.bf16.mxu1 %v6064_v56 }
 0x1a5   : > { %1580 = vmatmul.mubr.bf16.gmra.mrb[20].mxu0 %v6072_v59 }
 0x1a6   : > { %1693 = vmatmul.mubr.bf16.gmra.mrb[20].mxu1 %v6072_v59  ;;  %1734 = vmatpush1.bf16.xpose.msra.mxu0 %v5062_v62  ;;  %v610_v62 = vld [vmem:[#allocation2 + $0x48] sm:$0xff] }
 0x1a7   : > { %1847 = vmatpush1.bf16.xpose.msra.mxu1 %v5065_v63  ;;  %1735 = vmatprep.subr.bf16.mxu0 %v5070_v0  ;;  %v612_v63 = vld [vmem:[#allocation2 + $0x58] sm:$0xff] }
 0x1a8   : > { %1848 = vmatprep.subr.bf16.mxu1 %v5073_v1  ;;  %1589 = vmatprep.mubr.bf16.mxu0 %v6080_v2 }
 0x1a9   : > { %1702 = vmatprep.mubr.bf16.mxu1 %v6080_v2 }
 0x1ad   : > { %1590 = vmatmul.mubr.bf16.gmra.mrb[24].mxu0 %v6088_v5 }
 0x1ae   : > { %1703 = vmatmul.mubr.bf16.gmra.mrb[24].mxu1 %v6088_v5  ;;  %1736 = vmatpush1.bf16.xpose.msra.mxu0 %v5068_v9 }
 0x1af   : > { %1849 = vmatpush1.bf16.xpose.msra.mxu1 %v5071_v10  ;;  %1737 = vmatprep.subr.bf16.mxu0 %v5076_v11  ;;  %v617_v11 = vld [vmem:[#allocation2 + $0x80] sm:$0xff] }
 0x1b0   : > { %1850 = vmatprep.subr.bf16.mxu1 %v5079_v12  ;;  %1599 = vmatprep.mubr.bf16.mxu0 %v6096_v13  ;;  %v619_v12 = vld [vmem:[#allocation2 + $0x90] sm:$0xff] }
 0x1b1   : > { %1712 = vmatprep.mubr.bf16.mxu1 %v6096_v13 }
 0x1b5   : > { %1600 = vmatmul.mubr.bf16.gmra.mrb[28].mxu0 %v6104_v17 }
 0x1b6   : > { %1713 = vmatmul.mubr.bf16.gmra.mrb[28].mxu1 %v6104_v17  ;;  %1738 = vmatpush1.bf16.xpose.msra.mxu0 %v5074_v19  ;;  %v625_v19 = vld [vmem:[#allocation2 + $0xc0] sm:$0xff] }
 0x1b7   : > { %1851 = vmatpush1.bf16.xpose.msra.mxu1 %v5077_v20  ;;  %1739 = vmatprep.subr.bf16.mxu0 %v5082_v21  ;;  %v627_v20 = vld [vmem:[#allocation2 + $0xd0] sm:$0xff] }
 0x1b8   : > { %1852 = vmatprep.subr.bf16.mxu1 %v5085_v22  ;;  %1755 = vmatprep.mubr.bf16.mxu0 %v5946_v29 }
 0x1b9   : > { %1868 = vmatprep.mubr.bf16.mxu1 %v5946_v29  ;;  %v5092_v29 = vld [vmem:[%s5775_s7 + $0x2a0] ss:$8 sps:$4 sm:$0xff]  }
 0x1be   : > { %1740 = vmatpush1.bf16.xpose.msra.mxu0 %v5080_v23 }
 0x1bf   : > { %1853 = vmatpush1.bf16.xpose.msra.mxu1 %v5083_v24  ;;  %1741 = vmatprep.subr.bf16.mxu0 %v5088_v26  ;;  %v626_v26 = vld [vmem:[#allocation2 + $0xc8] sm:$0xff] }
 0x1c0   : > { %1854 = vmatprep.subr.bf16.mxu1 %v5091_v27  ;;  %v628_v27 = vld [vmem:[#allocation2 + $0xd8] sm:$0xff] }
 0x1c6   : > { %1742 = vmatpush1.bf16.xpose.msra.mxu0 %v5086_v30 }
 0x1c7   : > { %1855 = vmatpush1.bf16.xpose.msra.mxu1 %v5089_v31  ;;  %1743 = vmatprep.subr.bf16.mxu0 %v5094_v32 }
 0x1c8   : > { %1856 = vmatprep.subr.bf16.mxu1 %v5097_v33 }
 0x1ce   : > { %1744 = vmatpush1.bf16.xpose.msra.mxu0 %v5092_v29 }
 0x1cf   : > { %1857 = vmatpush1.bf16.xpose.msra.mxu1 %v5095_v34  ;;  %1745 = vmatprep.subr.bf16.mxu0 %v5100_v35 }
 0x1d0   : > { %1858 = vmatprep.subr.bf16.mxu1 %v5103_v37 }
 0x1d6   : > { %1746 = vmatpush1.bf16.xpose.msra.mxu0 %v5098_v38 }
 0x1d7   : > { %1859 = vmatpush1.bf16.xpose.msra.mxu1 %v5101_v40  ;;  %1747 = vmatprep.subr.bf16.mxu0 %v5106_v41  ;;  %v633_v41 = vld [vmem:[#allocation2 + $0x100] sm:$0xff] }
 0x1d8   : > { %1860 = vmatprep.subr.bf16.mxu1 %v5109_v42  ;;  %v635_v42 = vld [vmem:[#allocation2 + $0x110] sm:$0xff] }
 0x1de   : > { %1748 = vmatpush1.bf16.xpose.msra.mxu0 %v5104_v43  ;;  %v634_v43 = vld [vmem:[#allocation2 + $0x108] sm:$0xff] }
 0x1df   : > { %1861 = vmatpush1.bf16.xpose.msra.mxu1 %v5107_v44  ;;  %1749 = vmatprep.subr.bf16.mxu0 %v5112_v45  ;;  %v636_v44 = vld [vmem:[#allocation2 + $0x118] sm:$0xff] }
 0x1e0   : > { %1862 = vmatprep.subr.bf16.mxu1 %v5115_v47 }
 0x1e6   : > { %1750 = vmatpush1.bf16.xpose.msra.mxu0 %v5110_v48  ;;  %v641_v48 = vld [vmem:[#allocation2 + $0x140] sm:$0xff] }
 0x1e7   : > { %1863 = vmatpush1.bf16.xpose.msra.mxu1 %v5113_v50  ;;  %1751 = vmatprep.subr.bf16.mxu0 %v5118_v51  ;;  %v643_v50 = vld [vmem:[#allocation2 + $0x150] sm:$0xff] }
 0x1e8   : > { %1864 = vmatprep.subr.bf16.mxu1 %v5121_v52 }
 0x1ee   : > { %1752 = vmatpush1.bf16.xpose.msra.mxu0 %v5116_v53 }
 0x1ef   : > { %1865 = vmatpush1.bf16.xpose.msra.mxu1 %v5119_v54  ;;  %1753 = vmatprep.subr.bf16.mxu0 %v5124_v55  ;;  %v642_v55 = vld [vmem:[#allocation2 + $0x148] sm:$0xff] }
 0x1f0   : > { %1866 = vmatprep.subr.bf16.mxu1 %v5127_v57  ;;  %v644_v57 = vld [vmem:[#allocation2 + $0x158] sm:$0xff] }
 0x1f6   : > { %1754 = vmatpush1.bf16.xpose.msra.mxu0 %v5122_v58 }
 0x1f7   : > { %1867 = vmatpush1.bf16.xpose.msra.mxu1 %v5125_v60 }
 0x1fd   : > { %1756 = vmatmul.mubr.bf16.vlgmr.msra.gmra.mrb[32].mxu0 %v5992_v8 }
 0x1fe   : > { %1869 = vmatmul.mubr.bf16.vlgmr.msra.gmra.mrb[32].mxu1 %v5992_v8  ;;  %1765 = vmatprep.mubr.bf16.mxu0 %v6000_v15  ;;  %v601_v8 = vld [vmem:[#allocation2] sm:$0xff] }
 0x1ff   : > { %1878 = vmatprep.mubr.bf16.mxu1 %v6000_v15  ;;  %v603_v15 = vld [vmem:[#allocation2 + $0x10] sm:$0xff] }
 0x205   : > { %1766 = vmatmul.mubr.bf16.gmra.mrb[36].mxu0 %v6008_v18 }
 0x206   : > { %1879 = vmatmul.mubr.bf16.gmra.mrb[36].mxu1 %v6008_v18  ;;  %1775 = vmatprep.mubr.bf16.mxu0 %v6016_v25  ;;  %v602_v18 = vld [vmem:[#allocation2 + $0x8] sm:$0xff] }
 0x207   : > { %1888 = vmatprep.mubr.bf16.mxu1 %v6016_v25  ;;  %v604_v25 = vld [vmem:[#allocation2 + $0x18] sm:$0xff] }
 0x20d   : > { %1776 = vmatmul.mubr.bf16.gmra.mrb[40].mxu0 %v6024_v28 }
 0x20e   : > { %1889 = vmatmul.mubr.bf16.gmra.mrb[40].mxu1 %v6024_v28  ;;  %1785 = vmatprep.mubr.bf16.mxu0 %v6032_v36 }
 0x20f   : > { %1898 = vmatprep.mubr.bf16.mxu1 %v6032_v36 }
 0x215   : > { %1786 = vmatmul.mubr.bf16.gmra.mrb[44].mxu0 %v6040_v39 }
 0x216   : > { %1899 = vmatmul.mubr.bf16.gmra.mrb[44].mxu1 %v6040_v39  ;;  %1795 = vmatprep.mubr.bf16.mxu0 %v6048_v46  ;;  %v609_v39 = vld [vmem:[#allocation2 + $0x40] sm:$0xff] }
 0x217   : > { %1908 = vmatprep.mubr.bf16.mxu1 %v6048_v46  ;;  %v611_v46 = vld [vmem:[#allocation2 + $0x50] sm:$0xff] }
 0x21d   : > { %1796 = vmatmul.mubr.bf16.gmra.mrb[48].mxu0 %v6056_v49 }
 0x21e   : > { %1909 = vmatmul.mubr.bf16.gmra.mrb[48].mxu1 %v6056_v49  ;;  %1805 = vmatprep.mubr.bf16.mxu0 %v6064_v56 }
 0x21f   : > { %1918 = vmatprep.mubr.bf16.mxu1 %v6064_v56 }
 0x225   : > { %1806 = vmatmul.mubr.bf16.gmra.mrb[52].mxu0 %v6072_v59 }
 0x226   : > { %1919 = vmatmul.mubr.bf16.gmra.mrb[52].mxu1 %v6072_v59  ;;  %1815 = vmatprep.mubr.bf16.mxu0 %v6080_v2 }
 0x227   : > { %1928 = vmatprep.mubr.bf16.mxu1 %v6080_v2 }
 0x22d   : > { %1816 = vmatmul.mubr.bf16.gmra.mrb[56].mxu0 %v6088_v5 }
 0x22e   : > { %1929 = vmatmul.mubr.bf16.gmra.mrb[56].mxu1 %v6088_v5  ;;  %1825 = vmatprep.mubr.bf16.mxu0 %v6096_v13 }
 0x22f   : > { %1938 = vmatprep.mubr.bf16.mxu1 %v6096_v13  ;;  %v618_v13 = vld [vmem:[#allocation2 + $0x88] sm:$0xff] }
 0x235   : > { %1826 = vmatmul.mubr.bf16.gmra.mrb[60].mxu0 %v6104_v17 }
 0x236   : > { %1939 = vmatmul.mubr.bf16.gmra.mrb[60].mxu1 %v6104_v17 }
 0x250   : > { %v1531_v28 = vpop.f32.mrb[0].mxu0 }
 0x251   : > { %v1644_v36 = vpop.f32.mrb[0].mxu1  ;;  %v1949_v49 = vadd.f32 %v1531_v28, %v601_v8  ;;  %v1533_v59 = vpop.f32.mrb[1].mxu0 }
 0x252   : > { %v1951_v56 = vadd.f32 %v1644_v36, %v603_v15  ;;  %v1646_v61 = vpop.f32.mrb[1].mxu1  ;;  %v1950_v0 = vadd.f32 %v1533_v59, %v602_v18  ;;  %v1535_v2 = vpop.f32.mrb[2].mxu0  ;;  %v650_v59 = vld [vmem:[#allocation2 + $0x188] sm:$0xff] }
 0x253   : > { %v1952_v1 = vadd.f32 %v1646_v61, %v604_v25  ;;  %v1648_v3 = vpop.f32.mrb[2].mxu1  ;;  %2077 = vst [vmem:[#allocation2] sm:$0xff] %v1949_v49  ;;  %v1957_v4 = vadd.f32 %v1535_v2, %v609_v39  ;;  %v1537_v6 = vpop.f32.mrb[3].mxu0  ;;  %v649_v49 = vld [vmem:[#allocation2 + $0x180] sm:$0xff]  ;;  %v652_v61 = vld [vmem:[#allocation2 + $0x198] sm:$0xff] }
 0x254   : > { %2079 = vst [vmem:[#allocation2 + $0x10] sm:$0xff] %v1951_v56  ;;  %v1959_v5 = vadd.f32 %v1648_v3, %v611_v46  ;;  %v1650_v7 = vpop.f32.mrb[3].mxu1  ;;  %2078 = vst [vmem:[#allocation2 + $0x8] sm:$0xff] %v1950_v0  ;;  %v1958_v9 = vadd.f32 %v1537_v6, %v610_v62  ;;  %v651_v56 = vld [vmem:[#allocation2 + $0x190] sm:$0xff]  ;;  %v657_v0 = vld [vmem:[#allocation2 + $0x1c0] sm:$0xff] }
 0x255   : > { %2080 = vst [vmem:[#allocation2 + $0x18] sm:$0xff] %v1952_v1  ;;  %v1960_v10 = vadd.f32 %v1650_v7, %v612_v63  ;;  %2085 = vst [vmem:[#allocation2 + $0x40] sm:$0xff] %v1957_v4  ;;  %v659_v1 = vld [vmem:[#allocation2 + $0x1d0] sm:$0xff]  ;;  %v658_v6 = vld [vmem:[#allocation2 + $0x1c8] sm:$0xff] }
 0x256   : > { %2087 = vst [vmem:[#allocation2 + $0x50] sm:$0xff] %v1959_v5  ;;  %2086 = vst [vmem:[#allocation2 + $0x48] sm:$0xff] %v1958_v9  ;;  %v660_v7 = vld [vmem:[#allocation2 + $0x1d8] sm:$0xff] }
 0x257   : > { %2088 = vst [vmem:[#allocation2 + $0x58] sm:$0xff] %v1960_v10 }
 0x258   : > { %v1541_v16 = vpop.f32.mrb[4].mxu0 }
 0x259   : > { %v1654_v17 = vpop.f32.mrb[4].mxu1  ;;  %v1965_v21 = vadd.f32 %v1541_v16, %v617_v11  ;;  %v1543_v23 = vpop.f32.mrb[5].mxu0 }
 0x25a   : > { %v1967_v22 = vadd.f32 %v1654_v17, %v619_v12  ;;  %v1656_v24 = vpop.f32.mrb[5].mxu1  ;;  %v1966_v30 = vadd.f32 %v1543_v23, %v618_v13  ;;  %v1545_v32 = vpop.f32.mrb[6].mxu0  ;;  %v666_v23 = vld [vmem:[#allocation2 + $0x208] sm:$0xff] }
 0x25b   : > { %v1968_v31 = vadd.f32 %v1656_v24, %v620_v14  ;;  %v1658_v33 = vpop.f32.mrb[6].mxu1  ;;  %2093 = vst [vmem:[#allocation2 + $0x80] sm:$0xff] %v1965_v21  ;;  %v1973_v29 = vadd.f32 %v1545_v32, %v625_v19  ;;  %v1547_v35 = vpop.f32.mrb[7].mxu0  ;;  %v665_v21 = vld [vmem:[#allocation2 + $0x200] sm:$0xff]  ;;  %v668_v24 = vld [vmem:[#allocation2 + $0x218] sm:$0xff] }
 0x25c   : > { %2095 = vst [vmem:[#allocation2 + $0x90] sm:$0xff] %v1967_v22  ;;  %v1975_v34 = vadd.f32 %v1658_v33, %v627_v20  ;;  %v1660_v37 = vpop.f32.mrb[7].mxu1  ;;  %2094 = vst [vmem:[#allocation2 + $0x88] sm:$0xff] %v1966_v30  ;;  %v1974_v38 = vadd.f32 %v1547_v35, %v626_v26  ;;  %v667_v22 = vld [vmem:[#allocation2 + $0x210] sm:$0xff]  ;;  %v673_v30 = vld [vmem:[#allocation2 + $0x240] sm:$0xff] }
 0x25d   : > { %2096 = vst [vmem:[#allocation2 + $0x98] sm:$0xff] %v1968_v31  ;;  %v1976_v40 = vadd.f32 %v1660_v37, %v628_v27  ;;  %2101 = vst [vmem:[#allocation2 + $0xc0] sm:$0xff] %v1973_v29  ;;  %v675_v31 = vld [vmem:[#allocation2 + $0x250] sm:$0xff]  ;;  %v674_v35 = vld [vmem:[#allocation2 + $0x248] sm:$0xff] }
 0x25e   : > { %2103 = vst [vmem:[#allocation2 + $0xd0] sm:$0xff] %v1975_v34  ;;  %2102 = vst [vmem:[#allocation2 + $0xc8] sm:$0xff] %v1974_v38  ;;  %v676_v37 = vld [vmem:[#allocation2 + $0x258] sm:$0xff] }
 0x25f   : > { %2104 = vst [vmem:[#allocation2 + $0xd8] sm:$0xff] %v1976_v40 }
 0x260   : > { %v1551_v45 = vpop.f32.mrb[8].mxu0 }
 0x261   : > { %v1664_v47 = vpop.f32.mrb[8].mxu1  ;;  %v1981_v51 = vadd.f32 %v1551_v45, %v633_v41  ;;  %v1553_v53 = vpop.f32.mrb[9].mxu0 }
 0x262   : > { %v1983_v52 = vadd.f32 %v1664_v47, %v635_v42  ;;  %v1666_v54 = vpop.f32.mrb[9].mxu1  ;;  %v1982_v58 = vadd.f32 %v1553_v53, %v634_v43  ;;  %v1555_v8 = vpop.f32.mrb[10].mxu0  ;;  %v682_v53 = vld [vmem:[#allocation2 + $0x288] sm:$0xff] }
 0x263   : > { %v1984_v60 = vadd.f32 %v1666_v54, %v636_v44  ;;  %v1668_v15 = vpop.f32.mrb[10].mxu1  ;;  %2109 = vst [vmem:[#allocation2 + $0x100] sm:$0xff] %v1981_v51  ;;  %v1989_v18 = vadd.f32 %v1555_v8, %v641_v48  ;;  %v1557_v28 = vpop.f32.mrb[11].mxu0  ;;  %v681_v51 = vld [vmem:[#allocation2 + $0x280] sm:$0xff]  ;;  %v684_v54 = vld [vmem:[#allocation2 + $0x298] sm:$0xff] }
 0x264   : > { %2111 = vst [vmem:[#allocation2 + $0x110] sm:$0xff] %v1983_v52  ;;  %v1991_v25 = vadd.f32 %v1668_v15, %v643_v50  ;;  %v1670_v36 = vpop.f32.mrb[11].mxu1  ;;  %2110 = vst [vmem:[#allocation2 + $0x108] sm:$0xff] %v1982_v58  ;;  %v1990_v39 = vadd.f32 %v1557_v28, %v642_v55  ;;  %v683_v52 = vld [vmem:[#allocation2 + $0x290] sm:$0xff]  ;;  %v689_v58 = vld [vmem:[#allocation2 + $0x2c0] sm:$0xff] }
 0x265   : > { %2112 = vst [vmem:[#allocation2 + $0x118] sm:$0xff] %v1984_v60  ;;  %v1992_v46 = vadd.f32 %v1670_v36, %v644_v57  ;;  %2117 = vst [vmem:[#allocation2 + $0x140] sm:$0xff] %v1989_v18  ;;  %v691_v60 = vld [vmem:[#allocation2 + $0x2d0] sm:$0xff]  ;;  %v690_v28 = vld [vmem:[#allocation2 + $0x2c8] sm:$0xff] }
 0x266   : > { %2119 = vst [vmem:[#allocation2 + $0x150] sm:$0xff] %v1991_v25  ;;  %2118 = vst [vmem:[#allocation2 + $0x148] sm:$0xff] %v1990_v39  ;;  %v692_v36 = vld [vmem:[#allocation2 + $0x2d8] sm:$0xff] }
 0x267   : > { %2120 = vst [vmem:[#allocation2 + $0x158] sm:$0xff] %v1992_v46 }
 0x268   : > { %v1561_v62 = vpop.f32.mrb[12].mxu0 }
 0x269   : > { %v1674_v63 = vpop.f32.mrb[12].mxu1  ;;  %v1997_v2 = vadd.f32 %v1561_v62, %v649_v49  ;;  %v1563_v4 = vpop.f32.mrb[13].mxu0 }
 0x26a   : > { %v1999_v3 = vadd.f32 %v1674_v63, %v651_v56  ;;  %v1676_v5 = vpop.f32.mrb[13].mxu1  ;;  %v1998_v9 = vadd.f32 %v1563_v4, %v650_v59  ;;  %v1565_v11 = vpop.f32.mrb[14].mxu0  ;;  %v698_v4 = vld [vmem:[#allocation2 + $0x308] sm:$0xff] }
 0x26b   : > { %v2000_v10 = vadd.f32 %v1676_v5, %v652_v61  ;;  %v1678_v12 = vpop.f32.mrb[14].mxu1  ;;  %2125 = vst [vmem:[#allocation2 + $0x180] sm:$0xff] %v1997_v2  ;;  %v2005_v13 = vadd.f32 %v1565_v11, %v657_v0  ;;  %v1567_v16 = vpop.f32.mrb[15].mxu0  ;;  %v697_v2 = vld [vmem:[#allocation2 + $0x300] sm:$0xff]  ;;  %v700_v5 = vld [vmem:[#allocation2 + $0x318] sm:$0xff] }
 0x26c   : > { %2127 = vst [vmem:[#allocation2 + $0x190] sm:$0xff] %v1999_v3  ;;  %v2007_v14 = vadd.f32 %v1678_v12, %v659_v1  ;;  %v1680_v17 = vpop.f32.mrb[15].mxu1  ;;  %2126 = vst [vmem:[#allocation2 + $0x188] sm:$0xff] %v1998_v9  ;;  %v2006_v19 = vadd.f32 %v1567_v16, %v658_v6  ;;  %v699_v3 = vld [vmem:[#allocation2 + $0x310] sm:$0xff]  ;;  %v705_v9 = vld [vmem:[#allocation2 + $0x340] sm:$0xff] }
 0x26d   : > { %2128 = vst [vmem:[#allocation2 + $0x198] sm:$0xff] %v2000_v10  ;;  %v2008_v20 = vadd.f32 %v1680_v17, %v660_v7  ;;  %2133 = vst [vmem:[#allocation2 + $0x1c0] sm:$0xff] %v2005_v13  ;;  %v707_v10 = vld [vmem:[#allocation2 + $0x350] sm:$0xff]  ;;  %v706_v16 = vld [vmem:[#allocation2 + $0x348] sm:$0xff] }
 0x26e   : > { %2135 = vst [vmem:[#allocation2 + $0x1d0] sm:$0xff] %v2007_v14  ;;  %2134 = vst [vmem:[#allocation2 + $0x1c8] sm:$0xff] %v2006_v19  ;;  %v708_v17 = vld [vmem:[#allocation2 + $0x358] sm:$0xff] }
 0x26f   : > { %2136 = vst [vmem:[#allocation2 + $0x1d8] sm:$0xff] %v2008_v20 }
 0x270   : > { %v1571_v26 = vpop.f32.mrb[16].mxu0 }
 0x271   : > { %v1684_v27 = vpop.f32.mrb[16].mxu1  ;;  %v2013_v32 = vadd.f32 %v1571_v26, %v665_v21  ;;  %v1573_v29 = vpop.f32.mrb[17].mxu0 }
 0x272   : > { %v2015_v33 = vadd.f32 %v1684_v27, %v667_v22  ;;  %v1686_v34 = vpop.f32.mrb[17].mxu1  ;;  %v2014_v38 = vadd.f32 %v1573_v29, %v666_v23  ;;  %v1575_v41 = vpop.f32.mrb[18].mxu0  ;;  %v714_v29 = vld [vmem:[#allocation2 + $0x388] sm:$0xff] }
 0x273   : > { %v2016_v40 = vadd.f32 %v1686_v34, %v668_v24  ;;  %v1688_v42 = vpop.f32.mrb[18].mxu1  ;;  %2141 = vst [vmem:[#allocation2 + $0x200] sm:$0xff] %v2013_v32  ;;  %v2021_v43 = vadd.f32 %v1575_v41, %v673_v30  ;;  %v1577_v45 = vpop.f32.mrb[19].mxu0  ;;  %v713_v32 = vld [vmem:[#allocation2 + $0x380] sm:$0xff]  ;;  %v716_v34 = vld [vmem:[#allocation2 + $0x398] sm:$0xff] }
 0x274   : > { %2143 = vst [vmem:[#allocation2 + $0x210] sm:$0xff] %v2015_v33  ;;  %v2023_v44 = vadd.f32 %v1688_v42, %v675_v31  ;;  %v1690_v47 = vpop.f32.mrb[19].mxu1  ;;  %2142 = vst [vmem:[#allocation2 + $0x208] sm:$0xff] %v2014_v38  ;;  %v2022_v48 = vadd.f32 %v1577_v45, %v674_v35  ;;  %v715_v33 = vld [vmem:[#allocation2 + $0x390] sm:$0xff]  ;;  %v721_v38 = vld [vmem:[#allocation2 + $0x3c0] sm:$0xff] }
 0x275   : > { %2144 = vst [vmem:[#allocation2 + $0x218] sm:$0xff] %v2016_v40  ;;  %v2024_v50 = vadd.f32 %v1690_v47, %v676_v37  ;;  %2149 = vst [vmem:[#allocation2 + $0x240] sm:$0xff] %v2021_v43  ;;  %v723_v40 = vld [vmem:[#allocation2 + $0x3d0] sm:$0xff]  ;;  %v722_v45 = vld [vmem:[#allocation2 + $0x3c8] sm:$0xff] }
 0x276   : > { %2151 = vst [vmem:[#allocation2 + $0x250] sm:$0xff] %v2023_v44  ;;  %2150 = vst [vmem:[#allocation2 + $0x248] sm:$0xff] %v2022_v48  ;;  %v724_v47 = vld [vmem:[#allocation2 + $0x3d8] sm:$0xff] }
 0x277   : > { %2152 = vst [vmem:[#allocation2 + $0x258] sm:$0xff] %v2024_v50 }
 0x278   : > { %v1581_v55 = vpop.f32.mrb[20].mxu0 }
 0x279   : > { %v1694_v57 = vpop.f32.mrb[20].mxu1  ;;  %v2029_v8 = vadd.f32 %v1581_v55, %v681_v51  ;;  %v1583_v18 = vpop.f32.mrb[21].mxu0 }
 0x27a   : > { %v2031_v15 = vadd.f32 %v1694_v57, %v683_v52  ;;  %v1696_v25 = vpop.f32.mrb[21].mxu1  ;;  %v2030_v39 = vadd.f32 %v1583_v18, %v682_v53  ;;  %v1585_v49 = vpop.f32.mrb[22].mxu0  ;;  %v606_v18 = vld [vmem:[#allocation2 + $0x28] sm:$0xff] }
 0x27b   : > { %v2032_v46 = vadd.f32 %v1696_v25, %v684_v54  ;;  %v1698_v56 = vpop.f32.mrb[22].mxu1  ;;  %2157 = vst [vmem:[#allocation2 + $0x280] sm:$0xff] %v2029_v8  ;;  %v2037_v59 = vadd.f32 %v1585_v49, %v689_v58  ;;  %v1587_v62 = vpop.f32.mrb[23].mxu0  ;;  %v605_v8 = vld [vmem:[#allocation2 + $0x20] sm:$0xff]  ;;  %v608_v25 = vld [vmem:[#allocation2 + $0x38] sm:$0xff] }
 0x27c   : > { %2159 = vst [vmem:[#allocation2 + $0x290] sm:$0xff] %v2031_v15  ;;  %v2039_v61 = vadd.f32 %v1698_v56, %v691_v60  ;;  %v1700_v63 = vpop.f32.mrb[23].mxu1  ;;  %2158 = vst [vmem:[#allocation2 + $0x288] sm:$0xff] %v2030_v39  ;;  %v2038_v0 = vadd.f32 %v1587_v62, %v690_v28  ;;  %v607_v15 = vld [vmem:[#allocation2 + $0x30] sm:$0xff]  ;;  %v613_v39 = vld [vmem:[#allocation2 + $0x60] sm:$0xff] }
 0x27d   : > { %2160 = vst [vmem:[#allocation2 + $0x298] sm:$0xff] %v2032_v46  ;;  %v2040_v1 = vadd.f32 %v1700_v63, %v692_v36  ;;  %2165 = vst [vmem:[#allocation2 + $0x2c0] sm:$0xff] %v2037_v59  ;;  %v615_v46 = vld [vmem:[#allocation2 + $0x70] sm:$0xff]  ;;  %v614_v62 = vld [vmem:[#allocation2 + $0x68] sm:$0xff] }
 0x27e   : > { %2167 = vst [vmem:[#allocation2 + $0x2d0] sm:$0xff] %v2039_v61  ;;  %2166 = vst [vmem:[#allocation2 + $0x2c8] sm:$0xff] %v2038_v0  ;;  %v616_v63 = vld [vmem:[#allocation2 + $0x78] sm:$0xff] }
 0x27f   : > { %2168 = vst [vmem:[#allocation2 + $0x2d8] sm:$0xff] %v2040_v1 }
 0x280   : > { %v1591_v6 = vpop.f32.mrb[24].mxu0 }
 0x281   : > { %v1704_v7 = vpop.f32.mrb[24].mxu1  ;;  %v2045_v11 = vadd.f32 %v1591_v6, %v697_v2  ;;  %v1593_v13 = vpop.f32.mrb[25].mxu0 }
 0x282   : > { %v2047_v12 = vadd.f32 %v1704_v7, %v699_v3  ;;  %v1706_v14 = vpop.f32.mrb[25].mxu1  ;;  %v2046_v19 = vadd.f32 %v1593_v13, %v698_v4  ;;  %v1595_v21 = vpop.f32.mrb[26].mxu0  ;;  %v622_v13 = vld [vmem:[#allocation2 + $0xa8] sm:$0xff] }
 0x283   : > { %v2048_v20 = vadd.f32 %v1706_v14, %v700_v5  ;;  %v1708_v22 = vpop.f32.mrb[26].mxu1  ;;  %2173 = vst [vmem:[#allocation2 + $0x300] sm:$0xff] %v2045_v11  ;;  %v2053_v23 = vadd.f32 %v1595_v21, %v705_v9  ;;  %v1597_v26 = vpop.f32.mrb[27].mxu0  ;;  %v621_v11 = vld [vmem:[#allocation2 + $0xa0] sm:$0xff]  ;;  %v624_v14 = vld [vmem:[#allocation2 + $0xb8] sm:$0xff] }
 0x284   : > { %2175 = vst [vmem:[#allocation2 + $0x310] sm:$0xff] %v2047_v12  ;;  %v2055_v24 = vadd.f32 %v1708_v22, %v707_v10  ;;  %v1710_v27 = vpop.f32.mrb[27].mxu1  ;;  %2174 = vst [vmem:[#allocation2 + $0x308] sm:$0xff] %v2046_v19  ;;  %v2054_v30 = vadd.f32 %v1597_v26, %v706_v16  ;;  %v623_v12 = vld [vmem:[#allocation2 + $0xb0] sm:$0xff]  ;;  %v629_v19 = vld [vmem:[#allocation2 + $0xe0] sm:$0xff] }
 0x285   : > { %2176 = vst [vmem:[#allocation2 + $0x318] sm:$0xff] %v2048_v20  ;;  %v2056_v31 = vadd.f32 %v1710_v27, %v708_v17  ;;  %2181 = vst [vmem:[#allocation2 + $0x340] sm:$0xff] %v2053_v23  ;;  %v631_v20 = vld [vmem:[#allocation2 + $0xf0] sm:$0xff]  ;;  %v630_v26 = vld [vmem:[#allocation2 + $0xe8] sm:$0xff] }
 0x286   : > { %2183 = vst [vmem:[#allocation2 + $0x350] sm:$0xff] %v2055_v24  ;;  %2182 = vst [vmem:[#allocation2 + $0x348] sm:$0xff] %v2054_v30  ;;  %v632_v27 = vld [vmem:[#allocation2 + $0xf8] sm:$0xff] }
 0x287   : > { %2184 = vst [vmem:[#allocation2 + $0x358] sm:$0xff] %v2056_v31 }
 0x288   : > { %v1601_v35 = vpop.f32.mrb[28].mxu0 }
 0x289   : > { %v1714_v37 = vpop.f32.mrb[28].mxu1  ;;  %v2061_v41 = vadd.f32 %v1601_v35, %v713_v32  ;;  %v1603_v43 = vpop.f32.mrb[29].mxu0 }
 0x28a   : > { %v2063_v42 = vadd.f32 %v1714_v37, %v715_v33  ;;  %v1716_v44 = vpop.f32.mrb[29].mxu1  ;;  %v2062_v48 = vadd.f32 %v1603_v43, %v714_v29  ;;  %v1605_v51 = vpop.f32.mrb[30].mxu0  ;;  %v638_v43 = vld [vmem:[#allocation2 + $0x128] sm:$0xff] }
 0x28b   : > { %v2064_v50 = vadd.f32 %v1716_v44, %v716_v34  ;;  %v1718_v52 = vpop.f32.mrb[30].mxu1  ;;  %2189 = vst [vmem:[#allocation2 + $0x380] sm:$0xff] %v2061_v41  ;;  %v2069_v53 = vadd.f32 %v1605_v51, %v721_v38  ;;  %v1607_v55 = vpop.f32.mrb[31].mxu0  ;;  %v637_v41 = vld [vmem:[#allocation2 + $0x120] sm:$0xff]  ;;  %v640_v44 = vld [vmem:[#allocation2 + $0x138] sm:$0xff] }
 0x28c   : > { %2191 = vst [vmem:[#allocation2 + $0x390] sm:$0xff] %v2063_v42  ;;  %v2071_v54 = vadd.f32 %v1718_v52, %v723_v40  ;;  %v1720_v57 = vpop.f32.mrb[31].mxu1  ;;  %2190 = vst [vmem:[#allocation2 + $0x388] sm:$0xff] %v2062_v48  ;;  %v2070_v58 = vadd.f32 %v1607_v55, %v722_v45  ;;  %v639_v42 = vld [vmem:[#allocation2 + $0x130] sm:$0xff]  ;;  %v645_v48 = vld [vmem:[#allocation2 + $0x160] sm:$0xff] }
 0x28d   : > { %2192 = vst [vmem:[#allocation2 + $0x398] sm:$0xff] %v2064_v50  ;;  %v2072_v60 = vadd.f32 %v1720_v57, %v724_v47  ;;  %2197 = vst [vmem:[#allocation2 + $0x3c0] sm:$0xff] %v2069_v53  ;;  %v647_v50 = vld [vmem:[#allocation2 + $0x170] sm:$0xff]  ;;  %v646_v55 = vld [vmem:[#allocation2 + $0x168] sm:$0xff] }
 0x28e   : > { %2199 = vst [vmem:[#allocation2 + $0x3d0] sm:$0xff] %v2071_v54  ;;  %2198 = vst [vmem:[#allocation2 + $0x3c8] sm:$0xff] %v2070_v58  ;;  %v648_v57 = vld [vmem:[#allocation2 + $0x178] sm:$0xff] }
 0x28f   : > { %2200 = vst [vmem:[#allocation2 + $0x3d8] sm:$0xff] %v2072_v60 }
 0x2d0   : > { %v1757_v28 = vpop.f32.mrb[32].mxu0 }
 0x2d1   : > { %v1870_v36 = vpop.f32.mrb[32].mxu1  ;;  %v1953_v49 = vadd.f32 %v1757_v28, %v605_v8  ;;  %v1759_v59 = vpop.f32.mrb[33].mxu0 }
 0x2d2   : > { %v1955_v56 = vadd.f32 %v1870_v36, %v607_v15  ;;  %v1872_v61 = vpop.f32.mrb[33].mxu1  ;;  %v1954_v0 = vadd.f32 %v1759_v59, %v606_v18  ;;  %v1761_v2 = vpop.f32.mrb[34].mxu0  ;;  %v654_v59 = vld [vmem:[#allocation2 + $0x1a8] sm:$0xff] }
 0x2d3   : > { %v1956_v1 = vadd.f32 %v1872_v61, %v608_v25  ;;  %v1874_v3 = vpop.f32.mrb[34].mxu1  ;;  %2081 = vst [vmem:[#allocation2 + $0x20] sm:$0xff] %v1953_v49  ;;  %v1961_v4 = vadd.f32 %v1761_v2, %v613_v39  ;;  %v1763_v6 = vpop.f32.mrb[35].mxu0  ;;  %v653_v49 = vld [vmem:[#allocation2 + $0x1a0] sm:$0xff]  ;;  %v656_v61 = vld [vmem:[#allocation2 + $0x1b8] sm:$0xff] }
 0x2d4   : > { %2083 = vst [vmem:[#allocation2 + $0x30] sm:$0xff] %v1955_v56  ;;  %v1963_v5 = vadd.f32 %v1874_v3, %v615_v46  ;;  %v1876_v7 = vpop.f32.mrb[35].mxu1  ;;  %2082 = vst [vmem:[#allocation2 + $0x28] sm:$0xff] %v1954_v0  ;;  %v1962_v9 = vadd.f32 %v1763_v6, %v614_v62  ;;  %v655_v56 = vld [vmem:[#allocation2 + $0x1b0] sm:$0xff]  ;;  %v661_v0 = vld [vmem:[#allocation2 + $0x1e0] sm:$0xff] }
 0x2d5   : > { %2084 = vst [vmem:[#allocation2 + $0x38] sm:$0xff] %v1956_v1  ;;  %v1964_v10 = vadd.f32 %v1876_v7, %v616_v63  ;;  %2089 = vst [vmem:[#allocation2 + $0x60] sm:$0xff] %v1961_v4  ;;  %v663_v1 = vld [vmem:[#allocation2 + $0x1f0] sm:$0xff]  ;;  %v662_v6 = vld [vmem:[#allocation2 + $0x1e8] sm:$0xff] }
 0x2d6   : > { %2091 = vst [vmem:[#allocation2 + $0x70] sm:$0xff] %v1963_v5  ;;  %2090 = vst [vmem:[#allocation2 + $0x68] sm:$0xff] %v1962_v9  ;;  %v664_v7 = vld [vmem:[#allocation2 + $0x1f8] sm:$0xff] }
 0x2d7   : > { %2092 = vst [vmem:[#allocation2 + $0x78] sm:$0xff] %v1964_v10 }
 0x2d8   : > { %v1767_v16 = vpop.f32.mrb[36].mxu0 }
 0x2d9   : > { %v1880_v17 = vpop.f32.mrb[36].mxu1  ;;  %v1969_v21 = vadd.f32 %v1767_v16, %v621_v11  ;;  %v1769_v23 = vpop.f32.mrb[37].mxu0 }
 0x2da   : > { %v1971_v22 = vadd.f32 %v1880_v17, %v623_v12  ;;  %v1882_v24 = vpop.f32.mrb[37].mxu1  ;;  %v1970_v30 = vadd.f32 %v1769_v23, %v622_v13  ;;  %v1771_v32 = vpop.f32.mrb[38].mxu0  ;;  %v670_v23 = vld [vmem:[#allocation2 + $0x228] sm:$0xff] }
 0x2db   : > { %v1972_v31 = vadd.f32 %v1882_v24, %v624_v14  ;;  %v1884_v33 = vpop.f32.mrb[38].mxu1  ;;  %2097 = vst [vmem:[#allocation2 + $0xa0] sm:$0xff] %v1969_v21  ;;  %v1977_v29 = vadd.f32 %v1771_v32, %v629_v19  ;;  %v1773_v35 = vpop.f32.mrb[39].mxu0  ;;  %v669_v21 = vld [vmem:[#allocation2 + $0x220] sm:$0xff]  ;;  %v672_v24 = vld [vmem:[#allocation2 + $0x238] sm:$0xff] }
 0x2dc   : > { %2099 = vst [vmem:[#allocation2 + $0xb0] sm:$0xff] %v1971_v22  ;;  %v1979_v34 = vadd.f32 %v1884_v33, %v631_v20  ;;  %v1886_v37 = vpop.f32.mrb[39].mxu1  ;;  %2098 = vst [vmem:[#allocation2 + $0xa8] sm:$0xff] %v1970_v30  ;;  %v1978_v38 = vadd.f32 %v1773_v35, %v630_v26  ;;  %v671_v22 = vld [vmem:[#allocation2 + $0x230] sm:$0xff]  ;;  %v677_v30 = vld [vmem:[#allocation2 + $0x260] sm:$0xff] }
 0x2dd   : > { %2100 = vst [vmem:[#allocation2 + $0xb8] sm:$0xff] %v1972_v31  ;;  %v1980_v40 = vadd.f32 %v1886_v37, %v632_v27  ;;  %2105 = vst [vmem:[#allocation2 + $0xe0] sm:$0xff] %v1977_v29  ;;  %v679_v31 = vld [vmem:[#allocation2 + $0x270] sm:$0xff]  ;;  %v678_v35 = vld [vmem:[#allocation2 + $0x268] sm:$0xff] }
 0x2de   : > { %2107 = vst [vmem:[#allocation2 + $0xf0] sm:$0xff] %v1979_v34  ;;  %2106 = vst [vmem:[#allocation2 + $0xe8] sm:$0xff] %v1978_v38  ;;  %v680_v37 = vld [vmem:[#allocation2 + $0x278] sm:$0xff] }
 0x2df   : > { %2108 = vst [vmem:[#allocation2 + $0xf8] sm:$0xff] %v1980_v40 }
 0x2e0   : > { %v1777_v45 = vpop.f32.mrb[40].mxu0 }
 0x2e1   : > { %v1890_v47 = vpop.f32.mrb[40].mxu1  ;;  %v1985_v51 = vadd.f32 %v1777_v45, %v637_v41  ;;  %v1779_v53 = vpop.f32.mrb[41].mxu0 }
 0x2e2   : > { %v1987_v52 = vadd.f32 %v1890_v47, %v639_v42  ;;  %v1892_v54 = vpop.f32.mrb[41].mxu1  ;;  %v1986_v58 = vadd.f32 %v1779_v53, %v638_v43  ;;  %v1781_v8 = vpop.f32.mrb[42].mxu0  ;;  %v686_v53 = vld [vmem:[#allocation2 + $0x2a8] sm:$0xff] }
 0x2e3   : > { %v1988_v60 = vadd.f32 %v1892_v54, %v640_v44  ;;  %v1894_v15 = vpop.f32.mrb[42].mxu1  ;;  %2113 = vst [vmem:[#allocation2 + $0x120] sm:$0xff] %v1985_v51  ;;  %v1993_v18 = vadd.f32 %v1781_v8, %v645_v48  ;;  %v1783_v28 = vpop.f32.mrb[43].mxu0  ;;  %v685_v51 = vld [vmem:[#allocation2 + $0x2a0] sm:$0xff]  ;;  %v688_v54 = vld [vmem:[#allocation2 + $0x2b8] sm:$0xff] }
 0x2e4   : > { %2115 = vst [vmem:[#allocation2 + $0x130] sm:$0xff] %v1987_v52  ;;  %v1995_v25 = vadd.f32 %v1894_v15, %v647_v50  ;;  %v1896_v36 = vpop.f32.mrb[43].mxu1  ;;  %2114 = vst [vmem:[#allocation2 + $0x128] sm:$0xff] %v1986_v58  ;;  %v1994_v39 = vadd.f32 %v1783_v28, %v646_v55  ;;  %v687_v52 = vld [vmem:[#allocation2 + $0x2b0] sm:$0xff]  ;;  %v693_v58 = vld [vmem:[#allocation2 + $0x2e0] sm:$0xff] }
 0x2e5   : > { %2116 = vst [vmem:[#allocation2 + $0x138] sm:$0xff] %v1988_v60  ;;  %v1996_v46 = vadd.f32 %v1896_v36, %v648_v57  ;;  %2121 = vst [vmem:[#allocation2 + $0x160] sm:$0xff] %v1993_v18  ;;  %v695_v60 = vld [vmem:[#allocation2 + $0x2f0] sm:$0xff]  ;;  %v694_v28 = vld [vmem:[#allocation2 + $0x2e8] sm:$0xff] }
 0x2e6   : > { %2123 = vst [vmem:[#allocation2 + $0x170] sm:$0xff] %v1995_v25  ;;  %2122 = vst [vmem:[#allocation2 + $0x168] sm:$0xff] %v1994_v39  ;;  %v696_v36 = vld [vmem:[#allocation2 + $0x2f8] sm:$0xff] }
 0x2e7   : > { %2124 = vst [vmem:[#allocation2 + $0x178] sm:$0xff] %v1996_v46 }
 0x2e8   : > { %v1787_v62 = vpop.f32.mrb[44].mxu0 }
 0x2e9   : > { %v1900_v63 = vpop.f32.mrb[44].mxu1  ;;  %v2001_v2 = vadd.f32 %v1787_v62, %v653_v49  ;;  %v1789_v4 = vpop.f32.mrb[45].mxu0 }
 0x2ea   : > { %v2003_v3 = vadd.f32 %v1900_v63, %v655_v56  ;;  %v1902_v5 = vpop.f32.mrb[45].mxu1  ;;  %v2002_v9 = vadd.f32 %v1789_v4, %v654_v59  ;;  %v1791_v11 = vpop.f32.mrb[46].mxu0  ;;  %v702_v4 = vld [vmem:[#allocation2 + $0x328] sm:$0xff] }
 0x2eb   : > { %v2004_v10 = vadd.f32 %v1902_v5, %v656_v61  ;;  %v1904_v12 = vpop.f32.mrb[46].mxu1  ;;  %2129 = vst [vmem:[#allocation2 + $0x1a0] sm:$0xff] %v2001_v2  ;;  %v2009_v13 = vadd.f32 %v1791_v11, %v661_v0  ;;  %v1793_v16 = vpop.f32.mrb[47].mxu0  ;;  %v701_v2 = vld [vmem:[#allocation2 + $0x320] sm:$0xff]  ;;  %v704_v5 = vld [vmem:[#allocation2 + $0x338] sm:$0xff] }
 0x2ec   : > { %2131 = vst [vmem:[#allocation2 + $0x1b0] sm:$0xff] %v2003_v3  ;;  %v2011_v14 = vadd.f32 %v1904_v12, %v663_v1  ;;  %v1906_v17 = vpop.f32.mrb[47].mxu1  ;;  %2130 = vst [vmem:[#allocation2 + $0x1a8] sm:$0xff] %v2002_v9  ;;  %v2010_v19 = vadd.f32 %v1793_v16, %v662_v6  ;;  %v703_v3 = vld [vmem:[#allocation2 + $0x330] sm:$0xff]  ;;  %v709_v9 = vld [vmem:[#allocation2 + $0x360] sm:$0xff] }
 0x2ed   : > { %2132 = vst [vmem:[#allocation2 + $0x1b8] sm:$0xff] %v2004_v10  ;;  %v2012_v20 = vadd.f32 %v1906_v17, %v664_v7  ;;  %2137 = vst [vmem:[#allocation2 + $0x1e0] sm:$0xff] %v2009_v13  ;;  %v711_v10 = vld [vmem:[#allocation2 + $0x370] sm:$0xff]  ;;  %v710_v16 = vld [vmem:[#allocation2 + $0x368] sm:$0xff] }
 0x2ee   : > { %2139 = vst [vmem:[#allocation2 + $0x1f0] sm:$0xff] %v2011_v14  ;;  %2138 = vst [vmem:[#allocation2 + $0x1e8] sm:$0xff] %v2010_v19  ;;  %v712_v17 = vld [vmem:[#allocation2 + $0x378] sm:$0xff] }
 0x2ef   : > { %2140 = vst [vmem:[#allocation2 + $0x1f8] sm:$0xff] %v2012_v20 }
 0x2f0   : > { %v1797_v26 = vpop.f32.mrb[48].mxu0 }
 0x2f1   : > { %v1910_v27 = vpop.f32.mrb[48].mxu1  ;;  %v2017_v32 = vadd.f32 %v1797_v26, %v669_v21  ;;  %v1799_v29 = vpop.f32.mrb[49].mxu0 }
 0x2f2   : > { %v2019_v33 = vadd.f32 %v1910_v27, %v671_v22  ;;  %v1912_v34 = vpop.f32.mrb[49].mxu1  ;;  %v2018_v38 = vadd.f32 %v1799_v29, %v670_v23  ;;  %v1801_v41 = vpop.f32.mrb[50].mxu0  ;;  %v718_v29 = vld [vmem:[#allocation2 + $0x3a8] sm:$0xff] }
 0x2f3   : > { %v2020_v40 = vadd.f32 %v1912_v34, %v672_v24  ;;  %v1914_v42 = vpop.f32.mrb[50].mxu1  ;;  %2145 = vst [vmem:[#allocation2 + $0x220] sm:$0xff] %v2017_v32  ;;  %v2025_v43 = vadd.f32 %v1801_v41, %v677_v30  ;;  %v1803_v45 = vpop.f32.mrb[51].mxu0  ;;  %v717_v32 = vld [vmem:[#allocation2 + $0x3a0] sm:$0xff]  ;;  %v720_v34 = vld [vmem:[#allocation2 + $0x3b8] sm:$0xff] }
 0x2f4   : > { %2147 = vst [vmem:[#allocation2 + $0x230] sm:$0xff] %v2019_v33  ;;  %v2027_v44 = vadd.f32 %v1914_v42, %v679_v31  ;;  %v1916_v47 = vpop.f32.mrb[51].mxu1  ;;  %2146 = vst [vmem:[#allocation2 + $0x228] sm:$0xff] %v2018_v38  ;;  %v2026_v48 = vadd.f32 %v1803_v45, %v678_v35  ;;  %v719_v33 = vld [vmem:[#allocation2 + $0x3b0] sm:$0xff]  ;;  %v725_v38 = vld [vmem:[#allocation2 + $0x3e0] sm:$0xff] }
 0x2f5   : > { %2148 = vst [vmem:[#allocation2 + $0x238] sm:$0xff] %v2020_v40  ;;  %v2028_v50 = vadd.f32 %v1916_v47, %v680_v37  ;;  %2153 = vst [vmem:[#allocation2 + $0x260] sm:$0xff] %v2025_v43  ;;  %v727_v40 = vld [vmem:[#allocation2 + $0x3f0] sm:$0xff]  ;;  %v726_v45 = vld [vmem:[#allocation2 + $0x3e8] sm:$0xff] }
 0x2f6   : > { %2155 = vst [vmem:[#allocation2 + $0x270] sm:$0xff] %v2027_v44  ;;  %2154 = vst [vmem:[#allocation2 + $0x268] sm:$0xff] %v2026_v48  ;;  %v728_v47 = vld [vmem:[#allocation2 + $0x3f8] sm:$0xff] }
 0x2f7   : > { %2156 = vst [vmem:[#allocation2 + $0x278] sm:$0xff] %v2028_v50 }
 0x2f8   : > { %v1807_v55 = vpop.f32.mrb[52].mxu0 }
 0x2f9   : > { %v1920_v57 = vpop.f32.mrb[52].mxu1  ;;  %v2033_v8 = vadd.f32 %v1807_v55, %v685_v51  ;;  %v1809_v18 = vpop.f32.mrb[53].mxu0 }
 0x2fa   : > { %v2035_v15 = vadd.f32 %v1920_v57, %v687_v52  ;;  %v1922_v25 = vpop.f32.mrb[53].mxu1  ;;  %v2034_v39 = vadd.f32 %v1809_v18, %v686_v53  ;;  %v1811_v49 = vpop.f32.mrb[54].mxu0 }
 0x2fb   : > { %v2036_v46 = vadd.f32 %v1922_v25, %v688_v54  ;;  %v1924_v56 = vpop.f32.mrb[54].mxu1  ;;  %2161 = vst [vmem:[#allocation2 + $0x2a0] sm:$0xff] %v2033_v8  ;;  %v2041_v59 = vadd.f32 %v1811_v49, %v693_v58  ;;  %v1813_v62 = vpop.f32.mrb[55].mxu0 }
 0x2fc   : > { %2163 = vst [vmem:[#allocation2 + $0x2b0] sm:$0xff] %v2035_v15  ;;  %v2043_v61 = vadd.f32 %v1924_v56, %v695_v60  ;;  %v1926_v63 = vpop.f32.mrb[55].mxu1  ;;  %2162 = vst [vmem:[#allocation2 + $0x2a8] sm:$0xff] %v2034_v39  ;;  %v2042_v0 = vadd.f32 %v1813_v62, %v694_v28 }
 0x2fd   : > { %2164 = vst [vmem:[#allocation2 + $0x2b8] sm:$0xff] %v2036_v46  ;;  %v2044_v1 = vadd.f32 %v1926_v63, %v696_v36  ;;  %2169 = vst [vmem:[#allocation2 + $0x2e0] sm:$0xff] %v2041_v59 }
 0x2fe   : > { %2171 = vst [vmem:[#allocation2 + $0x2f0] sm:$0xff] %v2043_v61  ;;  %2170 = vst [vmem:[#allocation2 + $0x2e8] sm:$0xff] %v2042_v0 }
 0x2ff   : > { %2172 = vst [vmem:[#allocation2 + $0x2f8] sm:$0xff] %v2044_v1 }
 0x300   : > { %v1817_v6 = vpop.f32.mrb[56].mxu0 }
 0x301   : > { %v1930_v7 = vpop.f32.mrb[56].mxu1  ;;  %v2049_v11 = vadd.f32 %v1817_v6, %v701_v2  ;;  %v1819_v13 = vpop.f32.mrb[57].mxu0 }
 0x302   : > { %v2051_v12 = vadd.f32 %v1930_v7, %v703_v3  ;;  %v1932_v14 = vpop.f32.mrb[57].mxu1  ;;  %v2050_v19 = vadd.f32 %v1819_v13, %v702_v4  ;;  %v1821_v21 = vpop.f32.mrb[58].mxu0 }
 0x303   : > { %v2052_v20 = vadd.f32 %v1932_v14, %v704_v5  ;;  %v1934_v22 = vpop.f32.mrb[58].mxu1  ;;  %2177 = vst [vmem:[#allocation2 + $0x320] sm:$0xff] %v2049_v11  ;;  %v2057_v23 = vadd.f32 %v1821_v21, %v709_v9  ;;  %v1823_v26 = vpop.f32.mrb[59].mxu0 }
 0x304   : > { %2179 = vst [vmem:[#allocation2 + $0x330] sm:$0xff] %v2051_v12  ;;  %v2059_v24 = vadd.f32 %v1934_v22, %v711_v10  ;;  %v1936_v27 = vpop.f32.mrb[59].mxu1  ;;  %2178 = vst [vmem:[#allocation2 + $0x328] sm:$0xff] %v2050_v19  ;;  %v2058_v30 = vadd.f32 %v1823_v26, %v710_v16 }
 0x305   : > { %2180 = vst [vmem:[#allocation2 + $0x338] sm:$0xff] %v2052_v20  ;;  %v2060_v31 = vadd.f32 %v1936_v27, %v712_v17  ;;  %2185 = vst [vmem:[#allocation2 + $0x360] sm:$0xff] %v2057_v23 }
 0x306   : > { %2187 = vst [vmem:[#allocation2 + $0x370] sm:$0xff] %v2059_v24  ;;  %2186 = vst [vmem:[#allocation2 + $0x368] sm:$0xff] %v2058_v30 }
 0x307   : > { %2188 = vst [vmem:[#allocation2 + $0x378] sm:$0xff] %v2060_v31 }
 0x308   : > { %v1827_v35 = vpop.f32.mrb[60].mxu0 }
 0x309   : > { %v1940_v37 = vpop.f32.mrb[60].mxu1  ;;  %v2065_v41 = vadd.f32 %v1827_v35, %v717_v32  ;;  %v1829_v43 = vpop.f32.mrb[61].mxu0  ;;  %2208 = sbr.rel (%p4281_p4) target bundleno = 1137 (0x471), region = 68 }
 0x30a   : > { %v2067_v42 = vadd.f32 %v1940_v37, %v719_v33  ;;  %v1942_v44 = vpop.f32.mrb[61].mxu1  ;;  %v2066_v48 = vadd.f32 %v1829_v43, %v718_v29  ;;  %v1831_v51 = vpop.f32.mrb[62].mxu0 }
 0x30b   : > { %v2068_v50 = vadd.f32 %v1942_v44, %v720_v34  ;;  %v1944_v52 = vpop.f32.mrb[62].mxu1  ;;  %2193 = vst [vmem:[#allocation2 + $0x3a0] sm:$0xff] %v2065_v41  ;;  %v2073_v53 = vadd.f32 %v1831_v51, %v725_v38  ;;  %v1833_v55 = vpop.f32.mrb[63].mxu0 }
 0x30c   : > { %2195 = vst [vmem:[#allocation2 + $0x3b0] sm:$0xff] %v2067_v42  ;;  %v2075_v54 = vadd.f32 %v1944_v52, %v727_v40  ;;  %v1946_v57 = vpop.f32.mrb[63].mxu1  ;;  %2194 = vst [vmem:[#allocation2 + $0x3a8] sm:$0xff] %v2066_v48  ;;  %v2074_v58 = vadd.f32 %v1833_v55, %v726_v45 }
 0x30d   : > { %2196 = vst [vmem:[#allocation2 + $0x3b8] sm:$0xff] %v2068_v50  ;;  %v2076_v60 = vadd.f32 %v1946_v57, %v728_v47  ;;  %2201 = vst [vmem:[#allocation2 + $0x3e0] sm:$0xff] %v2073_v53 }
 0x30e   : > { %2203 = vst [vmem:[#allocation2 + $0x3f0] sm:$0xff] %v2075_v54  ;;  %2202 = vst [vmem:[#allocation2 + $0x3e8] sm:$0xff] %v2074_v58 }
 0x30f   : > { %2204 = vst [vmem:[#allocation2 + $0x3f8] sm:$0xff] %v2076_v60 }
 0x310   : > { %v6175_v8 = vld [vmem:[#allocation11] sm:$0xff]   ;;  %v6177_v15 = vld [vmem:[#allocation11 + $0x8] sm:$0xff]   ;;  %v6185_v18 = vld [vmem:[#allocation11 + $0x10] sm:$0xff]  }
 0x311   : > { %4620 = vmatprep.subr.bf16.mxu0 %v6175_v8  ;;  %4652 = vmatprep.subr.bf16.mxu1 %v6175_v8  ;;  %v6189_v25 = vld [vmem:[#allocation2] sm:$0xff]  ;;  %v6193_v28 = vld [vmem:[#allocation11 + $0x18] sm:$0xff]   ;;  %v6199_v46 = vld [vmem:[#allocation2 + $0x8] sm:$0xff] }
 0x312   : > { %4621 = vmatpush3.bf16.msra.mxu0 %v6175_v8  ;;  %4653 = vmatpush3.bf16.msra.mxu1 %v6175_v8  ;;  %v6195_v36 = vld [vmem:[#allocation2 + $0x40] sm:$0xff]  ;;  %v6201_v49 = vld [vmem:[#allocation2 + $0x48] sm:$0xff]  ;;  %v6221_v62 = vld [vmem:[#allocation11 + $0x30] sm:$0xff]  }
 0x313   : > { %4622 = vmatprep.subr.bf16.mxu0 %v6177_v15  ;;  %4654 = vmatprep.subr.bf16.mxu1 %v6177_v15  ;;  %v2385_v39 = vpack.c.bf16 %v6195_v36, %v6189_v25  ;;  %v2666_v56 = vpack.c.bf16 %v6201_v49, %v6199_v46  ;;  %v6209_v59 = vld [vmem:[#allocation11 + $0x20] sm:$0xff]   ;;  %v6215_v61 = vld [vmem:[#allocation11 + $0x28] sm:$0xff]   ;;  %v6227_v63 = vld [vmem:[#allocation11 + $0x38] sm:$0xff]  }
 0x314   : > { %v6229_v0 = vld [vmem:[#allocation2 + $0x80] sm:$0xff]  ;;  %v6235_v2 = vld [vmem:[#allocation2 + $0x88] sm:$0xff]  ;;  %v6337_v48 = vld [vmem:[#allocation2 + $0x10] sm:$0xff] }
 0x315   : > { %4636 = vmatprep.mubr.bf16.mxu0 %v2385_v39  ;;  %4668 = vmatprep.mubr.bf16.mxu1 %v2666_v56  ;;  %v6233_v1 = vld [vmem:[#allocation2 + $0xc0] sm:$0xff]  ;;  %v6237_v3 = vld [vmem:[#allocation2 + $0xc8] sm:$0xff]  ;;  %6945 = vst [vmem:[#allocation38_spill] sm:$0xff] %v6337_v48  ;;  %v6343_v52 = vld [vmem:[#allocation2 + $0x50] sm:$0xff] }
 0x316   : > { %4623 = vmatpush3.bf16.msra.mxu0 %v6177_v15  ;;  %4655 = vmatpush3.bf16.msra.mxu1 %v6177_v15  ;;  %v6241_v4 = vld [vmem:[#allocation2 + $0x100] sm:$0xff]  ;;  %v2386_v5 = vpack.c.bf16 %v6233_v1, %v6229_v0  ;;  %v2667_v6 = vpack.c.bf16 %v6237_v3, %v6235_v2  ;;  %v6249_v9 = vld [vmem:[#allocation2 + $0x108] sm:$0xff]  ;;  %6946 = vst [vmem:[#allocation39_spill] sm:$0xff] %v6343_v52  ;;  %v6345_v53 = vld [vmem:[#allocation2 + $0x18] sm:$0xff] }
 0x317   : > { %4624 = vmatprep.subr.bf16.mxu0 %v6185_v18  ;;  %4656 = vmatprep.subr.bf16.mxu1 %v6185_v18  ;;  %v6247_v7 = vld [vmem:[#allocation2 + $0x140] sm:$0xff]  ;;  %v6251_v10 = vld [vmem:[#allocation2 + $0x148] sm:$0xff]  ;;  %6947 = vst [vmem:[#allocation40_spill] sm:$0xff] %v6345_v53  ;;  %v6347_v54 = vld [vmem:[#allocation2 + $0x58] sm:$0xff]  ;;  %v2899_v55 = vpack.c.bf16 %v6343_v52, %v6337_v48 }
 0x318   : > { %v2387_v11 = vpack.c.bf16 %v6247_v7, %v6241_v4  ;;  %v2668_v12 = vpack.c.bf16 %v6251_v10, %v6249_v9  ;;  %v6261_v13 = vld [vmem:[#allocation2 + $0x180] sm:$0xff]  ;;  %v6267_v16 = vld [vmem:[#allocation2 + $0x188] sm:$0xff]  ;;  %6948 = vst [vmem:[#allocation41_spill] sm:$0xff] %v6347_v54  ;;  %v3132_v57 = vpack.c.bf16 %v6347_v54, %v6345_v53  ;;  %v6357_v58 = vld [vmem:[#allocation2 + $0x90] sm:$0xff] }
 0x319   : > { %v6265_v14 = vld [vmem:[#allocation2 + $0x1c0] sm:$0xff]  ;;  %v6269_v17 = vld [vmem:[#allocation2 + $0x1c8] sm:$0xff]  ;;  %6949 = vst [vmem:[#allocation42_spill] sm:$0xff] %v6357_v58  ;;  %v6361_v60 = vld [vmem:[#allocation2 + $0xd0] sm:$0xff] }
 0x31a   : > { %4625 = vmatpush3.bf16.msra.mxu0 %v6185_v18  ;;  %4657 = vmatpush3.bf16.msra.mxu1 %v6185_v18  ;;  %v6273_v19 = vld [vmem:[#allocation2 + $0x200] sm:$0xff]  ;;  %v2388_v20 = vpack.c.bf16 %v6265_v14, %v6261_v13  ;;  %v2669_v21 = vpack.c.bf16 %v6269_v17, %v6267_v16  ;;  %v6281_v23 = vld [vmem:[#allocation2 + $0x208] sm:$0xff]  ;;  %6950 = vst [vmem:[#allocation43_spill] sm:$0xff] %v6361_v60  ;;  %v6363_v39 = vld [vmem:[#allocation2 + $0x98] sm:$0xff] }
 0x31b   : > { %4626 = vmatprep.subr.bf16.mxu0 %v6193_v28  ;;  %4658 = vmatprep.subr.bf16.mxu1 %v6193_v28  ;;  %6929 = vst [vmem:[#allocation22_spill] sm:$0xff] %v6273_v19  ;;  %v6279_v22 = vld [vmem:[#allocation2 + $0x240] sm:$0xff]  ;;  %6931 = vst [vmem:[#allocation24_spill] sm:$0xff] %v6281_v23  ;;  %v6283_v24 = vld [vmem:[#allocation2 + $0x248] sm:$0xff] }
 0x31c   : > { %6930 = vst [vmem:[#allocation23_spill] sm:$0xff] %v6279_v22  ;;  %6932 = vst [vmem:[#allocation25_spill] sm:$0xff] %v6283_v24  ;;  %v2389_v26 = vpack.c.bf16 %v6279_v22, %v6273_v19  ;;  %v2670_v27 = vpack.c.bf16 %v6283_v24, %v6281_v23  ;;  %v6293_v30 = vld [vmem:[#allocation2 + $0x280] sm:$0xff]  ;;  %v6299_v32 = vld [vmem:[#allocation2 + $0x288] sm:$0xff] }
 0x31d   : > { %6933 = vst [vmem:[#allocation26_spill] sm:$0xff] %v6293_v30  ;;  %v6297_v31 = vld [vmem:[#allocation2 + $0x2c0] sm:$0xff]  ;;  %6935 = vst [vmem:[#allocation28_spill] sm:$0xff] %v6299_v32  ;;  %v6301_v33 = vld [vmem:[#allocation2 + $0x2c8] sm:$0xff] }
 0x31e   : > { %4627 = vmatpush3.bf16.msra.mxu0 %v6193_v28  ;;  %4659 = vmatpush3.bf16.msra.mxu1 %v6193_v28  ;;  %6934 = vst [vmem:[#allocation27_spill] sm:$0xff] %v6297_v31  ;;  %6936 = vst [vmem:[#allocation29_spill] sm:$0xff] %v6301_v33  ;;  %v6305_v29 = vld [vmem:[#allocation2 + $0x300] sm:$0xff]  ;;  %v2390_v34 = vpack.c.bf16 %v6297_v31, %v6293_v30  ;;  %v2671_v35 = vpack.c.bf16 %v6301_v33, %v6299_v32  ;;  %v6313_v38 = vld [vmem:[#allocation2 + $0x308] sm:$0xff] }
 0x31f   : > { %4628 = vmatprep.subr.bf16.mxu0 %v6209_v59  ;;  %4660 = vmatprep.subr.bf16.mxu1 %v6209_v59  ;;  %6937 = vst [vmem:[#allocation30_spill] sm:$0xff] %v6305_v29  ;;  %v6311_v37 = vld [vmem:[#allocation2 + $0x340] sm:$0xff]  ;;  %6939 = vst [vmem:[#allocation32_spill] sm:$0xff] %v6313_v38  ;;  %v6315_v40 = vld [vmem:[#allocation2 + $0x348] sm:$0xff] }
 0x320   : > { %6938 = vst [vmem:[#allocation31_spill] sm:$0xff] %v6311_v37  ;;  %6940 = vst [vmem:[#allocation33_spill] sm:$0xff] %v6315_v40  ;;  %v2391_v41 = vpack.c.bf16 %v6311_v37, %v6305_v29  ;;  %v2672_v42 = vpack.c.bf16 %v6315_v40, %v6313_v38  ;;  %v6325_v43 = vld [vmem:[#allocation2 + $0x380] sm:$0xff]  ;;  %v6331_v45 = vld [vmem:[#allocation2 + $0x388] sm:$0xff] }
 0x321   : > { %6941 = vst [vmem:[#allocation34_spill] sm:$0xff] %v6325_v43  ;;  %v6329_v44 = vld [vmem:[#allocation2 + $0x3c0] sm:$0xff]  ;;  %6943 = vst [vmem:[#allocation36_spill] sm:$0xff] %v6331_v45  ;;  %v6333_v47 = vld [vmem:[#allocation2 + $0x3c8] sm:$0xff] }
 0x322   : > { %4629 = vmatpush3.bf16.msra.mxu0 %v6209_v59  ;;  %4661 = vmatpush3.bf16.msra.mxu1 %v6209_v59  ;;  %6942 = vst [vmem:[#allocation35_spill] sm:$0xff] %v6329_v44  ;;  %6944 = vst [vmem:[#allocation37_spill] sm:$0xff] %v6333_v47  ;;  %v2392_v50 = vpack.c.bf16 %v6329_v44, %v6325_v43  ;;  %v2673_v51 = vpack.c.bf16 %v6333_v47, %v6331_v45  ;;  %v6365_v56 = vld [vmem:[#allocation2 + $0xd8] sm:$0xff]  ;;  %v2311_v54 = vld [vmem:[#allocation2 + $0x330] sm:$0xff] }
 0x323   : > { %4630 = vmatprep.subr.bf16.mxu0 %v6215_v61  ;;  %4662 = vmatprep.subr.bf16.mxu1 %v6215_v61  ;;  %6951 = vst [vmem:[#allocation44_spill] sm:$0xff] %v6363_v39  ;;  %6952 = vst [vmem:[#allocation45_spill] sm:$0xff] %v6365_v56  ;;  %v2312_v52 = vld [vmem:[#allocation2 + $0x338] sm:$0xff]  ;;  %v2327_v53 = vld [vmem:[#allocation2 + $0x3b0] sm:$0xff] }
 0x324   : > { %v2328_v48 = vld [vmem:[#allocation2 + $0x3b8] sm:$0xff]  ;;  %v4520_v23 = vpack.c.bf16 %v2312_v52, %v2311_v54 }
 0x325   : > { %v4522_v32 = vpack.c.bf16 %v2328_v48, %v2327_v53 }
 0x326   : > { %4631 = vmatpush3.bf16.msra.mxu0 %v6215_v61  ;;  %4663 = vmatpush3.bf16.msra.mxu1 %v6215_v61  ;;  %3939 = vst [vmem:[#allocation15 + $0x60] sm:$0xff] %v4520_v23  ;;  %v6466_v23 = vld [vmem:[#allocation9] sm:$0xff] }
 0x327   : > { %4632 = vmatprep.subr.bf16.mxu0 %v6221_v62  ;;  %4664 = vmatprep.subr.bf16.mxu1 %v6221_v62  ;;  %3941 = vst [vmem:[#allocation15 + $0x70] sm:$0xff] %v4522_v32 }
 0x32a   : > { %4633 = vmatpush3.bf16.msra.mxu0 %v6221_v62  ;;  %4665 = vmatpush3.bf16.msra.mxu1 %v6221_v62 }
 0x32b   : > { %4634 = vmatprep.subr.bf16.mxu0 %v6227_v63  ;;  %4666 = vmatprep.subr.bf16.mxu1 %v6227_v63 }
 0x32e   : > { %4635 = vmatpush3.bf16.msra.mxu0 %v6227_v63  ;;  %4667 = vmatpush3.bf16.msra.mxu1 %v6227_v63 }
 0x32f   : > { %4684 = vmatprep.subr.bf16.mxu0 %v6175_v8  ;;  %4716 = vmatprep.subr.bf16.mxu1 %v6175_v8 }
 0x331   : > { %4637 = vmatmul.mubr.bf16.vlgmr.msra.gmra.mrb[0].mxu0 %v2386_v5  ;;  %4669 = vmatmul.mubr.bf16.vlgmr.msra.gmra.mrb[0].mxu1 %v2667_v6  ;;  %v6369_v5 = vld [vmem:[#allocation2 + $0x110] sm:$0xff]  ;;  %v2900_v6 = vpack.c.bf16 %v6361_v60, %v6357_v58  ;;  %v2320_v60 = vld [vmem:[#allocation2 + $0x378] sm:$0xff] }
 0x332   : > { %4685 = vmatpush3.bf16.msra.mxu0 %v6175_v8  ;;  %4717 = vmatpush3.bf16.msra.mxu1 %v6175_v8  ;;  %6953 = vst [vmem:[#allocation46_spill] sm:$0xff] %v6369_v5  ;;  %v2336_v58 = vld [vmem:[#allocation2 + $0x3f8] sm:$0xff] }
 0x333   : > { %4686 = vmatprep.subr.bf16.mxu0 %v6177_v15  ;;  %4718 = vmatprep.subr.bf16.mxu1 %v6177_v15 }
 0x334   : > { %4640 = vmatprep.mubr.bf16.mxu0 %v2387_v11  ;;  %4672 = vmatprep.mubr.bf16.mxu1 %v2668_v12  ;;  %v3133_v11 = vpack.c.bf16 %v6365_v56, %v6363_v39  ;;  %v6375_v12 = vld [vmem:[#allocation2 + $0x150] sm:$0xff] }
 0x335   : > { %6954 = vst [vmem:[#allocation47_spill] sm:$0xff] %v6375_v12  ;;  %v2319_v56 = vld [vmem:[#allocation2 + $0x370] sm:$0xff] }
 0x336   : > { %4687 = vmatpush3.bf16.msra.mxu0 %v6177_v15  ;;  %4719 = vmatpush3.bf16.msra.mxu1 %v6177_v15  ;;  %v2335_v39 = vld [vmem:[#allocation2 + $0x3f0] sm:$0xff]  ;;  %v4521_v19 = vpack.c.bf16 %v2320_v60, %v2319_v56 }
 0x337   : > { %4688 = vmatprep.subr.bf16.mxu0 %v6185_v18  ;;  %4720 = vmatprep.subr.bf16.mxu1 %v6185_v18  ;;  %v4523_v30 = vpack.c.bf16 %v2336_v58, %v2335_v39 }
 0x338   : > { %3940 = vst [vmem:[#allocation15 + $0x68] sm:$0xff] %v4521_v19 }
 0x339   : > { %4641 = vmatmul.mubr.bf16.gmra.mrb[4].mxu0 %v2388_v20  ;;  %4673 = vmatmul.mubr.bf16.gmra.mrb[4].mxu1 %v2669_v21  ;;  %v6377_v20 = vld [vmem:[#allocation2 + $0x118] sm:$0xff]  ;;  %3942 = vst [vmem:[#allocation15 + $0x78] sm:$0xff] %v4523_v30 }
 0x33a   : > { %4689 = vmatpush3.bf16.msra.mxu0 %v6185_v18  ;;  %4721 = vmatpush3.bf16.msra.mxu1 %v6185_v18  ;;  %6955 = vst [vmem:[#allocation48_spill] sm:$0xff] %v6377_v20  ;;  %v6379_v21 = vld [vmem:[#allocation2 + $0x158] sm:$0xff] }
 0x33b   : > { %4690 = vmatprep.subr.bf16.mxu0 %v6193_v28  ;;  %4722 = vmatprep.subr.bf16.mxu1 %v6193_v28  ;;  %6956 = vst [vmem:[#allocation49_spill] sm:$0xff] %v6379_v21 }
 0x33c   : > { %4644 = vmatprep.mubr.bf16.mxu0 %v2389_v26  ;;  %4676 = vmatprep.mubr.bf16.mxu1 %v2670_v27  ;;  %v2901_v26 = vpack.c.bf16 %v6375_v12, %v6369_v5  ;;  %v3134_v27 = vpack.c.bf16 %v6379_v21, %v6377_v20  ;;  %v6419_v21 = vld [vmem:[#allocation2 + $0x2d0] sm:$0xff]  ;;  %v6421_v12 = vld [vmem:[#allocation2 + $0x298] sm:$0xff]  ;;  %v2285_v20 = vld [vmem:[#allocation2 + $0x260] sm:$0xff] }
 0x33d   : > { %6964 = vst [vmem:[#allocation57_spill] sm:$0xff] %v6419_v21  ;;  %6965 = vst [vmem:[#allocation58_spill] sm:$0xff] %v6421_v12 }
 0x33e   : > { %4691 = vmatpush3.bf16.msra.mxu0 %v6193_v28  ;;  %4723 = vmatpush3.bf16.msra.mxu1 %v6193_v28 }
 0x33f   : > { %4692 = vmatprep.subr.bf16.mxu0 %v6209_v59  ;;  %4724 = vmatprep.subr.bf16.mxu1 %v6209_v59 }
 0x341   : > { %4645 = vmatmul.mubr.bf16.gmra.mrb[8].mxu0 %v2390_v34  ;;  %4677 = vmatmul.mubr.bf16.gmra.mrb[8].mxu1 %v2671_v35  ;;  %v6389_v34 = vld [vmem:[#allocation2 + $0x190] sm:$0xff] }
 0x342   : > { %4693 = vmatpush3.bf16.msra.mxu0 %v6209_v59  ;;  %4725 = vmatpush3.bf16.msra.mxu1 %v6209_v59  ;;  %6957 = vst [vmem:[#allocation50_spill] sm:$0xff] %v6389_v34  ;;  %v6393_v35 = vld [vmem:[#allocation2 + $0x1d0] sm:$0xff] }
 0x343   : > { %4694 = vmatprep.subr.bf16.mxu0 %v6215_v61  ;;  %4726 = vmatprep.subr.bf16.mxu1 %v6215_v61  ;;  %6958 = vst [vmem:[#allocation51_spill] sm:$0xff] %v6393_v35 }
 0x344   : > { %4648 = vmatprep.mubr.bf16.mxu0 %v2391_v41  ;;  %4680 = vmatprep.mubr.bf16.mxu1 %v2672_v42  ;;  %v6395_v41 = vld [vmem:[#allocation2 + $0x198] sm:$0xff] }
 0x345   : > { %6959 = vst [vmem:[#allocation52_spill] sm:$0xff] %v6395_v41  ;;  %v6397_v42 = vld [vmem:[#allocation2 + $0x1d8] sm:$0xff] }
 0x346   : > { %4695 = vmatpush3.bf16.msra.mxu0 %v6215_v61  ;;  %4727 = vmatpush3.bf16.msra.mxu1 %v6215_v61  ;;  %6960 = vst [vmem:[#allocation53_spill] sm:$0xff] %v6397_v42 }
 0x347   : > { %4696 = vmatprep.subr.bf16.mxu0 %v6221_v62  ;;  %4728 = vmatprep.subr.bf16.mxu1 %v6221_v62 }
 0x349   : > { %4649 = vmatmul.mubr.bf16.gmra.mrb[12].mxu0 %v2392_v50  ;;  %4681 = vmatmul.mubr.bf16.gmra.mrb[12].mxu1 %v2673_v51  ;;  %v6401_v50 = vld [vmem:[#allocation2 + $0x210] sm:$0xff]  ;;  %v2902_v51 = vpack.c.bf16 %v6393_v35, %v6389_v34  ;;  %v2277_v35 = vld [vmem:[#allocation2 + $0x220] sm:$0xff] }
 0x34a   : > { %4697 = vmatpush3.bf16.msra.mxu0 %v6221_v62  ;;  %4729 = vmatpush3.bf16.msra.mxu1 %v6221_v62  ;;  %6961 = vst [vmem:[#allocation54_spill] sm:$0xff] %v6401_v50 }
 0x34b   : > { %4698 = vmatprep.subr.bf16.mxu0 %v6227_v63  ;;  %4730 = vmatprep.subr.bf16.mxu1 %v6227_v63 }
 0x34c   : > { %4700 = vmatprep.mubr.bf16.mxu0 %v2899_v55  ;;  %4732 = vmatprep.mubr.bf16.mxu1 %v3132_v57  ;;  %v2283_v55 = vld [vmem:[#allocation2 + $0x250] sm:$0xff]  ;;  %v6407_v57 = vld [vmem:[#allocation2 + $0x218] sm:$0xff] }
 0x34d   : > { %6962 = vst [vmem:[#allocation55_spill] sm:$0xff] %v6407_v57 }
 0x34e   : > { %4699 = vmatpush3.bf16.msra.mxu0 %v6227_v63  ;;  %4731 = vmatpush3.bf16.msra.mxu1 %v6227_v63 }
 0x34f   : > { %4748 = vmatprep.subr.bf16.mxu0 %v6175_v8  ;;  %4780 = vmatprep.subr.bf16.mxu1 %v6175_v8 }
 0x351   : > { %4701 = vmatmul.mubr.bf16.vlgmr.msra.gmra.mrb[16].mxu0 %v2900_v6  ;;  %4733 = vmatmul.mubr.bf16.vlgmr.msra.gmra.mrb[16].mxu1 %v3133_v11  ;;  %v2284_v6 = vld [vmem:[#allocation2 + $0x258] sm:$0xff]  ;;  %v2903_v11 = vpack.c.bf16 %v2283_v55, %v6401_v50  ;;  %v2323_v50 = vld [vmem:[#allocation2 + $0x390] sm:$0xff] }
 0x352   : > { %4749 = vmatpush3.bf16.msra.mxu0 %v6175_v8  ;;  %4781 = vmatpush3.bf16.msra.mxu1 %v6175_v8  ;;  %v3135_v8 = vpack.c.bf16 %v6397_v42, %v6395_v41  ;;  %v2270_v42 = vld [vmem:[#allocation2 + $0x1e8] sm:$0xff] }
 0x353   : > { %4750 = vmatprep.subr.bf16.mxu0 %v6177_v15  ;;  %4782 = vmatprep.subr.bf16.mxu1 %v6177_v15 }
 0x354   : > { %4704 = vmatprep.mubr.bf16.mxu0 %v2901_v26  ;;  %4736 = vmatprep.mubr.bf16.mxu1 %v3134_v27  ;;  %v3136_v26 = vpack.c.bf16 %v2284_v6, %v6407_v57  ;;  %v6415_v27 = vld [vmem:[#allocation2 + $0x290] sm:$0xff]  ;;  %v2308_v6 = vld [vmem:[#allocation2 + $0x318] sm:$0xff] }
 0x355   : > { %6963 = vst [vmem:[#allocation56_spill] sm:$0xff] %v6415_v27  ;;  %v2316_v57 = vld [vmem:[#allocation2 + $0x358] sm:$0xff] }
 0x356   : > { %4751 = vmatpush3.bf16.msra.mxu0 %v6177_v15  ;;  %4783 = vmatpush3.bf16.msra.mxu1 %v6177_v15  ;;  %v6423_v15 = vld [vmem:[#allocation2 + $0x2d8] sm:$0xff] }
 0x357   : > { %4752 = vmatprep.subr.bf16.mxu0 %v6185_v18  ;;  %4784 = vmatprep.subr.bf16.mxu1 %v6185_v18  ;;  %6966 = vst [vmem:[#allocation59_spill] sm:$0xff] %v6423_v15  ;;  %v3137_v55 = vpack.c.bf16 %v6423_v15, %v6421_v12  ;;  %v2331_v15 = vld [vmem:[#allocation2 + $0x3d0] sm:$0xff]  ;;  %v2332_v12 = vld [vmem:[#allocation2 + $0x3d8] sm:$0xff] }
 0x359   : > { %4705 = vmatmul.mubr.bf16.gmra.mrb[20].mxu0 %v2902_v51  ;;  %4737 = vmatmul.mubr.bf16.gmra.mrb[20].mxu1 %v3135_v8  ;;  %v2307_v51 = vld [vmem:[#allocation2 + $0x310] sm:$0xff]  ;;  %v2904_v8 = vpack.c.bf16 %v6419_v21, %v6415_v27  ;;  %v6437_v21 = vld [vmem:[#allocation2 + $0x398] sm:$0xff]  ;;  %v2254_v27 = vld [vmem:[#allocation2 + $0x168] sm:$0xff] }
 0x35a   : > { %4753 = vmatpush3.bf16.msra.mxu0 %v6185_v18  ;;  %4785 = vmatpush3.bf16.msra.mxu1 %v6185_v18  ;;  %v2315_v18 = vld [vmem:[#allocation2 + $0x350] sm:$0xff]  ;;  %6967 = vst [vmem:[#allocation60_spill] sm:$0xff] %v6437_v21 }
 0x35b   : > { %4754 = vmatprep.subr.bf16.mxu0 %v6193_v28  ;;  %4786 = vmatprep.subr.bf16.mxu1 %v6193_v28 }
 0x35c   : > { %4708 = vmatprep.mubr.bf16.mxu0 %v2903_v11  ;;  %4740 = vmatprep.mubr.bf16.mxu1 %v3136_v26  ;;  %v2905_v11 = vpack.c.bf16 %v2315_v18, %v2307_v51  ;;  %v3138_v26 = vpack.c.bf16 %v2316_v57, %v2308_v6  ;;  %v2906_v51 = vpack.c.bf16 %v2331_v15, %v2323_v50  ;;  %v2222_v18 = vld [vmem:[#allocation2 + $0x68] sm:$0xff]  ;;  %v2245_v15 = vld [vmem:[#allocation2 + $0x120] sm:$0xff] }
 0x35d   : > { %v3139_v57 = vpack.c.bf16 %v2332_v12, %v6437_v21  ;;  %v2230_v12 = vld [vmem:[#allocation2 + $0xa8] sm:$0xff] }
 0x35e   : > { %4755 = vmatpush3.bf16.msra.mxu0 %v6193_v28  ;;  %4787 = vmatpush3.bf16.msra.mxu1 %v6193_v28  ;;  %v2213_v28 = vld [vmem:[#allocation2 + $0x20] sm:$0xff]  ;;  %v2238_v50 = vld [vmem:[#allocation2 + $0xe8] sm:$0xff] }
 0x35f   : > { %4756 = vmatprep.subr.bf16.mxu0 %v6209_v59  ;;  %4788 = vmatprep.subr.bf16.mxu1 %v6209_v59  ;;  %v2246_v21 = vld [vmem:[#allocation2 + $0x128] sm:$0xff] }
 0x361   : > { %4709 = vmatmul.mubr.bf16.gmra.mrb[24].mxu0 %v2904_v8  ;;  %4741 = vmatmul.mubr.bf16.gmra.mrb[24].mxu1 %v3137_v55  ;;  %v2221_v8 = vld [vmem:[#allocation2 + $0x60] sm:$0xff]  ;;  %v2214_v55 = vld [vmem:[#allocation2 + $0x28] sm:$0xff] }
 0x362   : > { %4757 = vmatpush3.bf16.msra.mxu0 %v6209_v59  ;;  %4789 = vmatpush3.bf16.msra.mxu1 %v6209_v59  ;;  %v3365_v59 = vpack.c.bf16 %v2221_v8, %v2213_v28  ;;  %v3598_v6 = vpack.c.bf16 %v2222_v18, %v2214_v55  ;;  %v2261_v8 = vld [vmem:[#allocation2 + $0x1a0] sm:$0xff]  ;;  %v2262_v18 = vld [vmem:[#allocation2 + $0x1a8] sm:$0xff] }
 0x363   : > { %4758 = vmatprep.subr.bf16.mxu0 %v6215_v61  ;;  %4790 = vmatprep.subr.bf16.mxu1 %v6215_v61  ;;  %v2269_v55 = vld [vmem:[#allocation2 + $0x1e0] sm:$0xff] }
 0x364   : > { %4712 = vmatprep.mubr.bf16.mxu0 %v2905_v11  ;;  %4744 = vmatprep.mubr.bf16.mxu1 %v3138_v26  ;;  %v2229_v11 = vld [vmem:[#allocation2 + $0xa0] sm:$0xff] }
 0x365   : > { %v2237_v26 = vld [vmem:[#allocation2 + $0xe0] sm:$0xff] }
 0x366   : > { %4759 = vmatpush3.bf16.msra.mxu0 %v6215_v61  ;;  %4791 = vmatpush3.bf16.msra.mxu1 %v6215_v61  ;;  %v2253_v61 = vld [vmem:[#allocation2 + $0x160] sm:$0xff]  ;;  %v3366_v28 = vpack.c.bf16 %v2237_v26, %v2229_v11  ;;  %v3368_v11 = vpack.c.bf16 %v2269_v55, %v2261_v8  ;;  %v3601_v26 = vpack.c.bf16 %v2270_v42, %v2262_v18  ;;  %v2326_v42 = vld [vmem:[#allocation2 + $0x3a8] sm:$0xff] }
 0x367   : > { %4760 = vmatprep.subr.bf16.mxu0 %v6221_v62  ;;  %4792 = vmatprep.subr.bf16.mxu1 %v6221_v62  ;;  %v2334_v8 = vld [vmem:[#allocation2 + $0x3e8] sm:$0xff] }
 0x368   : > { %v3605_v18 = vpack.c.bf16 %v2334_v8, %v2326_v42  ;;  %v2295_v42 = vld [vmem:[#allocation2 + $0x2b0] sm:$0xff]  ;;  %v2296_v8 = vld [vmem:[#allocation2 + $0x2b8] sm:$0xff] }
 0x369   : > { %4713 = vmatmul.mubr.bf16.gmra.mrb[28].mxu0 %v2906_v51  ;;  %4745 = vmatmul.mubr.bf16.gmra.mrb[28].mxu1 %v3139_v57  ;;  %v3599_v51 = vpack.c.bf16 %v2238_v50, %v2230_v12  ;;  %v3367_v57 = vpack.c.bf16 %v2253_v61, %v2245_v15  ;;  %v3369_v12 = vpack.c.bf16 %v2285_v20, %v2277_v35  ;;  %v2302_v15 = vld [vmem:[#allocation2 + $0x2e8] sm:$0xff]  ;;  %v2309_v61 = vld [vmem:[#allocation2 + $0x320] sm:$0xff] }
 0x36a   : > { %4761 = vmatpush3.bf16.msra.mxu0 %v6221_v62  ;;  %4793 = vmatpush3.bf16.msra.mxu1 %v6221_v62  ;;  %v3600_v62 = vpack.c.bf16 %v2254_v27, %v2246_v21  ;;  %v2301_v21 = vld [vmem:[#allocation2 + $0x2e0] sm:$0xff]  ;;  %v2294_v27 = vld [vmem:[#allocation2 + $0x2a8] sm:$0xff]  ;;  %v4518_v33 = vpack.c.bf16 %v2296_v8, %v2295_v42 }
 0x36b   : > { %4762 = vmatprep.subr.bf16.mxu0 %v6227_v63  ;;  %4794 = vmatprep.subr.bf16.mxu1 %v6227_v63  ;;  %v3603_v5 = vpack.c.bf16 %v2302_v15, %v2294_v27  ;;  %v2325_v20 = vld [vmem:[#allocation2 + $0x3a0] sm:$0xff]  ;;  %v2247_v27 = vld [vmem:[#allocation2 + $0x130] sm:$0xff]  ;;  %v6506_v8 = vld [vmem:[#allocation8 + $0x28] sm:$0xff] }
 0x36c   : > { %4764 = vmatprep.mubr.bf16.mxu0 %v3365_v59  ;;  %4796 = vmatprep.mubr.bf16.mxu1 %v3598_v6  ;;  %v2278_v59 = vld [vmem:[#allocation2 + $0x228] sm:$0xff]  ;;  %v2333_v35 = vld [vmem:[#allocation2 + $0x3e0] sm:$0xff]  ;;  %v2255_v15 = vld [vmem:[#allocation2 + $0x170] sm:$0xff]  ;;  %3937 = vst [vmem:[#allocation15 + $0x50] sm:$0xff] %v4518_v33 }
 0x36d   : > { %v2286_v6 = vld [vmem:[#allocation2 + $0x268] sm:$0xff]  ;;  %v3372_v55 = vpack.c.bf16 %v2333_v35, %v2325_v20  ;;  %v2287_v20 = vld [vmem:[#allocation2 + $0x270] sm:$0xff]  ;;  %v2288_v35 = vld [vmem:[#allocation2 + $0x278] sm:$0xff] }
 0x36e   : > { %4763 = vmatpush3.bf16.msra.mxu0 %v6227_v63  ;;  %4795 = vmatpush3.bf16.msra.mxu1 %v6227_v63  ;;  %v3602_v50 = vpack.c.bf16 %v2286_v6, %v2278_v59  ;;  %v2293_v63 = vld [vmem:[#allocation2 + $0x2a0] sm:$0xff]  ;;  %v2215_v59 = vld [vmem:[#allocation2 + $0x30] sm:$0xff]  ;;  %v2216_v6 = vld [vmem:[#allocation2 + $0x38] sm:$0xff]  ;;  %v4517_v22 = vpack.c.bf16 %v2288_v35, %v2287_v20 }
 0x36f   : > { %v4508_v40 = vpack.c.bf16 %v2216_v6, %v2215_v59  ;;  %v6472_v33 = vld [vmem:[#allocation9 + $0x18] sm:$0xff]  ;;  %v6504_v42 = vld [vmem:[#allocation9 + $0x20] sm:$0xff] }
 0x370   : > { %3936 = vst [vmem:[#allocation15 + $0x48] sm:$0xff] %v4517_v22 }
 0x371   : > { %4765 = vmatmul.mubr.bf16.vlgmr.msra.gmra.mrb[32].mxu0 %v3366_v28  ;;  %4797 = vmatmul.mubr.bf16.vlgmr.msra.gmra.mrb[32].mxu1 %v3599_v51  ;;  %v2317_v28 = vld [vmem:[#allocation2 + $0x360] sm:$0xff]  ;;  %v2310_v51 = vld [vmem:[#allocation2 + $0x328] sm:$0xff]  ;;  %3927 = vst [vmem:[#allocation15] sm:$0xff] %v4508_v40  ;;  %v6452_v40 = vld [vmem:[#allocation8 + $0x10] sm:$0xff] }
 0x372   : > { %4768 = vmatprep.mubr.bf16.mxu0 %v3367_v57  ;;  %4800 = vmatprep.mubr.bf16.mxu1 %v3600_v62  ;;  %v2318_v57 = vld [vmem:[#allocation2 + $0x368] sm:$0xff]  ;;  %v3370_v62 = vpack.c.bf16 %v2301_v21, %v2293_v63  ;;  %v3371_v41 = vpack.c.bf16 %v2317_v28, %v2309_v61  ;;  %v2239_v63 = vld [vmem:[#allocation2 + $0xf0] sm:$0xff]  ;;  %v2240_v21 = vld [vmem:[#allocation2 + $0xf8] sm:$0xff]  ;;  %v2773_v22 = vmul.f32 %v6452_v40, %v6235_v2 }
 0x373   : > { %v3604_v34 = vpack.c.bf16 %v2318_v57, %v2310_v51  ;;  %v2264_v61 = vld [vmem:[#allocation2 + $0x1b8] sm:$0xff]  ;;  %v2271_v28 = vld [vmem:[#allocation2 + $0x1f0] sm:$0xff]  ;;  %v4511_v44 = vpack.c.bf16 %v2240_v21, %v2239_v63 }
 0x374   : > { %v2272_v51 = vld [vmem:[#allocation2 + $0x1f8] sm:$0xff]  ;;  %v2279_v57 = vld [vmem:[#allocation2 + $0x230] sm:$0xff] }
 0x375   : > { %v4515_v43 = vpack.c.bf16 %v2272_v51, %v2271_v28  ;;  %3930 = vst [vmem:[#allocation15 + $0x18] sm:$0xff] %v4511_v44  ;;  %v6456_v44 = vld [vmem:[#allocation9 + $0x10] sm:$0xff]  ;;  %v6498_v51 = vld [vmem:[#allocation8 + $0x38] sm:$0xff] }
 0x376   : > { %v6496_v28 = vld [vmem:[#allocation9 + $0x30] sm:$0xff] }
 0x377   : > { %3934 = vst [vmem:[#allocation15 + $0x38] sm:$0xff] %v4515_v43 }
 0x379   : > { %4769 = vmatmul.mubr.bf16.gmra.mrb[36].mxu0 %v3368_v11  ;;  %4801 = vmatmul.mubr.bf16.gmra.mrb[36].mxu1 %v3601_v26  ;;  %v2223_v11 = vld [vmem:[#allocation2 + $0x70] sm:$0xff]  ;;  %v2224_v26 = vld [vmem:[#allocation2 + $0x78] sm:$0xff] }
 0x37a   : > { %4772 = vmatprep.mubr.bf16.mxu0 %v3369_v12  ;;  %4804 = vmatprep.mubr.bf16.mxu1 %v3602_v50  ;;  %v2231_v12 = vld [vmem:[#allocation2 + $0xb0] sm:$0xff]  ;;  %v2232_v50 = vld [vmem:[#allocation2 + $0xb8] sm:$0xff]  ;;  %v4509_v37 = vpack.c.bf16 %v2224_v26, %v2223_v11 }
 0x37b   : > { %v4510_v47 = vpack.c.bf16 %v2232_v50, %v2231_v12  ;;  %v6492_v12 = vld [vmem:[#allocation8 + $0x30] sm:$0xff] }
 0x37c   : > { %3928 = vst [vmem:[#allocation15 + $0x8] sm:$0xff] %v4509_v37  ;;  %v6454_v37 = vld [vmem:[#allocation8] sm:$0xff]  ;;  %v2544_v20 = vmul.f32 %v6492_v12, %v6261_v13  ;;  %v2777_v35 = vmul.f32 %v6492_v12, %v6267_v16  ;;  %v6512_v13 = vld [vmem:[#allocation9 + $0x38] sm:$0xff] }
 0x37d   : > { %3929 = vst [vmem:[#allocation15 + $0x10] sm:$0xff] %v4510_v47  ;;  %v6458_v47 = vld [vmem:[#allocation8 + $0x18] sm:$0xff]  ;;  %v2538_v19 = vmul.f32 %v6454_v37, %v6189_v25  ;;  %v2771_v30 = vmul.f32 %v6454_v37, %v6199_v46  ;;  %v6480_v25 = vld [vmem:[#allocation9 + $0x8] sm:$0xff] }
 0x37e   : > { %v2541_v2 = vmul.f32 %v6458_v47, %v6233_v1  ;;  %v2774_v48 = vmul.f32 %v6458_v47, %v6237_v3 }
 0x381   : > { %4773 = vmatmul.mubr.bf16.gmra.mrb[40].mxu0 %v3370_v62  ;;  %4805 = vmatmul.mubr.bf16.gmra.mrb[40].mxu1 %v3603_v5  ;;  %v2248_v5 = vld [vmem:[#allocation2 + $0x138] sm:$0xff] }
 0x382   : > { %4776 = vmatprep.mubr.bf16.mxu0 %v3371_v41  ;;  %4808 = vmatprep.mubr.bf16.mxu1 %v3604_v34  ;;  %v2256_v41 = vld [vmem:[#allocation2 + $0x178] sm:$0xff]  ;;  %v2263_v34 = vld [vmem:[#allocation2 + $0x1b0] sm:$0xff]  ;;  %v4512_v38 = vpack.c.bf16 %v2248_v5, %v2247_v27  ;;  %v6494_v5 = vld [vmem:[#allocation8 + $0x20] sm:$0xff] }
 0x383   : > { %v2280_v62 = vld [vmem:[#allocation2 + $0x238] sm:$0xff]  ;;  %v4513_v29 = vpack.c.bf16 %v2256_v41, %v2255_v15  ;;  %v4514_v45 = vpack.c.bf16 %v2264_v61, %v2263_v34 }
 0x384   : > { %v4516_v24 = vpack.c.bf16 %v2280_v62, %v2279_v57  ;;  %3931 = vst [vmem:[#allocation15 + $0x20] sm:$0xff] %v4512_v38  ;;  %v6460_v38 = vld [vmem:[#allocation8 + $0x8] sm:$0xff] }
 0x385   : > { %3932 = vst [vmem:[#allocation15 + $0x28] sm:$0xff] %v4513_v29  ;;  %3933 = vst [vmem:[#allocation15 + $0x30] sm:$0xff] %v4514_v45  ;;  %v2539_v46 = vmul.f32 %v6460_v38, %v6195_v36  ;;  %v2772_v52 = vmul.f32 %v6460_v38, %v6201_v49 }
 0x386   : > { %3935 = vst [vmem:[#allocation15 + $0x40] sm:$0xff] %v4516_v24  ;;  %v2540_v24 = vmul.f32 %v6452_v40, %v6229_v0 }
 0x389   : > { %4777 = vmatmul.mubr.bf16.gmra.mrb[44].mxu0 %v3372_v55  ;;  %4809 = vmatmul.mubr.bf16.gmra.mrb[44].mxu1 %v3605_v18  ;;  %v2303_v55 = vld [vmem:[#allocation2 + $0x2f0] sm:$0xff]  ;;  %v2304_v18 = vld [vmem:[#allocation2 + $0x2f8] sm:$0xff] }
 0x38a   : > { %v4519_v31 = vpack.c.bf16 %v2304_v18, %v2303_v55 }
 0x38c   : > { %3938 = vst [vmem:[#allocation15 + $0x58] sm:$0xff] %v4519_v31 }
 0x404   : > { %v4638_v31 = vpop.f32.mrb[0].mxu0  ;;  %v4670_v32 = vpop.f32.mrb[0].mxu1 }
 0x405   : > { %v2556_v29 = vmul.f32 %v4638_v31, %v6456_v44  ;;  %v2789_v43 = vmul.f32 %v4670_v32, %v6456_v44  ;;  %v2475_v0 = vpop.f32.mrb[1].mxu0  ;;  %v2708_v45 = vpop.f32.mrb[1].mxu1 }
 0x406   : > { %v2554_v53 = vmul.f32 %v2475_v0, %v6466_v23  ;;  %v2787_v54 = vmul.f32 %v2708_v45, %v6466_v23  ;;  %v4639_v58 = vpop.f32.mrb[2].mxu0  ;;  %v4671_v60 = vpop.f32.mrb[2].mxu1  ;;  %v2778_v0 = vmul.f32 %v6498_v51, %v6269_v17 }
 0x407   : > { %v2572_v39 = vadd.f32 %v2556_v29, %v2540_v24  ;;  %v2805_v56 = vadd.f32 %v2789_v43, %v2773_v22  ;;  %v2557_v1 = vmul.f32 %v4639_v58, %v6472_v33  ;;  %v2790_v3 = vmul.f32 %v4671_v60, %v6472_v33  ;;  %v2478_v59 = vpop.f32.mrb[3].mxu0  ;;  %v2711_v6 = vpop.f32.mrb[3].mxu1 }
 0x408   : > { %v2570_v11 = vadd.f32 %v2554_v53, %v2538_v19  ;;  %v2803_v26 = vadd.f32 %v2787_v54, %v2771_v30  ;;  %v2555_v36 = vmul.f32 %v2478_v59, %v6480_v25  ;;  %v2788_v49 = vmul.f32 %v2711_v6, %v6480_v25  ;;  %v6532_v59 = vld [vmem:[#allocation8 + $0x50] sm:$0xff] }
 0x409   : > { %v4414_v50 = vpack.c.bf16 %v2572_v39, %v2572_v39  ;;  %v4430_v63 = vpack.c.bf16 %v2805_v56, %v2805_v56  ;;  %v2573_v21 = vadd.f32 %v2557_v1, %v2541_v2  ;;  %v2806_v27 = vadd.f32 %v2790_v3, %v2774_v48 }
 0x40a   : > { %v4412_v15 = vpack.c.bf16 %v2570_v11, %v2570_v11  ;;  %v4428_v41 = vpack.c.bf16 %v2803_v26, %v2803_v26  ;;  %v2571_v34 = vadd.f32 %v2555_v36, %v2539_v46  ;;  %v2804_v61 = vadd.f32 %v2788_v49, %v2772_v52  ;;  %v6534_v26 = vld [vmem:[#allocation8 + $0x40] sm:$0xff] }
 0x40b   : > { %2652 = vst [vmem:[#allocation12 + $0x20] sm:$0xf] %v4414_v50  ;;  %2885 = vst [vmem:[#allocation12 + $0x24] sm:$0xf] %v4430_v63  ;;  %v4415_v57 = vpack.c.bf16 %v2573_v21, %v2573_v21  ;;  %v4431_v62 = vpack.c.bf16 %v2806_v27, %v2806_v27  ;;  %v2542_v19 = vmul.f32 %v6494_v5, %v6241_v4  ;;  %v6520_v4 = vld [vmem:[#allocation9 + $0x28] sm:$0xff]  ;;  %v6536_v21 = vld [vmem:[#allocation9 + $0x50] sm:$0xff] }
 0x40c   : > { %2650 = vst [vmem:[#allocation12] sm:$0xf] %v4412_v15  ;;  %2883 = vst [vmem:[#allocation12 + $0x4] sm:$0xf] %v4428_v41  ;;  %v4413_v55 = vpack.c.bf16 %v2571_v34, %v2571_v34  ;;  %v4429_v18 = vpack.c.bf16 %v2804_v61, %v2804_v61  ;;  %v4642_v24 = vpop.f32.mrb[4].mxu0  ;;  %v4674_v22 = vpop.f32.mrb[4].mxu1  ;;  %v2775_v30 = vmul.f32 %v6494_v5, %v6249_v9 }
 0x40d   : > { %2653 = vst [vmem:[#allocation12 + $0x30] sm:$0xf] %v4415_v57  ;;  %2886 = vst [vmem:[#allocation12 + $0x34] sm:$0xf] %v4431_v62  ;;  %v2560_v16 = vmul.f32 %v4642_v24, %v6496_v28  ;;  %v2793_v31 = vmul.f32 %v4674_v22, %v6496_v28  ;;  %v2491_v32 = vpop.f32.mrb[5].mxu0  ;;  %v2724_v29 = vpop.f32.mrb[5].mxu1  ;;  %v2545_v43 = vmul.f32 %v6498_v51, %v6265_v14 }
 0x40e   : > { %2651 = vst [vmem:[#allocation12 + $0x10] sm:$0xf] %v4413_v55  ;;  %2884 = vst [vmem:[#allocation12 + $0x14] sm:$0xf] %v4429_v18  ;;  %v2558_v9 = vmul.f32 %v2491_v32, %v6504_v42  ;;  %v2791_v45 = vmul.f32 %v2724_v29, %v6504_v42  ;;  %v4643_v2 = vpop.f32.mrb[6].mxu0  ;;  %v4675_v48 = vpop.f32.mrb[6].mxu1  ;;  %v2543_v46 = vmul.f32 %v6506_v8, %v6247_v7 }
 0x40f   : > { %v2776_v52 = vmul.f32 %v6506_v8, %v6251_v10  ;;  %v2576_v14 = vadd.f32 %v2560_v16, %v2544_v20  ;;  %v2809_v53 = vadd.f32 %v2793_v31, %v2777_v35  ;;  %v2561_v17 = vmul.f32 %v4643_v2, %v6512_v13  ;;  %v2494_v58 = vpop.f32.mrb[7].mxu0  ;;  %v2727_v60 = vpop.f32.mrb[7].mxu1  ;;  %v6538_v27 = vld [vmem:[#allocation8 + $0x58] sm:$0xff]  ;;  %v6968_v34 = vld [vmem:[#allocation26_spill] sm:$0xff]  ;;  %v6969_v57 = vld [vmem:[#allocation28_spill] sm:$0xff] }
 0x410   : > { %v2794_v54 = vmul.f32 %v4675_v48, %v6512_v13  ;;  %v2574_v39 = vadd.f32 %v2558_v9, %v2542_v19  ;;  %v2807_v56 = vadd.f32 %v2791_v45, %v2775_v30  ;;  %v2559_v1 = vmul.f32 %v2494_v58, %v6520_v4  ;;  %v6544_v20 = vld [vmem:[#allocation9 + $0x40] sm:$0xff]  ;;  %v6546_v35 = vld [vmem:[#allocation8 + $0x48] sm:$0xff]  ;;  %v6971_v16 = vld [vmem:[#allocation24_spill] sm:$0xff] }
 0x411   : > { %v2792_v3 = vmul.f32 %v2727_v60, %v6520_v4  ;;  %v4418_v7 = vpack.c.bf16 %v2576_v14, %v2576_v14  ;;  %v4434_v6 = vpack.c.bf16 %v2809_v53, %v2809_v53  ;;  %v2577_v11 = vadd.f32 %v2561_v17, %v2545_v43  ;;  %v6970_v19 = vld [vmem:[#allocation22_spill] sm:$0xff]  ;;  %v6552_v32 = vld [vmem:[#allocation9 + $0x58] sm:$0xff]  ;;  %v6972_v45 = vld [vmem:[#allocation27_spill] sm:$0xff] }
 0x412   : > { %v2810_v10 = vadd.f32 %v2794_v54, %v2778_v0  ;;  %v4416_v36 = vpack.c.bf16 %v2574_v39, %v2574_v39  ;;  %v4432_v49 = vpack.c.bf16 %v2807_v56, %v2807_v56  ;;  %v2575_v50 = vadd.f32 %v2559_v1, %v2543_v46  ;;  %v6973_v48 = vld [vmem:[#allocation29_spill] sm:$0xff]  ;;  %v6974_v58 = vld [vmem:[#allocation23_spill] sm:$0xff] }
 0x413   : > { %v2808_v63 = vadd.f32 %v2792_v3, %v2776_v52  ;;  %2656 = vst [vmem:[#allocation12 + $0x60] sm:$0xf] %v4418_v7  ;;  %2889 = vst [vmem:[#allocation12 + $0x64] sm:$0xf] %v4434_v6  ;;  %v4419_v15 = vpack.c.bf16 %v2577_v11, %v2577_v11  ;;  %v2548_v61 = vmul.f32 %v6532_v59, %v6968_v34  ;;  %v6560_v52 = vld [vmem:[#allocation9 + $0x48] sm:$0xff]  ;;  %v6975_v39 = vld [vmem:[#allocation25_spill] sm:$0xff] }
 0x414   : > { %v4435_v41 = vpack.c.bf16 %v2810_v10, %v2810_v10  ;;  %v2781_v62 = vmul.f32 %v6532_v59, %v6969_v57  ;;  %2654 = vst [vmem:[#allocation12 + $0x40] sm:$0xf] %v4416_v36  ;;  %2887 = vst [vmem:[#allocation12 + $0x44] sm:$0xf] %v4432_v49  ;;  %v4417_v55 = vpack.c.bf16 %v2575_v50, %v2575_v50  ;;  %v4646_v24 = vpop.f32.mrb[8].mxu0  ;;  %v4678_v22 = vpop.f32.mrb[8].mxu1 }
 0x415   : > { %v4433_v18 = vpack.c.bf16 %v2808_v63, %v2808_v63  ;;  %v2546_v30 = vmul.f32 %v6534_v26, %v6970_v19  ;;  %v2779_v31 = vmul.f32 %v6534_v26, %v6971_v16  ;;  %2657 = vst [vmem:[#allocation12 + $0x70] sm:$0xf] %v4419_v15  ;;  %v2564_v29 = vmul.f32 %v4646_v24, %v6536_v21  ;;  %v2507_v0 = vpop.f32.mrb[9].mxu0  ;;  %v2740_v9 = vpop.f32.mrb[9].mxu1  ;;  %v6572_v15 = vld [vmem:[#allocation8 + $0x70] sm:$0xff] }
 0x416   : > { %2890 = vst [vmem:[#allocation12 + $0x74] sm:$0xf] %v4435_v41  ;;  %v2797_v43 = vmul.f32 %v4678_v22, %v6536_v21  ;;  %v2549_v2 = vmul.f32 %v6538_v27, %v6972_v45  ;;  %v2782_v46 = vmul.f32 %v6538_v27, %v6973_v48  ;;  %2655 = vst [vmem:[#allocation12 + $0x50] sm:$0xf] %v4417_v55  ;;  %v4647_v17 = vpop.f32.mrb[10].mxu0  ;;  %v4679_v54 = vpop.f32.mrb[10].mxu1 }
 0x417   : > { %2888 = vst [vmem:[#allocation12 + $0x54] sm:$0xf] %v4433_v18  ;;  %v2562_v14 = vmul.f32 %v2507_v0, %v6544_v20  ;;  %v2795_v53 = vmul.f32 %v2740_v9, %v6544_v20  ;;  %v2547_v60 = vmul.f32 %v6546_v35, %v6974_v58  ;;  %v2780_v56 = vmul.f32 %v6546_v35, %v6975_v39  ;;  %v2510_v11 = vpop.f32.mrb[11].mxu0  ;;  %v2743_v10 = vpop.f32.mrb[11].mxu1  ;;  %v6576_v19 = vld [vmem:[#allocation9 + $0x70] sm:$0xff]  ;;  %v6584_v45 = vld [vmem:[#allocation9 + $0x60] sm:$0xff] }
 0x418   : > { %v2580_v1 = vadd.f32 %v2564_v29, %v2548_v61  ;;  %v2813_v3 = vadd.f32 %v2797_v43, %v2781_v62  ;;  %v2565_v7 = vmul.f32 %v4647_v17, %v6552_v32  ;;  %v2798_v6 = vmul.f32 %v4679_v54, %v6552_v32  ;;  %v6574_v61 = vld [vmem:[#allocation8 + $0x60] sm:$0xff]  ;;  %v6977_v0 = vld [vmem:[#allocation36_spill] sm:$0xff]  ;;  %v6592_v39 = vld [vmem:[#allocation9 + $0x78] sm:$0xff] }
 0x419   : > { %v2578_v36 = vadd.f32 %v2562_v14, %v2546_v30  ;;  %v2811_v49 = vadd.f32 %v2795_v53, %v2779_v31  ;;  %v2563_v50 = vmul.f32 %v2510_v11, %v6560_v52  ;;  %v2796_v63 = vmul.f32 %v2743_v10, %v6560_v52  ;;  %v6578_v30 = vld [vmem:[#allocation8 + $0x78] sm:$0xff]  ;;  %v6976_v29 = vld [vmem:[#allocation34_spill] sm:$0xff]  ;;  %v6979_v58 = vld [vmem:[#allocation32_spill] sm:$0xff] }
 0x41a   : > { %v4422_v41 = vpack.c.bf16 %v2580_v1, %v2580_v1  ;;  %v4438_v34 = vpack.c.bf16 %v2813_v3, %v2813_v3  ;;  %v2581_v57 = vadd.f32 %v2565_v7, %v2549_v2  ;;  %v2814_v55 = vadd.f32 %v2798_v6, %v2782_v46  ;;  %v6586_v2 = vld [vmem:[#allocation8 + $0x68] sm:$0xff]  ;;  %v6978_v17 = vld [vmem:[#allocation30_spill] sm:$0xff]  ;;  %v6981_v10 = vld [vmem:[#allocation37_spill] sm:$0xff] }
 0x41b   : > { %v4420_v62 = vpack.c.bf16 %v2578_v36, %v2578_v36  ;;  %v4436_v18 = vpack.c.bf16 %v2811_v49, %v2811_v49  ;;  %v2579_v24 = vadd.f32 %v2563_v50, %v2547_v60  ;;  %v2812_v22 = vadd.f32 %v2796_v63, %v2780_v56  ;;  %v6980_v6 = vld [vmem:[#allocation35_spill] sm:$0xff] }
 0x41c   : > { %2660 = vst [vmem:[#allocation12 + $0xa0] sm:$0xf] %v4422_v41  ;;  %2893 = vst [vmem:[#allocation12 + $0xa4] sm:$0xf] %v4438_v34  ;;  %v4423_v16 = vpack.c.bf16 %v2581_v57, %v2581_v57  ;;  %v4439_v31 = vpack.c.bf16 %v2814_v55, %v2814_v55  ;;  %v2552_v43 = vmul.f32 %v6572_v15, %v6976_v29  ;;  %v4650_v14 = vpop.f32.mrb[12].mxu0  ;;  %v4682_v53 = vpop.f32.mrb[12].mxu1 }
 0x41d   : > { %v2785_v9 = vmul.f32 %v6572_v15, %v6977_v0  ;;  %2658 = vst [vmem:[#allocation12 + $0x80] sm:$0xf] %v4420_v62  ;;  %2891 = vst [vmem:[#allocation12 + $0x84] sm:$0xf] %v4436_v18  ;;  %v4421_v48 = vpack.c.bf16 %v2579_v24, %v2579_v24  ;;  %v4437_v46 = vpack.c.bf16 %v2812_v22, %v2812_v22  ;;  %v2523_v3 = vpop.f32.mrb[13].mxu0  ;;  %v2756_v7 = vpop.f32.mrb[13].mxu1 }
 0x41e   : > { %v2550_v54 = vmul.f32 %v6574_v61, %v6978_v17  ;;  %v2783_v60 = vmul.f32 %v6574_v61, %v6979_v58  ;;  %2661 = vst [vmem:[#allocation12 + $0xb0] sm:$0xf] %v4423_v16  ;;  %2894 = vst [vmem:[#allocation12 + $0xb4] sm:$0xf] %v4439_v31  ;;  %v2568_v56 = vmul.f32 %v4650_v14, %v6576_v19  ;;  %v6600_v49 = vld [vmem:[#allocation9 + $0x68] sm:$0xff]  ;;  %v4651_v41 = vpop.f32.mrb[14].mxu0 }
 0x41f   : > { %v2801_v1 = vmul.f32 %v4682_v53, %v6576_v19  ;;  %v2553_v11 = vmul.f32 %v6578_v30, %v6980_v6  ;;  %v2786_v36 = vmul.f32 %v6578_v30, %v6981_v10  ;;  %2659 = vst [vmem:[#allocation12 + $0x90] sm:$0xf] %v4421_v48  ;;  %2892 = vst [vmem:[#allocation12 + $0x94] sm:$0xf] %v4437_v46  ;;  %v4683_v34 = vpop.f32.mrb[14].mxu1  ;;  %v6982_v57 = vld [vmem:[#allocation31_spill] sm:$0xff] }
 0x420   : > { %v2566_v50 = vmul.f32 %v2523_v3, %v6584_v45  ;;  %v2799_v63 = vmul.f32 %v2756_v7, %v6584_v45  ;;  %v2551_v55 = vmul.f32 %v6586_v2, %v6982_v57  ;;  %v6983_v62 = vld [vmem:[#allocation33_spill] sm:$0xff]  ;;  %v2584_v24 = vadd.f32 %v2568_v56, %v2552_v43  ;;  %v2526_v29 = vpop.f32.mrb[15].mxu0  ;;  %v2759_v0 = vpop.f32.mrb[15].mxu1  ;;  %v6986_v57 = vld [vmem:[#allocation38_spill] sm:$0xff] }
 0x421   : > { %v2784_v18 = vmul.f32 %v6586_v2, %v6983_v62  ;;  %v2817_v22 = vadd.f32 %v2801_v1, %v2785_v9  ;;  %v2569_v16 = vmul.f32 %v4651_v41, %v6592_v39  ;;  %v2802_v31 = vmul.f32 %v4683_v34, %v6592_v39  ;;  %v6984_v41 = vld [vmem:[#allocation42_spill] sm:$0xff]  ;;  %v6987_v62 = vld [vmem:[#allocation40_spill] sm:$0xff] }
 0x422   : > { %v2582_v48 = vadd.f32 %v2566_v50, %v2550_v54  ;;  %v2815_v46 = vadd.f32 %v2799_v63, %v2783_v60  ;;  %v2567_v14 = vmul.f32 %v2526_v29, %v6600_v49  ;;  %v2800_v53 = vmul.f32 %v2759_v0, %v6600_v49  ;;  %v6985_v60 = vld [vmem:[#allocation44_spill] sm:$0xff]  ;;  %v6988_v29 = vld [vmem:[#allocation43_spill] sm:$0xff] }
 0x423   : > { %v4426_v17 = vpack.c.bf16 %v2584_v24, %v2584_v24  ;;  %v4442_v58 = vpack.c.bf16 %v2817_v22, %v2817_v22  ;;  %v2585_v3 = vadd.f32 %v2569_v16, %v2553_v11  ;;  %v2818_v7 = vadd.f32 %v2802_v31, %v2786_v36 }
 0x424   : > { %v4424_v6 = vpack.c.bf16 %v2582_v48, %v2582_v48  ;;  %v4440_v10 = vpack.c.bf16 %v2815_v46, %v2815_v46  ;;  %v2583_v43 = vadd.f32 %v2567_v14, %v2551_v55  ;;  %v2816_v9 = vadd.f32 %v2800_v53, %v2784_v18  ;;  %v4702_v11 = vpop.f32.mrb[16].mxu0  ;;  %v4734_v36 = vpop.f32.mrb[16].mxu1  ;;  %v6989_v48 = vld [vmem:[#allocation45_spill] sm:$0xff] }
 0x425   : > { %2664 = vst [vmem:[#allocation12 + $0xe0] sm:$0xf] %v4426_v17  ;;  %2897 = vst [vmem:[#allocation12 + $0xe4] sm:$0xf] %v4442_v58  ;;  %v4427_v56 = vpack.c.bf16 %v2585_v3, %v2585_v3  ;;  %v4443_v1 = vpack.c.bf16 %v2818_v7, %v2818_v7  ;;  %v3006_v54 = vmul.f32 %v6452_v40, %v6984_v41  ;;  %v2941_v16 = vpop.f32.mrb[17].mxu0  ;;  %v3174_v31 = vpop.f32.mrb[17].mxu1 }
 0x426   : > { %v3239_v50 = vmul.f32 %v6452_v40, %v6985_v60  ;;  %2662 = vst [vmem:[#allocation12 + $0xc0] sm:$0xf] %v4424_v6  ;;  %2895 = vst [vmem:[#allocation12 + $0xc4] sm:$0xf] %v4440_v10  ;;  %v4425_v63 = vpack.c.bf16 %v2583_v43, %v2583_v43  ;;  %v4441_v34 = vpack.c.bf16 %v2816_v9, %v2816_v9  ;;  %v4703_v17 = vpop.f32.mrb[18].mxu0  ;;  %v4735_v58 = vpop.f32.mrb[18].mxu1 }
 0x427   : > { %v3004_v55 = vmul.f32 %v6454_v37, %v6986_v57  ;;  %v3237_v18 = vmul.f32 %v6454_v37, %v6987_v62  ;;  %2665 = vst [vmem:[#allocation12 + $0xf0] sm:$0xf] %v4427_v56  ;;  %2898 = vst [vmem:[#allocation12 + $0xf4] sm:$0xf] %v4443_v1  ;;  %v3022_v24 = vmul.f32 %v4702_v11, %v6456_v44  ;;  %v6990_v3 = vld [vmem:[#allocation39_spill] sm:$0xff]  ;;  %v6991_v6 = vld [vmem:[#allocation41_spill] sm:$0xff] }
 0x428   : > { %v3255_v22 = vmul.f32 %v4734_v36, %v6456_v44  ;;  %v3007_v0 = vmul.f32 %v6458_v47, %v6988_v29  ;;  %v3240_v46 = vmul.f32 %v6458_v47, %v6989_v48  ;;  %2663 = vst [vmem:[#allocation12 + $0xd0] sm:$0xf] %v4425_v63  ;;  %2896 = vst [vmem:[#allocation12 + $0xd4] sm:$0xf] %v4441_v34  ;;  %v2944_v41 = vpop.f32.mrb[19].mxu0  ;;  %v3177_v60 = vpop.f32.mrb[19].mxu1 }
 0x429   : > { %v3020_v14 = vmul.f32 %v2941_v16, %v6466_v23  ;;  %v3253_v53 = vmul.f32 %v3174_v31, %v6466_v23  ;;  %v3005_v7 = vmul.f32 %v6460_v38, %v6990_v3  ;;  %v3238_v10 = vmul.f32 %v6460_v38, %v6991_v6  ;;  %v6994_v3 = vld [vmem:[#allocation46_spill] sm:$0xff]  ;;  %v6995_v6 = vld [vmem:[#allocation48_spill] sm:$0xff] }
 0x42a   : > { %v3038_v43 = vadd.f32 %v3022_v24, %v3006_v54  ;;  %v3271_v9 = vadd.f32 %v3255_v22, %v3239_v50  ;;  %v3023_v56 = vmul.f32 %v4703_v17, %v6472_v33  ;;  %v3256_v1 = vmul.f32 %v4735_v58, %v6472_v33  ;;  %v6992_v17 = vld [vmem:[#allocation50_spill] sm:$0xff] }
 0x42b   : > { %v3036_v63 = vadd.f32 %v3020_v14, %v3004_v55  ;;  %v3269_v34 = vadd.f32 %v3253_v53, %v3237_v18  ;;  %v3021_v11 = vmul.f32 %v2944_v41, %v6480_v25  ;;  %v3254_v36 = vmul.f32 %v3177_v60, %v6480_v25  ;;  %v6993_v18 = vld [vmem:[#allocation52_spill] sm:$0xff]  ;;  %v6996_v41 = vld [vmem:[#allocation51_spill] sm:$0xff] }
 0x42c   : > { %v4446_v57 = vpack.c.bf16 %v3038_v43, %v3038_v43  ;;  %v4462_v62 = vpack.c.bf16 %v3271_v9, %v3271_v9  ;;  %v3039_v16 = vadd.f32 %v3023_v56, %v3007_v0  ;;  %v3272_v31 = vadd.f32 %v3256_v1, %v3240_v46  ;;  %v4706_v0 = vpop.f32.mrb[20].mxu0  ;;  %v4738_v46 = vpop.f32.mrb[20].mxu1 }
 0x42d   : > { %v4444_v29 = vpack.c.bf16 %v3036_v63, %v3036_v63  ;;  %v4460_v48 = vpack.c.bf16 %v3269_v34, %v3269_v34  ;;  %v3037_v54 = vadd.f32 %v3021_v11, %v3005_v7  ;;  %v3270_v50 = vadd.f32 %v3254_v36, %v3238_v10  ;;  %v2957_v56 = vpop.f32.mrb[21].mxu0  ;;  %v3190_v1 = vpop.f32.mrb[21].mxu1  ;;  %v6997_v63 = vld [vmem:[#allocation53_spill] sm:$0xff] }
 0x42e   : > { %3118 = vst [vmem:[#allocation12 + $0x28] sm:$0xf] %v4446_v57  ;;  %3351 = vst [vmem:[#allocation12 + $0x2c] sm:$0xf] %v4462_v62  ;;  %v4447_v24 = vpack.c.bf16 %v3039_v16, %v3039_v16  ;;  %v4463_v22 = vpack.c.bf16 %v3272_v31, %v3272_v31  ;;  %v3010_v55 = vmul.f32 %v6492_v12, %v6992_v17  ;;  %v4707_v57 = vpop.f32.mrb[22].mxu0  ;;  %v4739_v62 = vpop.f32.mrb[22].mxu1 }
 0x42f   : > { %v3243_v14 = vmul.f32 %v6492_v12, %v6993_v18  ;;  %3116 = vst [vmem:[#allocation12 + $0x8] sm:$0xf] %v4444_v29  ;;  %3349 = vst [vmem:[#allocation12 + $0xc] sm:$0xf] %v4460_v48  ;;  %v4445_v53 = vpack.c.bf16 %v3037_v54, %v3037_v54  ;;  %v4461_v58 = vpack.c.bf16 %v3270_v50, %v3270_v50  ;;  %v6998_v16 = vld [vmem:[#allocation47_spill] sm:$0xff]  ;;  %v6999_v29 = vld [vmem:[#allocation49_spill] sm:$0xff] }
 0x430   : > { %v3008_v7 = vmul.f32 %v6494_v5, %v6994_v3  ;;  %v3241_v10 = vmul.f32 %v6494_v5, %v6995_v6  ;;  %3119 = vst [vmem:[#allocation12 + $0x38] sm:$0xf] %v4447_v24  ;;  %3352 = vst [vmem:[#allocation12 + $0x3c] sm:$0xf] %v4463_v22  ;;  %v3026_v43 = vmul.f32 %v4706_v0, %v6496_v28  ;;  %v2960_v17 = vpop.f32.mrb[23].mxu0  ;;  %v3193_v18 = vpop.f32.mrb[23].mxu1 }
 0x431   : > { %v3259_v9 = vmul.f32 %v4738_v46, %v6496_v28  ;;  %v3011_v60 = vmul.f32 %v6498_v51, %v6996_v41  ;;  %v3244_v34 = vmul.f32 %v6498_v51, %v6997_v63  ;;  %3117 = vst [vmem:[#allocation12 + $0x18] sm:$0xf] %v4445_v53  ;;  %3350 = vst [vmem:[#allocation12 + $0x1c] sm:$0xf] %v4461_v58 }
 0x432   : > { %v3024_v11 = vmul.f32 %v2957_v56, %v6504_v42  ;;  %v3257_v36 = vmul.f32 %v3190_v1, %v6504_v42  ;;  %v3009_v31 = vmul.f32 %v6506_v8, %v6998_v16  ;;  %v3242_v48 = vmul.f32 %v6506_v8, %v6999_v29  ;;  %v7002_v16 = vld [vmem:[#allocation54_spill] sm:$0xff]  ;;  %v7003_v29 = vld [vmem:[#allocation55_spill] sm:$0xff] }
 0x433   : > { %v3042_v54 = vadd.f32 %v3026_v43, %v3010_v55  ;;  %v3275_v50 = vadd.f32 %v3259_v9, %v3243_v14  ;;  %v3027_v24 = vmul.f32 %v4707_v57, %v6512_v13  ;;  %v3260_v22 = vmul.f32 %v4739_v62, %v6512_v13  ;;  %v7000_v57 = vld [vmem:[#allocation56_spill] sm:$0xff] }
 0x434   : > { %v3040_v53 = vadd.f32 %v3024_v11, %v3008_v7  ;;  %v3273_v58 = vadd.f32 %v3257_v36, %v3241_v10  ;;  %v3025_v0 = vmul.f32 %v2960_v17, %v6520_v4  ;;  %v3258_v46 = vmul.f32 %v3193_v18, %v6520_v4  ;;  %v7001_v10 = vld [vmem:[#allocation58_spill] sm:$0xff]  ;;  %v7004_v17 = vld [vmem:[#allocation57_spill] sm:$0xff] }
 0x435   : > { %v4450_v3 = vpack.c.bf16 %v3042_v54, %v3042_v54  ;;  %v4466_v6 = vpack.c.bf16 %v3275_v50, %v3275_v50  ;;  %v3043_v56 = vadd.f32 %v3027_v24, %v3011_v60  ;;  %v3276_v1 = vadd.f32 %v3260_v22, %v3244_v34  ;;  %v4710_v60 = vpop.f32.mrb[24].mxu0  ;;  %v4742_v34 = vpop.f32.mrb[24].mxu1 }
 0x436   : > { %v4448_v41 = vpack.c.bf16 %v3040_v53, %v3040_v53  ;;  %v4464_v63 = vpack.c.bf16 %v3273_v58, %v3273_v58  ;;  %v3041_v55 = vadd.f32 %v3025_v0, %v3009_v31  ;;  %v3274_v14 = vadd.f32 %v3258_v46, %v3242_v48  ;;  %v2973_v24 = vpop.f32.mrb[25].mxu0  ;;  %v3206_v22 = vpop.f32.mrb[25].mxu1  ;;  %v7005_v53 = vld [vmem:[#allocation59_spill] sm:$0xff] }
 0x437   : > { %3122 = vst [vmem:[#allocation12 + $0x68] sm:$0xf] %v4450_v3  ;;  %3355 = vst [vmem:[#allocation12 + $0x6c] sm:$0xf] %v4466_v6  ;;  %v4451_v43 = vpack.c.bf16 %v3043_v56, %v3043_v56  ;;  %v4467_v9 = vpack.c.bf16 %v3276_v1, %v3276_v1  ;;  %v3014_v7 = vmul.f32 %v6532_v59, %v7000_v57  ;;  %v4711_v3 = vpop.f32.mrb[26].mxu0  ;;  %v4743_v6 = vpop.f32.mrb[26].mxu1 }
 0x438   : > { %v3247_v11 = vmul.f32 %v6532_v59, %v7001_v10  ;;  %3120 = vst [vmem:[#allocation12 + $0x48] sm:$0xf] %v4448_v41  ;;  %3353 = vst [vmem:[#allocation12 + $0x4c] sm:$0xf] %v4464_v63  ;;  %v4449_v36 = vpack.c.bf16 %v3041_v55, %v3041_v55  ;;  %v4465_v62 = vpack.c.bf16 %v3274_v14, %v3274_v14  ;;  %v5136_v56 = vld [vmem:[#allocation2 + $0x250] sm:$0xff]  ;;  %v5137_v41 = vld [vmem:[#allocation2 + $0x258] sm:$0xff] }
 0x439   : > { %v3012_v31 = vmul.f32 %v6534_v26, %v7002_v16  ;;  %v3245_v48 = vmul.f32 %v6534_v26, %v7003_v29  ;;  %3123 = vst [vmem:[#allocation12 + $0x78] sm:$0xf] %v4451_v43  ;;  %3356 = vst [vmem:[#allocation12 + $0x7c] sm:$0xf] %v4467_v9  ;;  %v3030_v54 = vmul.f32 %v4710_v60, %v6536_v21  ;;  %v2976_v57 = vpop.f32.mrb[27].mxu0  ;;  %v3209_v10 = vpop.f32.mrb[27].mxu1 }
 0x43a   : > { %v3263_v50 = vmul.f32 %v4742_v34, %v6536_v21  ;;  %v3015_v18 = vmul.f32 %v6538_v27, %v7004_v17  ;;  %v3248_v58 = vmul.f32 %v6538_v27, %v7005_v53  ;;  %3121 = vst [vmem:[#allocation12 + $0x58] sm:$0xf] %v4449_v36  ;;  %3354 = vst [vmem:[#allocation12 + $0x5c] sm:$0xf] %v4465_v62 }
 0x43b   : > { %v3028_v0 = vmul.f32 %v2973_v24, %v6544_v20  ;;  %v3261_v46 = vmul.f32 %v3206_v22, %v6544_v20  ;;  %v3013_v1 = vmul.f32 %v5136_v56, %v6546_v35  ;;  %v3246_v63 = vmul.f32 %v5137_v41, %v6546_v35  ;;  %v5139_v56 = vld [vmem:[#allocation2 + $0x310] sm:$0xff]  ;;  %v5140_v41 = vld [vmem:[#allocation2 + $0x318] sm:$0xff] }
 0x43c   : > { %v3046_v55 = vadd.f32 %v3030_v54, %v3014_v7  ;;  %v3279_v14 = vadd.f32 %v3263_v50, %v3247_v11  ;;  %v3031_v43 = vmul.f32 %v4711_v3, %v6552_v32  ;;  %v3264_v9 = vmul.f32 %v4743_v6, %v6552_v32  ;;  %v5138_v3 = vld [vmem:[#allocation2 + $0x390] sm:$0xff] }
 0x43d   : > { %v3044_v36 = vadd.f32 %v3028_v0, %v3012_v31  ;;  %v3277_v62 = vadd.f32 %v3261_v46, %v3245_v48  ;;  %v3029_v60 = vmul.f32 %v2976_v57, %v6560_v52  ;;  %v3262_v34 = vmul.f32 %v3209_v10, %v6560_v52  ;;  %v7006_v48 = vld [vmem:[#allocation60_spill] sm:$0xff] }
 0x43e   : > { %v4454_v16 = vpack.c.bf16 %v3046_v55, %v3046_v55  ;;  %v4470_v29 = vpack.c.bf16 %v3279_v14, %v3279_v14  ;;  %v3047_v24 = vadd.f32 %v3031_v43, %v3015_v18  ;;  %v3280_v22 = vadd.f32 %v3264_v9, %v3248_v58  ;;  %v4714_v18 = vpop.f32.mrb[28].mxu0  ;;  %v4746_v58 = vpop.f32.mrb[28].mxu1  ;;  %v5141_v57 = vld [vmem:[#allocation2 + $0x3d0] sm:$0xff] }
 0x43f   : > { %v4452_v17 = vpack.c.bf16 %v3044_v36, %v3044_v36  ;;  %v4468_v53 = vpack.c.bf16 %v3277_v62, %v3277_v62  ;;  %v3045_v7 = vadd.f32 %v3029_v60, %v3013_v1  ;;  %v3278_v11 = vadd.f32 %v3262_v34, %v3246_v63  ;;  %v2989_v43 = vpop.f32.mrb[29].mxu0  ;;  %v3222_v9 = vpop.f32.mrb[29].mxu1  ;;  %v5142_v36 = vld [vmem:[#allocation2 + $0x3d8] sm:$0xff] }
 0x440   : > { %3126 = vst [vmem:[#allocation12 + $0xa8] sm:$0xf] %v4454_v16  ;;  %3359 = vst [vmem:[#allocation12 + $0xac] sm:$0xf] %v4470_v29  ;;  %v4455_v54 = vpack.c.bf16 %v3047_v24, %v3047_v24  ;;  %v4471_v50 = vpack.c.bf16 %v3280_v22, %v3280_v22  ;;  %v3018_v31 = vmul.f32 %v5138_v3, %v6572_v15  ;;  %v4715_v16 = vpop.f32.mrb[30].mxu0  ;;  %v4747_v29 = vpop.f32.mrb[30].mxu1 }
 0x441   : > { %v3251_v0 = vmul.f32 %v6572_v15, %v7006_v48  ;;  %3124 = vst [vmem:[#allocation12 + $0x88] sm:$0xf] %v4452_v17  ;;  %3357 = vst [vmem:[#allocation12 + $0x8c] sm:$0xf] %v4468_v53  ;;  %v4453_v46 = vpack.c.bf16 %v3045_v7, %v3045_v7  ;;  %v4469_v6 = vpack.c.bf16 %v3278_v11, %v3278_v11  ;;  %v5143_v24 = vld [vmem:[#allocation2 + $0x350] sm:$0xff]  ;;  %v5144_v17 = vld [vmem:[#allocation2 + $0x358] sm:$0xff] }
 0x442   : > { %v3016_v1 = vmul.f32 %v5139_v56, %v6574_v61  ;;  %v3249_v63 = vmul.f32 %v5140_v41, %v6574_v61  ;;  %3127 = vst [vmem:[#allocation12 + $0xb8] sm:$0xf] %v4455_v54  ;;  %3360 = vst [vmem:[#allocation12 + $0xbc] sm:$0xf] %v4471_v50  ;;  %v3034_v55 = vmul.f32 %v4714_v18, %v6576_v19  ;;  %v2992_v3 = vpop.f32.mrb[31].mxu0  ;;  %v3225_v48 = vpop.f32.mrb[31].mxu1 }
 0x443   : > { %v3267_v14 = vmul.f32 %v4746_v58, %v6576_v19  ;;  %v3019_v10 = vmul.f32 %v5141_v57, %v6578_v30  ;;  %v3252_v62 = vmul.f32 %v5142_v36, %v6578_v30  ;;  %3125 = vst [vmem:[#allocation12 + $0x98] sm:$0xf] %v4453_v46  ;;  %3358 = vst [vmem:[#allocation12 + $0x9c] sm:$0xf] %v4469_v6 }
 0x444   : > { %v3032_v60 = vmul.f32 %v2989_v43, %v6584_v45  ;;  %v3265_v34 = vmul.f32 %v3222_v9, %v6584_v45  ;;  %v3017_v22 = vmul.f32 %v5143_v24, %v6586_v2  ;;  %v3250_v53 = vmul.f32 %v5144_v17, %v6586_v2  ;;  %v5147_v24 = vld [vmem:[#allocation2 + $0x20] sm:$0xff]  ;;  %v5148_v17 = vld [vmem:[#allocation2 + $0x28] sm:$0xff] }
 0x445   : > { %v3050_v7 = vadd.f32 %v3034_v55, %v3018_v31  ;;  %v3283_v11 = vadd.f32 %v3267_v14, %v3251_v0  ;;  %v3035_v54 = vmul.f32 %v4715_v16, %v6592_v39  ;;  %v3268_v50 = vmul.f32 %v4747_v29, %v6592_v39  ;;  %v5145_v16 = vld [vmem:[#allocation2 + $0xa0] sm:$0xff] }
 0x446   : > { %v3048_v46 = vadd.f32 %v3032_v60, %v3016_v1  ;;  %v3281_v6 = vadd.f32 %v3265_v34, %v3249_v63  ;;  %v3033_v18 = vmul.f32 %v2992_v3, %v6600_v49  ;;  %v3266_v58 = vmul.f32 %v3225_v48, %v6600_v49  ;;  %v5146_v63 = vld [vmem:[#allocation2 + $0xa8] sm:$0xff] }
 0x447   : > { %v4458_v56 = vpack.c.bf16 %v3050_v7, %v3050_v7  ;;  %v4474_v41 = vpack.c.bf16 %v3283_v11, %v3283_v11  ;;  %v3051_v43 = vadd.f32 %v3035_v54, %v3019_v10  ;;  %v3284_v9 = vadd.f32 %v3268_v50, %v3252_v62  ;;  %v4766_v10 = vpop.f32.mrb[32].mxu0  ;;  %v4798_v62 = vpop.f32.mrb[32].mxu1  ;;  %v5149_v50 = vld [vmem:[#allocation2 + $0xe0] sm:$0xff]  ;;  %v5150_v48 = vld [vmem:[#allocation2 + $0xe8] sm:$0xff] }
 0x448   : > { %v4456_v57 = vpack.c.bf16 %v3048_v46, %v3048_v46  ;;  %v4472_v36 = vpack.c.bf16 %v3281_v6, %v3281_v6  ;;  %v3049_v31 = vadd.f32 %v3033_v18, %v3017_v22  ;;  %v3282_v0 = vadd.f32 %v3266_v58, %v3250_v53  ;;  %v3407_v54 = vpop.f32.mrb[33].mxu0 }
 0x449   : > { %3130 = vst [vmem:[#allocation12 + $0xe8] sm:$0xf] %v4458_v56  ;;  %3363 = vst [vmem:[#allocation12 + $0xec] sm:$0xf] %v4474_v41  ;;  %v4459_v55 = vpack.c.bf16 %v3051_v43, %v3051_v43  ;;  %v4475_v14 = vpack.c.bf16 %v3284_v9, %v3284_v9  ;;  %v3472_v1 = vmul.f32 %v5145_v16, %v6452_v40  ;;  %v4767_v18 = vpop.f32.mrb[34].mxu0  ;;  %v5151_v56 = vld [vmem:[#allocation2 + $0x60] sm:$0xff] }
 0x44a   : > { %v3705_v60 = vmul.f32 %v5146_v63, %v6452_v40  ;;  %3128 = vst [vmem:[#allocation12 + $0xc8] sm:$0xf] %v4456_v57  ;;  %3361 = vst [vmem:[#allocation12 + $0xcc] sm:$0xf] %v4472_v36  ;;  %v4457_v34 = vpack.c.bf16 %v3049_v31, %v3049_v31  ;;  %v4473_v29 = vpack.c.bf16 %v3282_v0, %v3282_v0  ;;  %v3640_v40 = vpop.f32.mrb[33].mxu1  ;;  %v3410_v31 = vpop.f32.mrb[35].mxu0 }
 0x44b   : > { %v3470_v22 = vmul.f32 %v5147_v24, %v6454_v37  ;;  %v3703_v53 = vmul.f32 %v5148_v17, %v6454_v37  ;;  %3131 = vst [vmem:[#allocation12 + $0xf8] sm:$0xf] %v4459_v55  ;;  %3364 = vst [vmem:[#allocation12 + $0xfc] sm:$0xf] %v4475_v14  ;;  %v3488_v7 = vmul.f32 %v4766_v10, %v6456_v44  ;;  %v4799_v58 = vpop.f32.mrb[34].mxu1  ;;  %v5153_v17 = vld [vmem:[#allocation2 + $0x1a0] sm:$0xff] }
 0x44c   : > { %v3721_v11 = vmul.f32 %v4798_v62, %v6456_v44  ;;  %v3473_v3 = vmul.f32 %v5149_v50, %v6458_v47  ;;  %v3706_v46 = vmul.f32 %v5150_v48, %v6458_v47  ;;  %3129 = vst [vmem:[#allocation12 + $0xd8] sm:$0xf] %v4457_v34  ;;  %3362 = vst [vmem:[#allocation12 + $0xdc] sm:$0xf] %v4473_v29  ;;  %v5152_v44 = vld [vmem:[#allocation2 + $0x68] sm:$0xff]  ;;  %v3643_v0 = vpop.f32.mrb[35].mxu1 }
 0x44d   : > { %v3486_v6 = vmul.f32 %v3407_v54, %v6466_v23  ;;  %v3719_v37 = vmul.f32 %v3640_v40, %v6466_v23  ;;  %v3471_v41 = vmul.f32 %v5151_v56, %v6460_v38  ;;  %v3704_v43 = vmul.f32 %v5152_v44, %v6460_v38  ;;  %v4770_v54 = vpop.f32.mrb[36].mxu0  ;;  %v4802_v40 = vpop.f32.mrb[36].mxu1  ;;  %v5155_v50 = vld [vmem:[#allocation2 + $0x120] sm:$0xff]  ;;  %v5156_v48 = vld [vmem:[#allocation2 + $0x128] sm:$0xff] }
 0x44e   : > { %v3504_v9 = vadd.f32 %v3488_v7, %v3472_v1  ;;  %v3737_v57 = vadd.f32 %v3721_v11, %v3705_v60  ;;  %v3489_v36 = vmul.f32 %v4767_v18, %v6472_v33  ;;  %v3722_v47 = vmul.f32 %v4799_v58, %v6472_v33  ;;  %v3423_v18 = vpop.f32.mrb[37].mxu0  ;;  %v5157_v58 = vld [vmem:[#allocation2 + $0x1e0] sm:$0xff] }
 0x44f   : > { %v3502_v55 = vadd.f32 %v3486_v6, %v3470_v22  ;;  %v3735_v14 = vadd.f32 %v3719_v37, %v3703_v53  ;;  %v3487_v23 = vmul.f32 %v3410_v31, %v6480_v25  ;;  %v3720_v16 = vmul.f32 %v3643_v0, %v6480_v25  ;;  %v5154_v53 = vld [vmem:[#allocation2 + $0x1a8] sm:$0xff] }
 0x450   : > { %v4478_v63 = vpack.c.bf16 %v3504_v9, %v3504_v9  ;;  %v4494_v34 = vpack.c.bf16 %v3737_v57, %v3737_v57  ;;  %v3505_v29 = vadd.f32 %v3489_v36, %v3473_v3  ;;  %v3738_v10 = vadd.f32 %v3722_v47, %v3706_v46  ;;  %v4771_v9 = vpop.f32.mrb[38].mxu0  ;;  %v5159_v36 = vld [vmem:[#allocation2 + $0x160] sm:$0xff] }
 0x451   : > { %v4476_v62 = vpack.c.bf16 %v3502_v55, %v3502_v55  ;;  %v4492_v38 = vpack.c.bf16 %v3735_v14, %v3735_v14  ;;  %v3503_v1 = vadd.f32 %v3487_v23, %v3471_v41  ;;  %v3736_v60 = vadd.f32 %v3720_v16, %v3704_v43  ;;  %v5158_v41 = vld [vmem:[#allocation2 + $0x1e8] sm:$0xff]  ;;  %v3426_v23 = vpop.f32.mrb[39].mxu0 }
 0x452   : > { %3584 = vst [vmem:[#allocation13 + $0x10] sm:$0xf] %v4478_v63  ;;  %3817 = vst [vmem:[#allocation13 + $0x14] sm:$0xf] %v4494_v34  ;;  %v4479_v24 = vpack.c.bf16 %v3505_v29, %v3505_v29  ;;  %v4495_v33 = vpack.c.bf16 %v3738_v10, %v3738_v10  ;;  %v3476_v22 = vmul.f32 %v5153_v17, %v6492_v12 }
 0x453   : > { %v3709_v7 = vmul.f32 %v5154_v53, %v6492_v12  ;;  %3582 = vst [vmem:[#allocation13] sm:$0xf] %v4476_v62  ;;  %3815 = vst [vmem:[#allocation13 + $0x4] sm:$0xf] %v4492_v38  ;;  %v4477_v25 = vpack.c.bf16 %v3503_v1, %v3503_v1  ;;  %v4493_v11 = vpack.c.bf16 %v3736_v60, %v3736_v60  ;;  %v3656_v12 = vpop.f32.mrb[37].mxu1 }
 0x454   : > { %v3474_v3 = vmul.f32 %v5155_v50, %v6494_v5  ;;  %v3707_v46 = vmul.f32 %v5156_v48, %v6494_v5  ;;  %3585 = vst [vmem:[#allocation13 + $0x18] sm:$0xf] %v4479_v24  ;;  %3818 = vst [vmem:[#allocation13 + $0x1c] sm:$0xf] %v4495_v33  ;;  %v3492_v6 = vmul.f32 %v4770_v54, %v6496_v28  ;;  %v4803_v57 = vpop.f32.mrb[38].mxu1  ;;  %v4774_v54 = vpop.f32.mrb[40].mxu0 }
 0x455   : > { %v3725_v37 = vmul.f32 %v4802_v40, %v6496_v28  ;;  %v3477_v56 = vmul.f32 %v5157_v58, %v6498_v51  ;;  %v3710_v44 = vmul.f32 %v5158_v41, %v6498_v51  ;;  %3583 = vst [vmem:[#allocation13 + $0x8] sm:$0xf] %v4477_v25  ;;  %3816 = vst [vmem:[#allocation13 + $0xc] sm:$0xf] %v4493_v11  ;;  %v5160_v28 = vld [vmem:[#allocation2 + $0x168] sm:$0xff]  ;;  %v3659_v16 = vpop.f32.mrb[39].mxu1 }
 0x456   : > { %v3490_v43 = vmul.f32 %v3423_v18, %v6504_v42  ;;  %v3723_v5 = vmul.f32 %v3656_v12, %v6504_v42  ;;  %v3475_v47 = vmul.f32 %v5159_v36, %v6506_v8  ;;  %v3708_v31 = vmul.f32 %v5160_v28, %v6506_v8  ;;  %v4806_v40 = vpop.f32.mrb[40].mxu1  ;;  %v5163_v50 = vld [vmem:[#allocation2 + $0x220] sm:$0xff]  ;;  %v5164_v48 = vld [vmem:[#allocation2 + $0x228] sm:$0xff]  ;;  %v3439_v18 = vpop.f32.mrb[41].mxu0 }
 0x457   : > { %v3508_v0 = vadd.f32 %v3492_v6, %v3476_v22  ;;  %v3741_v55 = vadd.f32 %v3725_v37, %v3709_v7  ;;  %v3493_v14 = vmul.f32 %v4771_v9, %v6512_v13  ;;  %v3726_v51 = vmul.f32 %v4803_v57, %v6512_v13  ;;  %v5161_v22 = vld [vmem:[#allocation2 + $0x2a0] sm:$0xff]  ;;  %v5162_v7 = vld [vmem:[#allocation2 + $0x2a8] sm:$0xff] }
 0x458   : > { %v3506_v63 = vadd.f32 %v3490_v43, %v3474_v3  ;;  %v3739_v34 = vadd.f32 %v3723_v5, %v3707_v46  ;;  %v3491_v42 = vmul.f32 %v3426_v23, %v6520_v4  ;;  %v3724_v29 = vmul.f32 %v3659_v16, %v6520_v4  ;;  %v5165_v12 = vld [vmem:[#allocation2 + $0x2e0] sm:$0xff]  ;;  %v4775_v43 = vpop.f32.mrb[42].mxu0 }
 0x459   : > { %v4482_v10 = vpack.c.bf16 %v3508_v0, %v3508_v0  ;;  %v4498_v62 = vpack.c.bf16 %v3741_v55, %v3741_v55  ;;  %v3509_v38 = vadd.f32 %v3493_v14, %v3477_v56  ;;  %v3742_v1 = vadd.f32 %v3726_v51, %v3710_v44  ;;  %v5166_v56 = vld [vmem:[#allocation2 + $0x2e8] sm:$0xff]  ;;  %v5167_v9 = vld [vmem:[#allocation2 + $0x260] sm:$0xff]  ;;  %v3442_v0 = vpop.f32.mrb[43].mxu0 }
 0x45a   : > { %v4480_v60 = vpack.c.bf16 %v3506_v63, %v3506_v63  ;;  %v4496_v8 = vpack.c.bf16 %v3739_v34, %v3739_v34  ;;  %v3507_v24 = vadd.f32 %v3491_v42, %v3475_v47  ;;  %v3740_v33 = vadd.f32 %v3724_v29, %v3708_v31 }
 0x45b   : > { %3588 = vst [vmem:[#allocation13 + $0x30] sm:$0xf] %v4482_v10  ;;  %3821 = vst [vmem:[#allocation13 + $0x34] sm:$0xf] %v4498_v62  ;;  %v4483_v17 = vpack.c.bf16 %v3509_v38, %v3509_v38  ;;  %v4499_v13 = vpack.c.bf16 %v3742_v1, %v3742_v1  ;;  %v3480_v53 = vmul.f32 %v5161_v22, %v6532_v59  ;;  %v5169_v1 = vld [vmem:[#allocation2 + $0x3a0] sm:$0xff] }
 0x45c   : > { %v3713_v25 = vmul.f32 %v5162_v7, %v6532_v59  ;;  %3586 = vst [vmem:[#allocation13 + $0x20] sm:$0xf] %v4480_v60  ;;  %3819 = vst [vmem:[#allocation13 + $0x24] sm:$0xf] %v4496_v8  ;;  %v4481_v4 = vpack.c.bf16 %v3507_v24, %v3507_v24  ;;  %v4497_v11 = vpack.c.bf16 %v3740_v33, %v3740_v33  ;;  %v3672_v59 = vpop.f32.mrb[41].mxu1  ;;  %v5170_v8 = vld [vmem:[#allocation2 + $0x3a8] sm:$0xff] }
 0x45d   : > { %v3478_v3 = vmul.f32 %v5163_v50, %v6534_v26  ;;  %v3711_v46 = vmul.f32 %v5164_v48, %v6534_v26  ;;  %3589 = vst [vmem:[#allocation13 + $0x38] sm:$0xf] %v4483_v17  ;;  %3822 = vst [vmem:[#allocation13 + $0x3c] sm:$0xf] %v4499_v13  ;;  %v3496_v6 = vmul.f32 %v4774_v54, %v6536_v21  ;;  %v4807_v5 = vpop.f32.mrb[42].mxu1  ;;  %v4778_v17 = vpop.f32.mrb[44].mxu0 }
 0x45e   : > { %v3729_v37 = vmul.f32 %v4806_v40, %v6536_v21  ;;  %v3481_v58 = vmul.f32 %v5165_v12, %v6538_v27  ;;  %v3714_v41 = vmul.f32 %v5166_v56, %v6538_v27  ;;  %3587 = vst [vmem:[#allocation13 + $0x28] sm:$0xf] %v4481_v4  ;;  %3820 = vst [vmem:[#allocation13 + $0x2c] sm:$0xf] %v4497_v11  ;;  %v5168_v21 = vld [vmem:[#allocation2 + $0x268] sm:$0xff]  ;;  %v3675_v55 = vpop.f32.mrb[43].mxu1 }
 0x45f   : > { %v3494_v44 = vmul.f32 %v3439_v18, %v6544_v20  ;;  %v3727_v26 = vmul.f32 %v3672_v59, %v6544_v20  ;;  %v3479_v57 = vmul.f32 %v5167_v9, %v6546_v35  ;;  %v3712_v36 = vmul.f32 %v5168_v21, %v6546_v35  ;;  %v4810_v13 = vpop.f32.mrb[44].mxu1  ;;  %v5171_v22 = vld [vmem:[#allocation2 + $0x320] sm:$0xff]  ;;  %v5172_v7 = vld [vmem:[#allocation2 + $0x328] sm:$0xff]  ;;  %v3455_v54 = vpop.f32.mrb[45].mxu0 }
 0x460   : > { %v3512_v47 = vadd.f32 %v3496_v6, %v3480_v53  ;;  %v3745_v28 = vadd.f32 %v3729_v37, %v3713_v25  ;;  %v3497_v31 = vmul.f32 %v4775_v43, %v6552_v32  ;;  %v3730_v27 = vmul.f32 %v4807_v5, %v6552_v32  ;;  %v5173_v40 = vld [vmem:[#allocation2 + $0x3e0] sm:$0xff]  ;;  %v4779_v6 = vpop.f32.mrb[46].mxu0 }
 0x461   : > { %v3510_v14 = vadd.f32 %v3494_v44, %v3478_v3  ;;  %v3743_v51 = vadd.f32 %v3727_v26, %v3711_v46  ;;  %v3495_v20 = vmul.f32 %v3442_v0, %v6560_v52  ;;  %v3728_v23 = vmul.f32 %v3675_v55, %v6560_v52  ;;  %v5174_v3 = vld [vmem:[#allocation2 + $0x3e8] sm:$0xff]  ;;  %v5175_v18 = vld [vmem:[#allocation2 + $0x360] sm:$0xff]  ;;  %v3458_v44 = vpop.f32.mrb[47].mxu0 }
 0x462   : > { %v4486_v16 = vpack.c.bf16 %v3512_v47, %v3512_v47  ;;  %v4502_v63 = vpack.c.bf16 %v3745_v28, %v3745_v28  ;;  %v3513_v34 = vadd.f32 %v3497_v31, %v3481_v58  ;;  %v3746_v42 = vadd.f32 %v3730_v27, %v3714_v41 }
 0x463   : > { %v4484_v29 = vpack.c.bf16 %v3510_v14, %v3510_v14  ;;  %v4500_v35 = vpack.c.bf16 %v3743_v51, %v3743_v51  ;;  %v3511_v10 = vadd.f32 %v3495_v20, %v3479_v57  ;;  %v3744_v62 = vadd.f32 %v3728_v23, %v3712_v36 }
 0x464   : > { %3592 = vst [vmem:[#allocation13 + $0x50] sm:$0xf] %v4486_v16  ;;  %3825 = vst [vmem:[#allocation13 + $0x54] sm:$0xf] %v4502_v63  ;;  %v4487_v38 = vpack.c.bf16 %v3513_v34, %v3513_v34  ;;  %v4503_v32 = vpack.c.bf16 %v3746_v42, %v3746_v42  ;;  %v3484_v60 = vmul.f32 %v5169_v1, %v6572_v15 }
 0x465   : > { %v3717_v24 = vmul.f32 %v5170_v8, %v6572_v15  ;;  %3590 = vst [vmem:[#allocation13 + $0x40] sm:$0xf] %v4484_v29  ;;  %3823 = vst [vmem:[#allocation13 + $0x44] sm:$0xf] %v4500_v35  ;;  %v4485_v52 = vpack.c.bf16 %v3511_v10, %v3511_v10  ;;  %v4501_v33 = vpack.c.bf16 %v3744_v62, %v3744_v62  ;;  %v3688_v15 = vpop.f32.mrb[45].mxu1 }
 0x466   : > { %v3482_v53 = vmul.f32 %v5171_v22, %v6574_v61  ;;  %v3715_v25 = vmul.f32 %v5172_v7, %v6574_v61  ;;  %3593 = vst [vmem:[#allocation13 + $0x58] sm:$0xf] %v4487_v38  ;;  %3826 = vst [vmem:[#allocation13 + $0x5c] sm:$0xf] %v4503_v32  ;;  %v3500_v4 = vmul.f32 %v4778_v17, %v6576_v19  ;;  %v4811_v37 = vpop.f32.mrb[46].mxu1 }
 0x467   : > { %v3733_v11 = vmul.f32 %v4810_v13, %v6576_v19  ;;  %v3485_v50 = vmul.f32 %v5173_v40, %v6578_v30  ;;  %v3718_v48 = vmul.f32 %v5174_v3, %v6578_v30  ;;  %3591 = vst [vmem:[#allocation13 + $0x48] sm:$0xf] %v4485_v52  ;;  %3824 = vst [vmem:[#allocation13 + $0x4c] sm:$0xf] %v4501_v33  ;;  %v5176_v19 = vld [vmem:[#allocation2 + $0x368] sm:$0xff]  ;;  %v3691_v26 = vpop.f32.mrb[47].mxu1 }
 0x468   : > { %v3498_v46 = vmul.f32 %v3455_v54, %v6584_v45  ;;  %v3731_v61 = vmul.f32 %v3688_v15, %v6584_v45  ;;  %v3483_v59 = vmul.f32 %v5175_v18, %v6586_v2  ;;  %v3716_v12 = vmul.f32 %v5176_v19, %v6586_v2 }
 0x469   : > { %v3516_v58 = vadd.f32 %v3500_v4, %v3484_v60  ;;  %v3749_v56 = vadd.f32 %v3733_v11, %v3717_v24  ;;  %v3501_v41 = vmul.f32 %v4779_v6, %v6592_v39  ;;  %v3734_v30 = vmul.f32 %v4811_v37, %v6592_v39 }
 0x46a   : > { %v3514_v43 = vadd.f32 %v3498_v46, %v3482_v53  ;;  %v3747_v5 = vadd.f32 %v3731_v61, %v3715_v25  ;;  %v3499_v45 = vmul.f32 %v3458_v44, %v6600_v49  ;;  %v3732_v9 = vmul.f32 %v3691_v26, %v6600_v49 }
 0x46b   : > { %v4490_v57 = vpack.c.bf16 %v3516_v58, %v3516_v58  ;;  %v4506_v21 = vpack.c.bf16 %v3749_v56, %v3749_v56  ;;  %v3517_v36 = vadd.f32 %v3501_v41, %v3485_v50  ;;  %v3750_v47 = vadd.f32 %v3734_v30, %v3718_v48 }
 0x46c   : > { %v4488_v28 = vpack.c.bf16 %v3514_v43, %v3514_v43  ;;  %v4504_v2 = vpack.c.bf16 %v3747_v5, %v3747_v5  ;;  %v3515_v31 = vadd.f32 %v3499_v45, %v3483_v59  ;;  %v3748_v27 = vadd.f32 %v3732_v9, %v3716_v12 }
 0x46d   : > { %3596 = vst [vmem:[#allocation13 + $0x70] sm:$0xf] %v4490_v57  ;;  %3829 = vst [vmem:[#allocation13 + $0x74] sm:$0xf] %v4506_v21  ;;  %v4491_v0 = vpack.c.bf16 %v3517_v36, %v3517_v36  ;;  %v4507_v39 = vpack.c.bf16 %v3750_v47, %v3750_v47 }
 0x46e   : > { %3594 = vst [vmem:[#allocation13 + $0x60] sm:$0xf] %v4488_v28  ;;  %3827 = vst [vmem:[#allocation13 + $0x64] sm:$0xf] %v4504_v2  ;;  %v4489_v55 = vpack.c.bf16 %v3515_v31, %v3515_v31  ;;  %v4505_v14 = vpack.c.bf16 %v3748_v27, %v3748_v27 }
 0x46f   : > { %3597 = vst [vmem:[#allocation13 + $0x78] sm:$0xf] %v4491_v0  ;;  %3830 = vst [vmem:[#allocation13 + $0x7c] sm:$0xf] %v4507_v39 }
 0x470   : > { %3595 = vst [vmem:[#allocation13 + $0x68] sm:$0xf] %v4489_v55  ;;  %3828 = vst [vmem:[#allocation13 + $0x6c] sm:$0xf] %v4505_v14 }
 0x471 PF: > { %p4864_p7 = scmp.eq.s32.totalorder %s5560_s30, 1  ;;  %s5484_s27 = smov [#allocation13]  }
 0x472   : > { %s3970_s9 = sshll.u32 %s5484_s27, 4  ;;  %s3971_s9 = int_to_ptr.vmem [resolvable:$true] %s3970_s9 }
 0x473   : > { %s5321_s10 = scalar_lea.vmem %s3971_s9, 2048  ;;  %p5328_p1 = scmp.lt.s32.totalorder %s3971_s9, %s3971_s9 }
 0x474   : > { %p5322_p9 = scmp.ne.s32.totalorder %s3971_s9, %s5321_s10  ;;  %p5329_p3 = scmp.lt.s32.totalorder %s5321_s10, %s5321_s10 }
 0x476   : > { %p5323_p5 = pnand %p5322_p9, %p4864_p7  ;;  %p5330_p2 = por %p5329_p3, %p5328_p1 }
 0x478   : > { %p5324_p10 = pneg %p5323_p5 }
 0x47a   : > { %p5331_p13 = pnand %p5330_p2, %p5324_p10 }
 0x47c   : > { %5334 = shalt.err (!%p5331_p13)
}
 0x47d   : > { %s5335_s22 = scalar_lea.hbm %s6856_s6, 2048 }
 0x47e   : > { %p5336_p0 = scmp.ne.s32.totalorder %s6856_s6, %s5335_s22  ;;  %p5341_p11 = scmp.lt.u32.totalorder %s5335_s22, %s6856_s6 }
 0x480   : > { %p5337_p6 = pnand %p5336_p0, %p4864_p7 }
 0x482   : > { %p5338_p8 = pneg %p5337_p6 }
 0x484   : > { %p5343_p12 = pnand %p5341_p11, %p5338_p8 }
 0x486   : > { %5346 = shalt.err (!%p5343_p12)
}
 0x487   : > { %s5485_s13 = smov 128   ;;  %s5486_s4 = smov 8  }
 0x488   : > { %4831 = dma.vmem_to_hbm [thread:$0]  (%p4864_p7), %s3971_s9, 2048, %s6856_s6, [#allocation14], %s5485_s13, %s5485_s13, %s5486_s4  }
 0x489   : > { %s5487_s23 = smov [#allocation12]  }
 0x48a   : > { %s3953_s18 = sshll.u32 %s5487_s23, 4  ;;  %s3954_s18 = int_to_ptr.vmem [resolvable:$true] %s3953_s18 }
 0x48b   : > { %s5347_s11 = scalar_lea.vmem %s3954_s18, 4096  ;;  %p5354_p10 = scmp.lt.s32.totalorder %s3954_s18, %s3954_s18 }
 0x48c   : > { %p5348_p4 = scmp.ne.s32.totalorder %s3954_s18, %s5347_s11  ;;  %p5355_p1 = scmp.lt.s32.totalorder %s5347_s11, %s5347_s11 }
 0x48e   : > { %p5349_p9 = pnand %p5348_p4, %p4864_p7  ;;  %p5356_p3 = por %p5355_p1, %p5354_p10 }
 0x490   : > { %p5350_p5 = pneg %p5349_p9 }
 0x492   : > { %p5357_p2 = pnand %p5356_p3, %p5350_p5 }
 0x494   : > { %5360 = shalt.err (!%p5357_p2)
}
 0x495   : > { %s5361_s3 = scalar_lea.hbm %s6855_s5, 4096 }
 0x496   : > { %p5362_p13 = scmp.ne.s32.totalorder %s6855_s5, %s5361_s3  ;;  %p5367_p8 = scmp.lt.u32.totalorder %s5361_s3, %s6855_s5 }
 0x498   : > { %p5363_p0 = pnand %p5362_p13, %p4864_p7 }
 0x49a   : > { %p5364_p6 = pneg %p5363_p0 }
 0x49c   : > { %p5369_p11 = pnand %p5367_p8, %p5364_p6 }
 0x49e   : > { %5372 = shalt.err (!%p5369_p11)
}
 0x49f   : > { %s5488_s24 = smov 256   ;;  %s5489_s15 = smov 16  }
 0x4a0   : > { %4829 = dma.vmem_to_hbm [thread:$0]  (%p4864_p7), %s3954_s18, 4096, %s6855_s5, [#allocation5], %s5488_s24, %s5488_s24, %s5489_s15  }
 0x4a1   : > { %s5490_s0 = smov [#allocation15]  }
 0x4a2   : > { %s3987_s17 = sshll.u32 %s5490_s0, 4  ;;  %s3988_s17 = int_to_ptr.vmem [resolvable:$true] %s3987_s17 }
 0x4a3   : > { %s5373_s12 = scalar_lea.vmem %s3988_s17, 2048  ;;  %p5380_p5 = scmp.lt.s32.totalorder %s3988_s17, %s3988_s17 }
 0x4a4   : > { %p5374_p12 = scmp.ne.s32.totalorder %s3988_s17, %s5373_s12  ;;  %p5381_p10 = scmp.lt.s32.totalorder %s5373_s12, %s5373_s12 }
 0x4a6   : > { %p5375_p4 = pnand %p5374_p12, %p4864_p7  ;;  %p5382_p1 = por %p5381_p10, %p5380_p5 }
 0x4a8   : > { %p5376_p9 = pneg %p5375_p4 }
 0x4aa   : > { %p5383_p3 = pnand %p5382_p1, %p5376_p9 }
 0x4ac   : > { %5386 = shalt.err (!%p5383_p3)
}
 0x4ad   : > { %s7007_s23 = sld [smem:[#allocation65_spill]] }
 0x4b3   : > { %s5387_s11 = scalar_lea.hbm %s7007_s23, 2048 }
 0x4b4   : > { %p5388_p2 = scmp.ne.s32.totalorder %s7007_s23, %s5387_s11  ;;  %p5393_p6 = scmp.lt.u32.totalorder %s5387_s11, %s7007_s23 }
 0x4b6   : > { %p5389_p13 = pnand %p5388_p2, %p4864_p7 }
 0x4b8   : > { %p5390_p0 = pneg %p5389_p13 }
 0x4ba   : > { %p5395_p8 = pnand %p5393_p6, %p5390_p0 }
 0x4bc   : > { %5398 = shalt.err (!%p5395_p8)
}
 0x4bd   : > { %4833 = dma.vmem_to_hbm [thread:$0]  (%p4864_p7), %s3988_s17, 2048, %s7007_s23, [#allocation14], %s5485_s13, %s5485_s13, %s5486_s4  }
 0x4be   : > { %5440 = dma.done.wait (%p4864_p7), [#allocation5], 4096  }
 0x4bf   : > { %5442 = vsyncadd (%p4864_p7), [#allocation5], 4294963200 }
 0x4c0   : > { %5444 = dma.done.wait (%p4864_p7), [#allocation14], 4096  }
 0x4c1   : > { %5446 = vsyncadd (%p4864_p7), [#allocation14], 4294963200 }
 0x4c2 PF: > { %s27_s29 = sadd.s32 1, %s5469_s29   ;;  %s7008_s24 = smov %s5453_s25 }
 0x4c3   : > { %p24_p11 = scmp.ge.s32.totalorder %s27_s29, 4   ;;  %s7009_s25 = smov %s5457_s26 }
 0x4c4   : > { %s7010_s26 = smov %s5694_s8  ;;  %s7011_s27 = smov %s5465_s28 }
 0x4c5   : > { %s7012_s28 = smov %s7014_s20  ;;  %26 = sbr.rel (!%p24_p11) target bundleno = 15 (0xf), region = 131 }
 0x4cc   :  { %4011 = vsyncpa [#allocation4], 1 }
 0x4cd   :  { %4013 = vsyncpa [#allocation4 + $0x1], 1 }
 0x4ce   :  { %4014 = vsyncpa [#allocation7], 1 }
 0x4cf   :  { %4016 = vsyncpa [#allocation7 + $0x1], 1 }
 0x4d0   :  { %4017 = vsyncpa [#allocation10], 1 }
 0x4d1   :  { %4018 = vsyncpa [#allocation5], 1 }
 0x4d2   :  { %4020 = vsyncpa [#allocation5 + $0x1], 1 }
 0x4d3   :  { %4021 = vsyncpa [#allocation14], 1 }

</bundles_post_ra>
